<compile_context>
chip_gen: v6e
topology: v6e:2x2x1
jax: 0.10.0
libtpu: 0.0.40
codegen_flags: <defaults>
</compile_context>

<pallas_src>
import functools

import jax
import jax.numpy as jnp
import numpy as np
from jax import lax
from jax.experimental import pallas as pl
from jax.experimental.pallas import tpu as pltpu


def _round_up(x, m):
    return (x + m - 1) // m * m


def _gate_pad_T(w, H, Hp, rows_pad=None):
    """(4H, R) PyTorch gate matrix -> (Rp, 4Hp): transposed, each H-wide gate
    block zero-padded to Hp columns, rows zero-padded R -> Rp."""
    R = w.shape[1]
    Rp = R if rows_pad is None else rows_pad
    wt = w.T.reshape(R, 4, H)
    wt = jnp.pad(wt, ((0, Rp - R), (0, 0), (0, Hp - H)))
    return wt.reshape(Rp, 4 * Hp)


def _gate_pad_bias(b, H, Hp):
    return jnp.pad(b.reshape(4, H), ((0, 0), (0, Hp - H))).reshape(1, 4 * Hp)


def _sigmoid_via_tanh(x):
    # sigmoid(x) == 0.5*tanh(0.5*x) + 0.5 : one EUP push (tanh) instead of
    # exp + reciprocal; the extra mul/add lands on the VPU slot which has slack.
    return 0.5 * jnp.tanh(0.5 * x) + 0.5


def _encoder_kernel(emb_f_ref, emb_b_ref,      # (tile_t*Bp, E) fwd / bwd tiles
                    wih_f_ref, wih_b_ref,      # (E, 4Hp)
                    b_f_ref, b_b_ref,          # (1, 4Hp)
                    whh_f_ref, whh_b_ref,      # (Hp, 4Hp)
                    wfc_f_ref, wfc_b_ref,      # (Hp, Hout)
                    bfc_ref,                   # (1, Hout)
                    out_f_ref, out_b_ref,      # (tile_t, Bp, Hp)
                    h_out_ref, c_out_ref,      # (Bp, Hout)
                    state_ref,                 # scratch (4, Bp, Hp): hf,cf,hb,cb
                    gxf_ref, gxb_ref,          # scratch (tile_t*Bp, 4Hp)
                    *, tile_t, Bp, Hp):
    i = pl.program_id(0)
    nt = pl.num_programs(0)
    w_dt = whh_f_ref.dtype

    @pl.when(i == 0)
    def _():
        state_ref[...] = jnp.zeros_like(state_ref)

    # Per-tile input projection, written directly into the per-direction
    # scratches (no (tile, 8Hp) temporary, biases folded in).
    gxf_ref[...] = jnp.dot(emb_f_ref[...], wih_f_ref[...],
                           preferred_element_type=jnp.float32) + b_f_ref[...]
    gxb_ref[...] = jnp.dot(emb_b_ref[...], wih_b_ref[...],
                           preferred_element_type=jnp.float32) + b_b_ref[...]

    def gates_to_hc(g, c):
        i_g = _sigmoid_via_tanh(g[:, 0 * Hp:1 * Hp])
        f_g = _sigmoid_via_tanh(g[:, 1 * Hp:2 * Hp])
        g_g = jnp.tanh(g[:, 2 * Hp:3 * Hp])
        o_g = _sigmoid_via_tanh(g[:, 3 * Hp:4 * Hp])
        c_new = f_g * c + i_g * g_g
        h_new = o_g * jnp.tanh(c_new)
        return h_new, c_new

    # Fused bidirectional recurrence: each iteration advances one fwd and one
    # bwd step (independent chains -> MXU/EUP/VPU work overlaps).
    # TODO(synk): hold W_hh resident in MXU weight registers across timesteps
    # (pltpu.matmul_push_rhs / matmul_acc_lhs) when Hp <= 256; the (Bp, Hp)
    # recurrent matmul is weight-streaming bound at small batch.
    def step(s, carry):
        hf, cf, hb, cb = carry
        rf = pl.multiple_of(s * Bp, Bp)
        rb = pl.multiple_of((tile_t - 1 - s) * Bp, Bp)
        gf = gxf_ref[pl.ds(rf, Bp), :] + jnp.dot(
            hf.astype(w_dt), whh_f_ref[...], preferred_element_type=jnp.float32)
        gb = gxb_ref[pl.ds(rb, Bp), :] + jnp.dot(
            hb.astype(w_dt), whh_b_ref[...], preferred_element_type=jnp.float32)
        hf, cf = gates_to_hc(gf, cf)
        hb, cb = gates_to_hc(gb, cb)
        out_f_ref[s, :, :] = hf.astype(out_f_ref.dtype)
        out_b_ref[tile_t - 1 - s, :, :] = hb.astype(out_b_ref.dtype)
        return hf, cf, hb, cb

    carry0 = (state_ref[0], state_ref[1], state_ref[2], state_ref[3])
    hf, cf, hb, cb = lax.fori_loop(0, tile_t, step, carry0,
                                   unroll=(True if tile_t <= 8 else 4))
    state_ref[0] = hf
    state_ref[1] = cf
    state_ref[2] = hb
    state_ref[3] = cb

    # Final fc + tanh on the last grid step; wfc split per direction so no
    # (B, 2H) concat is materialized. Hout is lane-padded -> unmasked stores.
    @pl.when(i == nt - 1)
    def _():
        fc_dt = wfc_f_ref.dtype
        h_out_ref[...] = jnp.tanh(
            jnp.dot(hf.astype(fc_dt), wfc_f_ref[...],
                    preferred_element_type=jnp.float32)
            + jnp.dot(hb.astype(fc_dt), wfc_b_ref[...],
                      preferred_element_type=jnp.float32)
            + bfc_ref[...])
        c_out_ref[...] = jnp.tanh(
            jnp.dot(cf.astype(fc_dt), wfc_f_ref[...],
                    preferred_element_type=jnp.float32)
            + jnp.dot(cb.astype(fc_dt), wfc_b_ref[...],
                      preferred_element_type=jnp.float32)
            + bfc_ref[...])


def encoder_forward(input_seqs, params, *, tile_t=None,
                    compute_dtype=jnp.float32):
    # Embedding lookup (gather) stays in XLA.
    # TODO(synk): move the gather in-kernel via scalar-prefetched token ids
    # (PrefetchScalarGridSpec + DMA row gather) to drop the take/pad/transpose
    # HBM passes (biggest relative win on v5e).
    embedded = jnp.take(params["embedding"], input_seqs, axis=0)   # (B, T, E)
    B, T, E = embedded.shape
    H = params["w_hh_f"].shape[1]

    # Lane/sublane alignment: hidden and fc-output -> multiples of 128 lanes,
    # batch -> multiple of 8 sublanes (16 if bf16 packing). Zero-padded weight
    # lanes keep padded h/c lanes exactly zero, so results are exact.
    Hp = _round_up(H, 128)
    Hout = _round_up(H, 128)
    sub = 16 if np.dtype(compute_dtype) == np.dtype(jnp.bfloat16) else 8
    Bp = _round_up(B, sub)

    if tile_t is None:
        tile_t = T
        for cand in (16, 8, 4, 2, 1):
            if T % cand == 0 and T // cand >= 2:
                tile_t = cand
                break
    assert T % tile_t == 0
    nt = T // tile_t

    cd = compute_dtype
    f32 = jnp.float32
    emb = jnp.pad(embedded, ((0, Bp - B), (0, 0), (0, 0)))
    emb_flat = jnp.transpose(emb, (1, 0, 2)).reshape(T * Bp, E).astype(cd)

    wih_f = _gate_pad_T(params["w_ih_f"], H, Hp).astype(cd)            # (E, 4Hp)
    wih_b = _gate_pad_T(params["w_ih_b"], H, Hp).astype(cd)
    b_f = _gate_pad_bias(params["b_ih_f"] + params["b_hh_f"], H, Hp)   # (1, 4Hp)
    b_b = _gate_pad_bias(params["b_ih_b"] + params["b_hh_b"], H, Hp)
    whh_f = _gate_pad_T(params["w_hh_f"], H, Hp, rows_pad=Hp).astype(cd)
    whh_b = _gate_pad_T(params["w_hh_b"], H, Hp, rows_pad=Hp).astype(cd)
    wfc_f = jnp.pad(params["w_fc"][:, :H].T,
                    ((0, Hp - H), (0, Hout - H))).astype(cd)           # (Hp, Hout)
    wfc_b = jnp.pad(params["w_fc"][:, H:].T,
                    ((0, Hp - H), (0, Hout - H))).astype(cd)
    bfc = jnp.pad(params["b_fc"], (0, Hout - H)).reshape(1, Hout)      # (1, Hout)

    out_dtype = jnp.float32
    # TODO(synk): on v5e emit out_f/out_b in bf16 (cast back in the wrapper) to
    # halve writeback on its ~820 GB/s HBM / single vst slot.

    kernel = functools.partial(_encoder_kernel, tile_t=tile_t, Bp=Bp, Hp=Hp)

    grid_spec = pltpu.PrefetchScalarGridSpec(
        num_scalar_prefetch=0,
        grid=(nt,),
        in_specs=[
            pl.BlockSpec((tile_t * Bp, E), lambda i: (i, 0)),           # emb fwd
            pl.BlockSpec((tile_t * Bp, E), lambda i: (nt - 1 - i, 0)),  # emb bwd
            pl.BlockSpec((E, 4 * Hp), lambda i: (0, 0)),                # wih_f
            pl.BlockSpec((E, 4 * Hp), lambda i: (0, 0)),                # wih_b
            pl.BlockSpec((1, 4 * Hp), lambda i: (0, 0)),                # b_f
            pl.BlockSpec((1, 4 * Hp), lambda i: (0, 0)),                # b_b
            pl.BlockSpec((Hp, 4 * Hp), lambda i: (0, 0)),               # whh_f
            pl.BlockSpec((Hp, 4 * Hp), lambda i: (0, 0)),               # whh_b
            pl.BlockSpec((Hp, Hout), lambda i: (0, 0)),                 # wfc_f
            pl.BlockSpec((Hp, Hout), lambda i: (0, 0)),                 # wfc_b
            pl.BlockSpec((1, Hout), lambda i: (0, 0)),                  # bfc
        ],
        out_specs=(
            pl.BlockSpec((tile_t, Bp, Hp), lambda i: (i, 0, 0)),           # out_f
            pl.BlockSpec((tile_t, Bp, Hp), lambda i: (nt - 1 - i, 0, 0)),  # out_b
            pl.BlockSpec((Bp, Hout), lambda i: (0, 0)),                    # h
            pl.BlockSpec((Bp, Hout), lambda i: (0, 0)),                    # c
        ),
        scratch_shapes=[
            pltpu.VMEM((4, Bp, Hp), f32),              # carried hf, cf, hb, cb
            pltpu.VMEM((tile_t * Bp, 4 * Hp), f32),    # gx fwd
            pltpu.VMEM((tile_t * Bp, 4 * Hp), f32),    # gx bwd
        ],
    )

    out_shape = (
        jax.ShapeDtypeStruct((T, Bp, Hp), out_dtype),
        jax.ShapeDtypeStruct((T, Bp, Hp), out_dtype),
        jax.ShapeDtypeStruct((Bp, Hout), f32),
        jax.ShapeDtypeStruct((Bp, Hout), f32),
    )

    # VMEM budget: double-buffered streamed blocks + resident weights/scratch
    # + Mosaic headroom. No 2x fudge (constant-index weight blocks are not
    # re-fetched); cap is generation-aware.
    def nbytes(shape, dtype):
        return int(np.prod(shape)) * np.dtype(dtype).itemsize

    resident = (
        2 * 2 * nbytes((tile_t * Bp, E), cd)               # emb tiles, 2 dirs x 2 bufs
        + 2 * 2 * nbytes((tile_t, Bp, Hp), out_dtype)      # out tiles, 2 dirs x 2 bufs
        + 2 * nbytes((Bp, Hout), f32)                      # h / c
        + 2 * (nbytes((E, 4 * Hp), cd) + nbytes((1, 4 * Hp), f32)
               + nbytes((Hp, 4 * Hp), cd) + nbytes((Hp, Hout), cd))
        + nbytes((1, Hout), f32)
        + nbytes((4, Bp, Hp), f32)
        + 2 * nbytes((tile_t * Bp, 4 * Hp), f32)
    )
    try:
        cap = int(pltpu.get_tpu_info().vmem_capacity_bytes)
    except Exception:
        cap = 64 * 1024 * 1024
    vmem_limit = int(min(cap - (4 << 20), max(resident + (2 << 20), 16 << 20)))

    # TODO(synk): on v7x, split the two LSTM directions across the 2 TensorCores
    # (size-2 "parallel" leading grid axis or pl.core_map) for ~2x on the
    # serial recurrence.
    out_f, out_b, h_enc, c_enc = pl.pallas_call(
        kernel,
        out_shape=out_shape,
        grid_spec=grid_spec,
        compiler_params=pltpu.CompilerParams(
            dimension_semantics=("arbitrary",),
            vmem_limit_bytes=vmem_limit),
    )(emb_flat, emb_flat, wih_f, wih_b, b_f, b_b,
      whh_f, whh_b, wfc_f, wfc_b, bfc)

    outputs = jnp.concatenate(
        [out_f[:, :B, :H], out_b[:, :B, :H]], axis=-1)      # (T, B, 2H)
    outputs = jnp.transpose(outputs, (1, 0, 2)).astype(jnp.float32)
    h = h_enc[:B, :H][None]                                  # (1, B, H)
    c = c_enc[:B, :H][None]                                  # (1, B, H)
    return outputs, (h, c)


def encoder_reference(input_seqs, params):
    """Pure-JAX reference matching torch.nn.LSTM (bidirectional) semantics."""
    embedded = jnp.take(params["embedding"], input_seqs, axis=0)
    B, T, E = embedded.shape
    H = params["w_hh_f"].shape[1]

    def make_cell(w_ih, w_hh, b):
        def step(carry, xt):
            h, c = carry
            gates = xt @ w_ih.T + h @ w_hh.T + b
            i, f, g, o = jnp.split(gates, 4, axis=1)
            i, f, o = jax.nn.sigmoid(i), jax.nn.sigmoid(f), jax.nn.sigmoid(o)
            g = jnp.tanh(g)
            c = f * c + i * g
            h = o * jnp.tanh(c)
            return (h, c), h
        return step

    x_tm = jnp.transpose(embedded, (1, 0, 2))
    h0 = jnp.zeros((B, H), jnp.float32)
    c0 = jnp.zeros((B, H), jnp.float32)
    (hf, cf), out_f = jax.lax.scan(
        make_cell(params["w_ih_f"], params["w_hh_f"],
                  params["b_ih_f"] + params["b_hh_f"]), (h0, c0), x_tm)
    (hb, cb), out_b_rev = jax.lax.scan(
        make_cell(params["w_ih_b"], params["w_hh_b"],
                  params["b_ih_b"] + params["b_hh_b"]), (h0, c0), x_tm[::-1])
    out_b = out_b_rev[::-1]
    outputs = jnp.transpose(jnp.concatenate([out_f, out_b], axis=-1), (1, 0, 2))
    h = jnp.tanh(jnp.concatenate([hf, hb], axis=1) @ params["w_fc"].T
                 + params["b_fc"])[None]
    c = jnp.tanh(jnp.concatenate([cf, cb], axis=1) @ params["w_fc"].T
                 + params["b_fc"])[None]
    return outputs, (h, c)


def init_params(key, vocab_size, embedding_dim, hidden_dim):
    E, H = embedding_dim, hidden_dim
    ks = jax.random.split(key, 11)
    s = 1.0 / np.sqrt(H)

    def u(k, shape):
        return jax.random.uniform(k, shape, jnp.float32, -s, s)

    emb = jax.random.normal(ks[0], (vocab_size, E), jnp.float32)
    emb = emb.at[0].set(0.0)  # padding_idx=0 -> zero embedding row
    return dict(
        embedding=emb,
        w_ih_f=u(ks[1], (4 * H, E)), w_hh_f=u(ks[2], (4 * H, H)),
        b_ih_f=u(ks[3], (4 * H,)),   b_hh_f=u(ks[4], (4 * H,)),
        w_ih_b=u(ks[5], (4 * H, E)), w_hh_b=u(ks[6], (4 * H, H)),
        b_ih_b=u(ks[7], (4 * H,)),   b_hh_b=u(ks[8], (4 * H,)),
        w_fc=u(ks[9], (H, 2 * H)),   b_fc=u(ks[10], (H,)),
    )


if __name__ == "__main__":
    vocab_size, embedding_dim, hidden_dim = 20, 16, 32
    B, T = 4, 8

    key = jax.random.PRNGKey(0)
    pkey, dkey = jax.random.split(key)
    params = init_params(pkey, vocab_size, embedding_dim, hidden_dim)
    input_seqs = jax.random.randint(dkey, (B, T), 0, vocab_size, dtype=jnp.int32)

    outputs, (h, c) = jax.jit(encoder_forward)(input_seqs, params)
    jax.block_until_ready((outputs, h, c))

    assert outputs.shape == (B, T, 2 * hidden_dim)
    assert h.shape == (1, B, hidden_dim) and c.shape == (1, B, hidden_dim)

    ref_out, (ref_h, ref_c) = encoder_reference(input_seqs, params)
    np.testing.assert_allclose(np.asarray(outputs), np.asarray(ref_out),
                               rtol=2e-4, atol=2e-4)
    np.testing.assert_allclose(np.asarray(h), np.asarray(ref_h),
                               rtol=2e-4, atol=2e-4)
    np.testing.assert_allclose(np.asarray(c), np.asarray(ref_c),
                               rtol=2e-4, atol=2e-4)

    print("KERNEL_OK")
</pallas_src>

<mosaic_0001>
module attributes {stable_mosaic.version = 11 : i64} {
  func.func @_encoder_kernel(%arg0: i32, %arg1: memref<32x16xf32, #tpu.memory_space<vmem>>, %arg2: memref<32x16xf32, #tpu.memory_space<vmem>>, %arg3: memref<16x512xf32, #tpu.memory_space<vmem>>, %arg4: memref<16x512xf32, #tpu.memory_space<vmem>>, %arg5: memref<1x512xf32, #tpu.memory_space<vmem>>, %arg6: memref<1x512xf32, #tpu.memory_space<vmem>>, %arg7: memref<128x512xf32, #tpu.memory_space<vmem>>, %arg8: memref<128x512xf32, #tpu.memory_space<vmem>>, %arg9: memref<128x128xf32, #tpu.memory_space<vmem>>, %arg10: memref<128x128xf32, #tpu.memory_space<vmem>>, %arg11: memref<1x128xf32, #tpu.memory_space<vmem>>, %arg12: memref<4x8x128xf32, #tpu.memory_space<vmem>>, %arg13: memref<4x8x128xf32, #tpu.memory_space<vmem>>, %arg14: memref<8x128xf32, #tpu.memory_space<vmem>>, %arg15: memref<8x128xf32, #tpu.memory_space<vmem>>, %arg16: memref<4x8x128xf32, #tpu.memory_space<vmem>>, %arg17: memref<32x512xf32, #tpu.memory_space<vmem>>, %arg18: memref<32x512xf32, #tpu.memory_space<vmem>>) attributes {dimension_semantics = [#tpu.dimension_semantics<arbitrary>], iteration_bounds = array<i64: 2>, scalar_prefetch = 0 : i64, scratch_operands = 3 : i64, tpu.core_type = #tpu.core_type<tc>, window_params = [{transform_indices = @transform_0, window_bounds = array<i64: 32, 16>}, {transform_indices = @transform_1, window_bounds = array<i64: 32, 16>}, {pipeline_mode = #tpu.pipeline_mode<synchronous>, transform_indices = @transform_2, window_bounds = array<i64: 16, 512>}, {pipeline_mode = #tpu.pipeline_mode<synchronous>, transform_indices = @transform_3, window_bounds = array<i64: 16, 512>}, {pipeline_mode = #tpu.pipeline_mode<synchronous>, transform_indices = @transform_4, window_bounds = array<i64: 1, 512>}, {pipeline_mode = #tpu.pipeline_mode<synchronous>, transform_indices = @transform_5, window_bounds = array<i64: 1, 512>}, {pipeline_mode = #tpu.pipeline_mode<synchronous>, transform_indices = @transform_6, window_bounds = array<i64: 128, 512>}, {pipeline_mode = #tpu.pipeline_mode<synchronous>, transform_indices = @transform_7, window_bounds = array<i64: 128, 512>}, {pipeline_mode = #tpu.pipeline_mode<synchronous>, transform_indices = @transform_8, window_bounds = array<i64: 128, 128>}, {pipeline_mode = #tpu.pipeline_mode<synchronous>, transform_indices = @transform_9, window_bounds = array<i64: 128, 128>}, {pipeline_mode = #tpu.pipeline_mode<synchronous>, transform_indices = @transform_10, window_bounds = array<i64: 1, 128>}, {transform_indices = @transform_11, window_bounds = array<i64: 4, 8, 128>}, {transform_indices = @transform_12, window_bounds = array<i64: 4, 8, 128>}, {pipeline_mode = #tpu.pipeline_mode<synchronous>, transform_indices = @transform_13, window_bounds = array<i64: 8, 128>}, {pipeline_mode = #tpu.pipeline_mode<synchronous>, transform_indices = @transform_14, window_bounds = array<i64: 8, 128>}]} {
    %c0_i32 = arith.constant 0 : i32
    %0 = arith.cmpi eq, %arg0, %c0_i32 : i32
    %1 = arith.extui %0 : i1 to i32
    %c0_i32_0 = arith.constant 0 : i32
    %2 = arith.cmpi ne, %1, %c0_i32_0 : i32
    scf.if %2 {
      %cst_176 = arith.constant 0.000000e+00 : f32
      %384 = vector.broadcast %cst_176 : f32 to vector<4x8x128xf32>
      %c0_177 = arith.constant 0 : index
      %c0_178 = arith.constant 0 : index
      %c0_179 = arith.constant 0 : index
      %385 = vector.load %arg16[%c0_177, %c0_178, %c0_179] : memref<4x8x128xf32, #tpu.memory_space<vmem>>, vector<4x8x128xf32>
      tpu.vector_store %arg16[%c0_177, %c0_178, %c0_179], %384 {strides = array<i32>} : memref<4x8x128xf32, #tpu.memory_space<vmem>>, vector<4x8x128xf32>,
    } else {
    }
    %c0 = arith.constant 0 : index
    %c0_1 = arith.constant 0 : index
    %3 = vector.load %arg1[%c0, %c0_1] : memref<32x16xf32, #tpu.memory_space<vmem>>, vector<32x16xf32>
    %c0_2 = arith.constant 0 : index
    %c0_3 = arith.constant 0 : index
    %4 = vector.load %arg3[%c0_2, %c0_3] : memref<16x512xf32, #tpu.memory_space<vmem>>, vector<16x512xf32>
    %cst = arith.constant dense<0.000000e+00> : vector<32x512xf32>
    %5 = tpu.matmul %3, %4, %cst {dimension_numbers = #tpu.dot_dimension_numbers<[1], [0], [0], [1], [0, 0, 1, 1], [], []>} : vector<32x16xf32>, vector<16x512xf32>, vector<32x512xf32> -> vector<32x512xf32>
    %c0_4 = arith.constant 0 : index
    %c0_5 = arith.constant 0 : index
    %6 = vector.load %arg5[%c0_4, %c0_5] : memref<1x512xf32, #tpu.memory_space<vmem>>, vector<1x512xf32>
    %7 = vector.broadcast %6 : vector<1x512xf32> to vector<32x512xf32>
    %8 = arith.addf %5, %7 : vector<32x512xf32>
    %c0_6 = arith.constant 0 : index
    %c0_7 = arith.constant 0 : index
    %9 = vector.load %arg17[%c0_6, %c0_7] : memref<32x512xf32, #tpu.memory_space<vmem>>, vector<32x512xf32>
    tpu.vector_store %arg17[%c0_6, %c0_7], %8 {strides = array<i32>} : memref<32x512xf32, #tpu.memory_space<vmem>>, vector<32x512xf32>,
    %c0_8 = arith.constant 0 : index
    %c0_9 = arith.constant 0 : index
    %10 = vector.load %arg2[%c0_8, %c0_9] : memref<32x16xf32, #tpu.memory_space<vmem>>, vector<32x16xf32>
    %c0_10 = arith.constant 0 : index
    %c0_11 = arith.constant 0 : index
    %11 = vector.load %arg4[%c0_10, %c0_11] : memref<16x512xf32, #tpu.memory_space<vmem>>, vector<16x512xf32>
    %cst_12 = arith.constant dense<0.000000e+00> : vector<32x512xf32>
    %12 = tpu.matmul %10, %11, %cst_12 {dimension_numbers = #tpu.dot_dimension_numbers<[1], [0], [0], [1], [0, 0, 1, 1], [], []>} : vector<32x16xf32>, vector<16x512xf32>, vector<32x512xf32> -> vector<32x512xf32>
    %c0_13 = arith.constant 0 : index
    %c0_14 = arith.constant 0 : index
    %13 = vector.load %arg6[%c0_13, %c0_14] : memref<1x512xf32, #tpu.memory_space<vmem>>, vector<1x512xf32>
    %14 = vector.broadcast %13 : vector<1x512xf32> to vector<32x512xf32>
    %15 = arith.addf %12, %14 : vector<32x512xf32>
    %c0_15 = arith.constant 0 : index
    %c0_16 = arith.constant 0 : index
    %16 = vector.load %arg18[%c0_15, %c0_16] : memref<32x512xf32, #tpu.memory_space<vmem>>, vector<32x512xf32>
    tpu.vector_store %arg18[%c0_15, %c0_16], %15 {strides = array<i32>} : memref<32x512xf32, #tpu.memory_space<vmem>>, vector<32x512xf32>,
    %c0_17 = arith.constant 0 : index
    %c0_18 = arith.constant 0 : index
    %c0_19 = arith.constant 0 : index
    %17 = vector.load %arg16[%c0_17, %c0_18, %c0_19] : memref<4x8x128xf32, #tpu.memory_space<vmem>>, vector<1x8x128xf32>
    %18 = vector.shape_cast %17 : vector<1x8x128xf32> to vector<8x128xf32>
    %c1 = arith.constant 1 : index
    %c0_20 = arith.constant 0 : index
    %c0_21 = arith.constant 0 : index
    %19 = vector.load %arg16[%c1, %c0_20, %c0_21] : memref<4x8x128xf32, #tpu.memory_space<vmem>>, vector<1x8x128xf32>
    %20 = vector.shape_cast %19 : vector<1x8x128xf32> to vector<8x128xf32>
    %c2 = arith.constant 2 : index
    %c0_22 = arith.constant 0 : index
    %c0_23 = arith.constant 0 : index
    %21 = vector.load %arg16[%c2, %c0_22, %c0_23] : memref<4x8x128xf32, #tpu.memory_space<vmem>>, vector<1x8x128xf32>
    %22 = vector.shape_cast %21 : vector<1x8x128xf32> to vector<8x128xf32>
    %c3 = arith.constant 3 : index
    %c0_24 = arith.constant 0 : index
    %c0_25 = arith.constant 0 : index
    %23 = vector.load %arg16[%c3, %c0_24, %c0_25] : memref<4x8x128xf32, #tpu.memory_space<vmem>>, vector<1x8x128xf32>
    %24 = vector.shape_cast %23 : vector<1x8x128xf32> to vector<8x128xf32>
    %c0_i32_26 = arith.constant 0 : i32
    %c8_i32 = arith.constant 8 : i32
    %25 = arith.muli %c0_i32_26, %c8_i32 : i32
    %26 = tpu.assume_multiple %25, 8 : i32
    %c3_i32 = arith.constant 3 : i32
    %27 = arith.subi %c3_i32, %c0_i32_26 : i32
    %c8_i32_27 = arith.constant 8 : i32
    %28 = arith.muli %27, %c8_i32_27 : i32
    %29 = tpu.assume_multiple %28, 8 : i32
    %30 = arith.index_cast %26 : i32 to index
    %c0_28 = arith.constant 0 : index
    %31 = vector.load %arg17[%30, %c0_28] : memref<32x512xf32, #tpu.memory_space<vmem>>, vector<8x512xf32>
    %c0_29 = arith.constant 0 : index
    %c0_30 = arith.constant 0 : index
    %32 = vector.load %arg7[%c0_29, %c0_30] : memref<128x512xf32, #tpu.memory_space<vmem>>, vector<128x512xf32>
    %cst_31 = arith.constant dense<0.000000e+00> : vector<8x512xf32>
    %33 = tpu.matmul %18, %32, %cst_31 {dimension_numbers = #tpu.dot_dimension_numbers<[1], [0], [0], [1], [0, 0, 1, 1], [], []>} : vector<8x128xf32>, vector<128x512xf32>, vector<8x512xf32> -> vector<8x512xf32>
    %34 = arith.addf %31, %33 : vector<8x512xf32>
    %35 = arith.index_cast %29 : i32 to index
    %c0_32 = arith.constant 0 : index
    %36 = vector.load %arg18[%35, %c0_32] : memref<32x512xf32, #tpu.memory_space<vmem>>, vector<8x512xf32>
    %c0_33 = arith.constant 0 : index
    %c0_34 = arith.constant 0 : index
    %37 = vector.load %arg8[%c0_33, %c0_34] : memref<128x512xf32, #tpu.memory_space<vmem>>, vector<128x512xf32>
    %cst_35 = arith.constant dense<0.000000e+00> : vector<8x512xf32>
    %38 = tpu.matmul %22, %37, %cst_35 {dimension_numbers = #tpu.dot_dimension_numbers<[1], [0], [0], [1], [0, 0, 1, 1], [], []>} : vector<8x128xf32>, vector<128x512xf32>, vector<8x512xf32> -> vector<8x512xf32>
    %39 = arith.addf %36, %38 : vector<8x512xf32>
    %40 = vector.extract_strided_slice %34 {offsets = [0, 0], sizes = [8, 128], strides = [1, 1]} : vector<8x512xf32> to vector<8x128xf32>
    %cst_36 = arith.constant 5.000000e-01 : f32
    %41 = vector.broadcast %cst_36 : f32 to vector<8x128xf32>
    %42 = arith.mulf %41, %40 : vector<8x128xf32>
    %43 = math.tanh %42 : vector<8x128xf32>
    %cst_37 = arith.constant 5.000000e-01 : f32
    %44 = vector.broadcast %cst_37 : f32 to vector<8x128xf32>
    %45 = arith.mulf %44, %43 : vector<8x128xf32>
    %cst_38 = arith.constant 5.000000e-01 : f32
    %46 = vector.broadcast %cst_38 : f32 to vector<8x128xf32>
    %47 = arith.addf %45, %46 : vector<8x128xf32>
    %48 = vector.extract_strided_slice %34 {offsets = [0, 128], sizes = [8, 128], strides = [1, 1]} : vector<8x512xf32> to vector<8x128xf32>
    %cst_39 = arith.constant 5.000000e-01 : f32
    %49 = vector.broadcast %cst_39 : f32 to vector<8x128xf32>
    %50 = arith.mulf %49, %48 : vector<8x128xf32>
    %51 = math.tanh %50 : vector<8x128xf32>
    %cst_40 = arith.constant 5.000000e-01 : f32
    %52 = vector.broadcast %cst_40 : f32 to vector<8x128xf32>
    %53 = arith.mulf %52, %51 : vector<8x128xf32>
    %cst_41 = arith.constant 5.000000e-01 : f32
    %54 = vector.broadcast %cst_41 : f32 to vector<8x128xf32>
    %55 = arith.addf %53, %54 : vector<8x128xf32>
    %56 = vector.extract_strided_slice %34 {offsets = [0, 256], sizes = [8, 128], strides = [1, 1]} : vector<8x512xf32> to vector<8x128xf32>
    %57 = math.tanh %56 : vector<8x128xf32>
    %58 = vector.extract_strided_slice %34 {offsets = [0, 384], sizes = [8, 128], strides = [1, 1]} : vector<8x512xf32> to vector<8x128xf32>
    %cst_42 = arith.constant 5.000000e-01 : f32
    %59 = vector.broadcast %cst_42 : f32 to vector<8x128xf32>
    %60 = arith.mulf %59, %58 : vector<8x128xf32>
    %61 = math.tanh %60 : vector<8x128xf32>
    %cst_43 = arith.constant 5.000000e-01 : f32
    %62 = vector.broadcast %cst_43 : f32 to vector<8x128xf32>
    %63 = arith.mulf %62, %61 : vector<8x128xf32>
    %cst_44 = arith.constant 5.000000e-01 : f32
    %64 = vector.broadcast %cst_44 : f32 to vector<8x128xf32>
    %65 = arith.addf %63, %64 : vector<8x128xf32>
    %66 = arith.mulf %55, %20 : vector<8x128xf32>
    %67 = arith.mulf %47, %57 : vector<8x128xf32>
    %68 = arith.addf %66, %67 : vector<8x128xf32>
    %69 = math.tanh %68 : vector<8x128xf32>
    %70 = arith.mulf %65, %69 : vector<8x128xf32>
    %71 = vector.extract_strided_slice %39 {offsets = [0, 0], sizes = [8, 128], strides = [1, 1]} : vector<8x512xf32> to vector<8x128xf32>
    %cst_45 = arith.constant 5.000000e-01 : f32
    %72 = vector.broadcast %cst_45 : f32 to vector<8x128xf32>
    %73 = arith.mulf %72, %71 : vector<8x128xf32>
    %74 = math.tanh %73 : vector<8x128xf32>
    %cst_46 = arith.constant 5.000000e-01 : f32
    %75 = vector.broadcast %cst_46 : f32 to vector<8x128xf32>
    %76 = arith.mulf %75, %74 : vector<8x128xf32>
    %cst_47 = arith.constant 5.000000e-01 : f32
    %77 = vector.broadcast %cst_47 : f32 to vector<8x128xf32>
    %78 = arith.addf %76, %77 : vector<8x128xf32>
    %79 = vector.extract_strided_slice %39 {offsets = [0, 128], sizes = [8, 128], strides = [1, 1]} : vector<8x512xf32> to vector<8x128xf32>
    %cst_48 = arith.constant 5.000000e-01 : f32
    %80 = vector.broadcast %cst_48 : f32 to vector<8x128xf32>
    %81 = arith.mulf %80, %79 : vector<8x128xf32>
    %82 = math.tanh %81 : vector<8x128xf32>
    %cst_49 = arith.constant 5.000000e-01 : f32
    %83 = vector.broadcast %cst_49 : f32 to vector<8x128xf32>
    %84 = arith.mulf %83, %82 : vector<8x128xf32>
    %cst_50 = arith.constant 5.000000e-01 : f32
    %85 = vector.broadcast %cst_50 : f32 to vector<8x128xf32>
    %86 = arith.addf %84, %85 : vector<8x128xf32>
    %87 = vector.extract_strided_slice %39 {offsets = [0, 256], sizes = [8, 128], strides = [1, 1]} : vector<8x512xf32> to vector<8x128xf32>
    %88 = math.tanh %87 : vector<8x128xf32>
    %89 = vector.extract_strided_slice %39 {offsets = [0, 384], sizes = [8, 128], strides = [1, 1]} : vector<8x512xf32> to vector<8x128xf32>
    %cst_51 = arith.constant 5.000000e-01 : f32
    %90 = vector.broadcast %cst_51 : f32 to vector<8x128xf32>
    %91 = arith.mulf %90, %89 : vector<8x128xf32>
    %92 = math.tanh %91 : vector<8x128xf32>
    %cst_52 = arith.constant 5.000000e-01 : f32
    %93 = vector.broadcast %cst_52 : f32 to vector<8x128xf32>
    %94 = arith.mulf %93, %92 : vector<8x128xf32>
    %cst_53 = arith.constant 5.000000e-01 : f32
    %95 = vector.broadcast %cst_53 : f32 to vector<8x128xf32>
    %96 = arith.addf %94, %95 : vector<8x128xf32>
    %97 = arith.mulf %86, %24 : vector<8x128xf32>
    %98 = arith.mulf %78, %88 : vector<8x128xf32>
    %99 = arith.addf %97, %98 : vector<8x128xf32>
    %100 = math.tanh %99 : vector<8x128xf32>
    %101 = arith.mulf %96, %100 : vector<8x128xf32>
    %102 = arith.index_cast %c0_i32_26 : i32 to index
    %c0_54 = arith.constant 0 : index
    %c0_55 = arith.constant 0 : index
    %103 = vector.load %arg12[%102, %c0_54, %c0_55] : memref<4x8x128xf32, #tpu.memory_space<vmem>>, vector<1x8x128xf32>
    %104 = vector.shape_cast %103 : vector<1x8x128xf32> to vector<8x128xf32>
    %105 = vector.shape_cast %70 : vector<8x128xf32> to vector<1x8x128xf32>
    tpu.vector_store %arg12[%102, %c0_54, %c0_55], %105 {strides = array<i32>} : memref<4x8x128xf32, #tpu.memory_space<vmem>>, vector<1x8x128xf32>,
    %c3_i32_56 = arith.constant 3 : i32
    %106 = arith.subi %c3_i32_56, %c0_i32_26 : i32
    %107 = arith.index_cast %106 : i32 to index
    %c0_57 = arith.constant 0 : index
    %c0_58 = arith.constant 0 : index
    %108 = vector.load %arg13[%107, %c0_57, %c0_58] : memref<4x8x128xf32, #tpu.memory_space<vmem>>, vector<1x8x128xf32>
    %109 = vector.shape_cast %108 : vector<1x8x128xf32> to vector<8x128xf32>
    %110 = vector.shape_cast %101 : vector<8x128xf32> to vector<1x8x128xf32>
    tpu.vector_store %arg13[%107, %c0_57, %c0_58], %110 {strides = array<i32>} : memref<4x8x128xf32, #tpu.memory_space<vmem>>, vector<1x8x128xf32>,
    %c1_i32 = arith.constant 1 : i32
    %c8_i32_59 = arith.constant 8 : i32
    %111 = arith.muli %c1_i32, %c8_i32_59 : i32
    %112 = tpu.assume_multiple %111, 8 : i32
    %c3_i32_60 = arith.constant 3 : i32
    %113 = arith.subi %c3_i32_60, %c1_i32 : i32
    %c8_i32_61 = arith.constant 8 : i32
    %114 = arith.muli %113, %c8_i32_61 : i32
    %115 = tpu.assume_multiple %114, 8 : i32
    %116 = arith.index_cast %112 : i32 to index
    %c0_62 = arith.constant 0 : index
    %117 = vector.load %arg17[%116, %c0_62] : memref<32x512xf32, #tpu.memory_space<vmem>>, vector<8x512xf32>
    %c0_63 = arith.constant 0 : index
    %c0_64 = arith.constant 0 : index
    %118 = vector.load %arg7[%c0_63, %c0_64] : memref<128x512xf32, #tpu.memory_space<vmem>>, vector<128x512xf32>
    %cst_65 = arith.constant dense<0.000000e+00> : vector<8x512xf32>
    %119 = tpu.matmul %70, %118, %cst_65 {dimension_numbers = #tpu.dot_dimension_numbers<[1], [0], [0], [1], [0, 0, 1, 1], [], []>} : vector<8x128xf32>, vector<128x512xf32>, vector<8x512xf32> -> vector<8x512xf32>
    %120 = arith.addf %117, %119 : vector<8x512xf32>
    %121 = arith.index_cast %115 : i32 to index
    %c0_66 = arith.constant 0 : index
    %122 = vector.load %arg18[%121, %c0_66] : memref<32x512xf32, #tpu.memory_space<vmem>>, vector<8x512xf32>
    %c0_67 = arith.constant 0 : index
    %c0_68 = arith.constant 0 : index
    %123 = vector.load %arg8[%c0_67, %c0_68] : memref<128x512xf32, #tpu.memory_space<vmem>>, vector<128x512xf32>
    %cst_69 = arith.constant dense<0.000000e+00> : vector<8x512xf32>
    %124 = tpu.matmul %101, %123, %cst_69 {dimension_numbers = #tpu.dot_dimension_numbers<[1], [0], [0], [1], [0, 0, 1, 1], [], []>} : vector<8x128xf32>, vector<128x512xf32>, vector<8x512xf32> -> vector<8x512xf32>
    %125 = arith.addf %122, %124 : vector<8x512xf32>
    %126 = vector.extract_strided_slice %120 {offsets = [0, 0], sizes = [8, 128], strides = [1, 1]} : vector<8x512xf32> to vector<8x128xf32>
    %cst_70 = arith.constant 5.000000e-01 : f32
    %127 = vector.broadcast %cst_70 : f32 to vector<8x128xf32>
    %128 = arith.mulf %127, %126 : vector<8x128xf32>
    %129 = math.tanh %128 : vector<8x128xf32>
    %cst_71 = arith.constant 5.000000e-01 : f32
    %130 = vector.broadcast %cst_71 : f32 to vector<8x128xf32>
    %131 = arith.mulf %130, %129 : vector<8x128xf32>
    %cst_72 = arith.constant 5.000000e-01 : f32
    %132 = vector.broadcast %cst_72 : f32 to vector<8x128xf32>
    %133 = arith.addf %131, %132 : vector<8x128xf32>
    %134 = vector.extract_strided_slice %120 {offsets = [0, 128], sizes = [8, 128], strides = [1, 1]} : vector<8x512xf32> to vector<8x128xf32>
    %cst_73 = arith.constant 5.000000e-01 : f32
    %135 = vector.broadcast %cst_73 : f32 to vector<8x128xf32>
    %136 = arith.mulf %135, %134 : vector<8x128xf32>
    %137 = math.tanh %136 : vector<8x128xf32>
    %cst_74 = arith.constant 5.000000e-01 : f32
    %138 = vector.broadcast %cst_74 : f32 to vector<8x128xf32>
    %139 = arith.mulf %138, %137 : vector<8x128xf32>
    %cst_75 = arith.constant 5.000000e-01 : f32
    %140 = vector.broadcast %cst_75 : f32 to vector<8x128xf32>
    %141 = arith.addf %139, %140 : vector<8x128xf32>
    %142 = vector.extract_strided_slice %120 {offsets = [0, 256], sizes = [8, 128], strides = [1, 1]} : vector<8x512xf32> to vector<8x128xf32>
    %143 = math.tanh %142 : vector<8x128xf32>
    %144 = vector.extract_strided_slice %120 {offsets = [0, 384], sizes = [8, 128], strides = [1, 1]} : vector<8x512xf32> to vector<8x128xf32>
    %cst_76 = arith.constant 5.000000e-01 : f32
    %145 = vector.broadcast %cst_76 : f32 to vector<8x128xf32>
    %146 = arith.mulf %145, %144 : vector<8x128xf32>
    %147 = math.tanh %146 : vector<8x128xf32>
    %cst_77 = arith.constant 5.000000e-01 : f32
    %148 = vector.broadcast %cst_77 : f32 to vector<8x128xf32>
    %149 = arith.mulf %148, %147 : vector<8x128xf32>
    %cst_78 = arith.constant 5.000000e-01 : f32
    %150 = vector.broadcast %cst_78 : f32 to vector<8x128xf32>
    %151 = arith.addf %149, %150 : vector<8x128xf32>
    %152 = arith.mulf %141, %68 : vector<8x128xf32>
    %153 = arith.mulf %133, %143 : vector<8x128xf32>
    %154 = arith.addf %152, %153 : vector<8x128xf32>
    %155 = math.tanh %154 : vector<8x128xf32>
    %156 = arith.mulf %151, %155 : vector<8x128xf32>
    %157 = vector.extract_strided_slice %125 {offsets = [0, 0], sizes = [8, 128], strides = [1, 1]} : vector<8x512xf32> to vector<8x128xf32>
    %cst_79 = arith.constant 5.000000e-01 : f32
    %158 = vector.broadcast %cst_79 : f32 to vector<8x128xf32>
    %159 = arith.mulf %158, %157 : vector<8x128xf32>
    %160 = math.tanh %159 : vector<8x128xf32>
    %cst_80 = arith.constant 5.000000e-01 : f32
    %161 = vector.broadcast %cst_80 : f32 to vector<8x128xf32>
    %162 = arith.mulf %161, %160 : vector<8x128xf32>
    %cst_81 = arith.constant 5.000000e-01 : f32
    %163 = vector.broadcast %cst_81 : f32 to vector<8x128xf32>
    %164 = arith.addf %162, %163 : vector<8x128xf32>
    %165 = vector.extract_strided_slice %125 {offsets = [0, 128], sizes = [8, 128], strides = [1, 1]} : vector<8x512xf32> to vector<8x128xf32>
    %cst_82 = arith.constant 5.000000e-01 : f32
    %166 = vector.broadcast %cst_82 : f32 to vector<8x128xf32>
    %167 = arith.mulf %166, %165 : vector<8x128xf32>
    %168 = math.tanh %167 : vector<8x128xf32>
    %cst_83 = arith.constant 5.000000e-01 : f32
    %169 = vector.broadcast %cst_83 : f32 to vector<8x128xf32>
    %170 = arith.mulf %169, %168 : vector<8x128xf32>
    %cst_84 = arith.constant 5.000000e-01 : f32
    %171 = vector.broadcast %cst_84 : f32 to vector<8x128xf32>
    %172 = arith.addf %170, %171 : vector<8x128xf32>
    %173 = vector.extract_strided_slice %125 {offsets = [0, 256], sizes = [8, 128], strides = [1, 1]} : vector<8x512xf32> to vector<8x128xf32>
    %174 = math.tanh %173 : vector<8x128xf32>
    %175 = vector.extract_strided_slice %125 {offsets = [0, 384], sizes = [8, 128], strides = [1, 1]} : vector<8x512xf32> to vector<8x128xf32>
    %cst_85 = arith.constant 5.000000e-01 : f32
    %176 = vector.broadcast %cst_85 : f32 to vector<8x128xf32>
    %177 = arith.mulf %176, %175 : vector<8x128xf32>
    %178 = math.tanh %177 : vector<8x128xf32>
    %cst_86 = arith.constant 5.000000e-01 : f32
    %179 = vector.broadcast %cst_86 : f32 to vector<8x128xf32>
    %180 = arith.mulf %179, %178 : vector<8x128xf32>
    %cst_87 = arith.constant 5.000000e-01 : f32
    %181 = vector.broadcast %cst_87 : f32 to vector<8x128xf32>
    %182 = arith.addf %180, %181 : vector<8x128xf32>
    %183 = arith.mulf %172, %99 : vector<8x128xf32>
    %184 = arith.mulf %164, %174 : vector<8x128xf32>
    %185 = arith.addf %183, %184 : vector<8x128xf32>
    %186 = math.tanh %185 : vector<8x128xf32>
    %187 = arith.mulf %182, %186 : vector<8x128xf32>
    %188 = arith.index_cast %c1_i32 : i32 to index
    %c0_88 = arith.constant 0 : index
    %c0_89 = arith.constant 0 : index
    %189 = vector.load %arg12[%188, %c0_88, %c0_89] : memref<4x8x128xf32, #tpu.memory_space<vmem>>, vector<1x8x128xf32>
    %190 = vector.shape_cast %189 : vector<1x8x128xf32> to vector<8x128xf32>
    %191 = vector.shape_cast %156 : vector<8x128xf32> to vector<1x8x128xf32>
    tpu.vector_store %arg12[%188, %c0_88, %c0_89], %191 {strides = array<i32>} : memref<4x8x128xf32, #tpu.memory_space<vmem>>, vector<1x8x128xf32>,
    %c3_i32_90 = arith.constant 3 : i32
    %192 = arith.subi %c3_i32_90, %c1_i32 : i32
    %193 = arith.index_cast %192 : i32 to index
    %c0_91 = arith.constant 0 : index
    %c0_92 = arith.constant 0 : index
    %194 = vector.load %arg13[%193, %c0_91, %c0_92] : memref<4x8x128xf32, #tpu.memory_space<vmem>>, vector<1x8x128xf32>
    %195 = vector.shape_cast %194 : vector<1x8x128xf32> to vector<8x128xf32>
    %196 = vector.shape_cast %187 : vector<8x128xf32> to vector<1x8x128xf32>
    tpu.vector_store %arg13[%193, %c0_91, %c0_92], %196 {strides = array<i32>} : memref<4x8x128xf32, #tpu.memory_space<vmem>>, vector<1x8x128xf32>,
    %c2_i32 = arith.constant 2 : i32
    %c8_i32_93 = arith.constant 8 : i32
    %197 = arith.muli %c2_i32, %c8_i32_93 : i32
    %198 = tpu.assume_multiple %197, 8 : i32
    %c3_i32_94 = arith.constant 3 : i32
    %199 = arith.subi %c3_i32_94, %c2_i32 : i32
    %c8_i32_95 = arith.constant 8 : i32
    %200 = arith.muli %199, %c8_i32_95 : i32
    %201 = tpu.assume_multiple %200, 8 : i32
    %202 = arith.index_cast %198 : i32 to index
    %c0_96 = arith.constant 0 : index
    %203 = vector.load %arg17[%202, %c0_96] : memref<32x512xf32, #tpu.memory_space<vmem>>, vector<8x512xf32>
    %c0_97 = arith.constant 0 : index
    %c0_98 = arith.constant 0 : index
    %204 = vector.load %arg7[%c0_97, %c0_98] : memref<128x512xf32, #tpu.memory_space<vmem>>, vector<128x512xf32>
    %cst_99 = arith.constant dense<0.000000e+00> : vector<8x512xf32>
    %205 = tpu.matmul %156, %204, %cst_99 {dimension_numbers = #tpu.dot_dimension_numbers<[1], [0], [0], [1], [0, 0, 1, 1], [], []>} : vector<8x128xf32>, vector<128x512xf32>, vector<8x512xf32> -> vector<8x512xf32>
    %206 = arith.addf %203, %205 : vector<8x512xf32>
    %207 = arith.index_cast %201 : i32 to index
    %c0_100 = arith.constant 0 : index
    %208 = vector.load %arg18[%207, %c0_100] : memref<32x512xf32, #tpu.memory_space<vmem>>, vector<8x512xf32>
    %c0_101 = arith.constant 0 : index
    %c0_102 = arith.constant 0 : index
    %209 = vector.load %arg8[%c0_101, %c0_102] : memref<128x512xf32, #tpu.memory_space<vmem>>, vector<128x512xf32>
    %cst_103 = arith.constant dense<0.000000e+00> : vector<8x512xf32>
    %210 = tpu.matmul %187, %209, %cst_103 {dimension_numbers = #tpu.dot_dimension_numbers<[1], [0], [0], [1], [0, 0, 1, 1], [], []>} : vector<8x128xf32>, vector<128x512xf32>, vector<8x512xf32> -> vector<8x512xf32>
    %211 = arith.addf %208, %210 : vector<8x512xf32>
    %212 = vector.extract_strided_slice %206 {offsets = [0, 0], sizes = [8, 128], strides = [1, 1]} : vector<8x512xf32> to vector<8x128xf32>
    %cst_104 = arith.constant 5.000000e-01 : f32
    %213 = vector.broadcast %cst_104 : f32 to vector<8x128xf32>
    %214 = arith.mulf %213, %212 : vector<8x128xf32>
    %215 = math.tanh %214 : vector<8x128xf32>
    %cst_105 = arith.constant 5.000000e-01 : f32
    %216 = vector.broadcast %cst_105 : f32 to vector<8x128xf32>
    %217 = arith.mulf %216, %215 : vector<8x128xf32>
    %cst_106 = arith.constant 5.000000e-01 : f32
    %218 = vector.broadcast %cst_106 : f32 to vector<8x128xf32>
    %219 = arith.addf %217, %218 : vector<8x128xf32>
    %220 = vector.extract_strided_slice %206 {offsets = [0, 128], sizes = [8, 128], strides = [1, 1]} : vector<8x512xf32> to vector<8x128xf32>
    %cst_107 = arith.constant 5.000000e-01 : f32
    %221 = vector.broadcast %cst_107 : f32 to vector<8x128xf32>
    %222 = arith.mulf %221, %220 : vector<8x128xf32>
    %223 = math.tanh %222 : vector<8x128xf32>
    %cst_108 = arith.constant 5.000000e-01 : f32
    %224 = vector.broadcast %cst_108 : f32 to vector<8x128xf32>
    %225 = arith.mulf %224, %223 : vector<8x128xf32>
    %cst_109 = arith.constant 5.000000e-01 : f32
    %226 = vector.broadcast %cst_109 : f32 to vector<8x128xf32>
    %227 = arith.addf %225, %226 : vector<8x128xf32>
    %228 = vector.extract_strided_slice %206 {offsets = [0, 256], sizes = [8, 128], strides = [1, 1]} : vector<8x512xf32> to vector<8x128xf32>
    %229 = math.tanh %228 : vector<8x128xf32>
    %230 = vector.extract_strided_slice %206 {offsets = [0, 384], sizes = [8, 128], strides = [1, 1]} : vector<8x512xf32> to vector<8x128xf32>
    %cst_110 = arith.constant 5.000000e-01 : f32
    %231 = vector.broadcast %cst_110 : f32 to vector<8x128xf32>
    %232 = arith.mulf %231, %230 : vector<8x128xf32>
    %233 = math.tanh %232 : vector<8x128xf32>
    %cst_111 = arith.constant 5.000000e-01 : f32
    %234 = vector.broadcast %cst_111 : f32 to vector<8x128xf32>
    %235 = arith.mulf %234, %233 : vector<8x128xf32>
    %cst_112 = arith.constant 5.000000e-01 : f32
    %236 = vector.broadcast %cst_112 : f32 to vector<8x128xf32>
    %237 = arith.addf %235, %236 : vector<8x128xf32>
    %238 = arith.mulf %227, %154 : vector<8x128xf32>
    %239 = arith.mulf %219, %229 : vector<8x128xf32>
    %240 = arith.addf %238, %239 : vector<8x128xf32>
    %241 = math.tanh %240 : vector<8x128xf32>
    %242 = arith.mulf %237, %241 : vector<8x128xf32>
    %243 = vector.extract_strided_slice %211 {offsets = [0, 0], sizes = [8, 128], strides = [1, 1]} : vector<8x512xf32> to vector<8x128xf32>
    %cst_113 = arith.constant 5.000000e-01 : f32
    %244 = vector.broadcast %cst_113 : f32 to vector<8x128xf32>
    %245 = arith.mulf %244, %243 : vector<8x128xf32>
    %246 = math.tanh %245 : vector<8x128xf32>
    %cst_114 = arith.constant 5.000000e-01 : f32
    %247 = vector.broadcast %cst_114 : f32 to vector<8x128xf32>
    %248 = arith.mulf %247, %246 : vector<8x128xf32>
    %cst_115 = arith.constant 5.000000e-01 : f32
    %249 = vector.broadcast %cst_115 : f32 to vector<8x128xf32>
    %250 = arith.addf %248, %249 : vector<8x128xf32>
    %251 = vector.extract_strided_slice %211 {offsets = [0, 128], sizes = [8, 128], strides = [1, 1]} : vector<8x512xf32> to vector<8x128xf32>
    %cst_116 = arith.constant 5.000000e-01 : f32
    %252 = vector.broadcast %cst_116 : f32 to vector<8x128xf32>
    %253 = arith.mulf %252, %251 : vector<8x128xf32>
    %254 = math.tanh %253 : vector<8x128xf32>
    %cst_117 = arith.constant 5.000000e-01 : f32
    %255 = vector.broadcast %cst_117 : f32 to vector<8x128xf32>
    %256 = arith.mulf %255, %254 : vector<8x128xf32>
    %cst_118 = arith.constant 5.000000e-01 : f32
    %257 = vector.broadcast %cst_118 : f32 to vector<8x128xf32>
    %258 = arith.addf %256, %257 : vector<8x128xf32>
    %259 = vector.extract_strided_slice %211 {offsets = [0, 256], sizes = [8, 128], strides = [1, 1]} : vector<8x512xf32> to vector<8x128xf32>
    %260 = math.tanh %259 : vector<8x128xf32>
    %261 = vector.extract_strided_slice %211 {offsets = [0, 384], sizes = [8, 128], strides = [1, 1]} : vector<8x512xf32> to vector<8x128xf32>
    %cst_119 = arith.constant 5.000000e-01 : f32
    %262 = vector.broadcast %cst_119 : f32 to vector<8x128xf32>
    %263 = arith.mulf %262, %261 : vector<8x128xf32>
    %264 = math.tanh %263 : vector<8x128xf32>
    %cst_120 = arith.constant 5.000000e-01 : f32
    %265 = vector.broadcast %cst_120 : f32 to vector<8x128xf32>
    %266 = arith.mulf %265, %264 : vector<8x128xf32>
    %cst_121 = arith.constant 5.000000e-01 : f32
    %267 = vector.broadcast %cst_121 : f32 to vector<8x128xf32>
    %268 = arith.addf %266, %267 : vector<8x128xf32>
    %269 = arith.mulf %258, %185 : vector<8x128xf32>
    %270 = arith.mulf %250, %260 : vector<8x128xf32>
    %271 = arith.addf %269, %270 : vector<8x128xf32>
    %272 = math.tanh %271 : vector<8x128xf32>
    %273 = arith.mulf %268, %272 : vector<8x128xf32>
    %274 = arith.index_cast %c2_i32 : i32 to index
    %c0_122 = arith.constant 0 : index
    %c0_123 = arith.constant 0 : index
    %275 = vector.load %arg12[%274, %c0_122, %c0_123] : memref<4x8x128xf32, #tpu.memory_space<vmem>>, vector<1x8x128xf32>
    %276 = vector.shape_cast %275 : vector<1x8x128xf32> to vector<8x128xf32>
    %277 = vector.shape_cast %242 : vector<8x128xf32> to vector<1x8x128xf32>
    tpu.vector_store %arg12[%274, %c0_122, %c0_123], %277 {strides = array<i32>} : memref<4x8x128xf32, #tpu.memory_space<vmem>>, vector<1x8x128xf32>,
    %c3_i32_124 = arith.constant 3 : i32
    %278 = arith.subi %c3_i32_124, %c2_i32 : i32
    %279 = arith.index_cast %278 : i32 to index
    %c0_125 = arith.constant 0 : index
    %c0_126 = arith.constant 0 : index
    %280 = vector.load %arg13[%279, %c0_125, %c0_126] : memref<4x8x128xf32, #tpu.memory_space<vmem>>, vector<1x8x128xf32>
    %281 = vector.shape_cast %280 : vector<1x8x128xf32> to vector<8x128xf32>
    %282 = vector.shape_cast %273 : vector<8x128xf32> to vector<1x8x128xf32>
    tpu.vector_store %arg13[%279, %c0_125, %c0_126], %282 {strides = array<i32>} : memref<4x8x128xf32, #tpu.memory_space<vmem>>, vector<1x8x128xf32>,
    %c3_i32_127 = arith.constant 3 : i32
    %c8_i32_128 = arith.constant 8 : i32
    %283 = arith.muli %c3_i32_127, %c8_i32_128 : i32
    %284 = tpu.assume_multiple %283, 8 : i32
    %c3_i32_129 = arith.constant 3 : i32
    %285 = arith.subi %c3_i32_129, %c3_i32_127 : i32
    %c8_i32_130 = arith.constant 8 : i32
    %286 = arith.muli %285, %c8_i32_130 : i32
    %287 = tpu.assume_multiple %286, 8 : i32
    %288 = arith.index_cast %284 : i32 to index
    %c0_131 = arith.constant 0 : index
    %289 = vector.load %arg17[%288, %c0_131] : memref<32x512xf32, #tpu.memory_space<vmem>>, vector<8x512xf32>
    %c0_132 = arith.constant 0 : index
    %c0_133 = arith.constant 0 : index
    %290 = vector.load %arg7[%c0_132, %c0_133] : memref<128x512xf32, #tpu.memory_space<vmem>>, vector<128x512xf32>
    %cst_134 = arith.constant dense<0.000000e+00> : vector<8x512xf32>
    %291 = tpu.matmul %242, %290, %cst_134 {dimension_numbers = #tpu.dot_dimension_numbers<[1], [0], [0], [1], [0, 0, 1, 1], [], []>} : vector<8x128xf32>, vector<128x512xf32>, vector<8x512xf32> -> vector<8x512xf32>
    %292 = arith.addf %289, %291 : vector<8x512xf32>
    %293 = arith.index_cast %287 : i32 to index
    %c0_135 = arith.constant 0 : index
    %294 = vector.load %arg18[%293, %c0_135] : memref<32x512xf32, #tpu.memory_space<vmem>>, vector<8x512xf32>
    %c0_136 = arith.constant 0 : index
    %c0_137 = arith.constant 0 : index
    %295 = vector.load %arg8[%c0_136, %c0_137] : memref<128x512xf32, #tpu.memory_space<vmem>>, vector<128x512xf32>
    %cst_138 = arith.constant dense<0.000000e+00> : vector<8x512xf32>
    %296 = tpu.matmul %273, %295, %cst_138 {dimension_numbers = #tpu.dot_dimension_numbers<[1], [0], [0], [1], [0, 0, 1, 1], [], []>} : vector<8x128xf32>, vector<128x512xf32>, vector<8x512xf32> -> vector<8x512xf32>
    %297 = arith.addf %294, %296 : vector<8x512xf32>
    %298 = vector.extract_strided_slice %292 {offsets = [0, 0], sizes = [8, 128], strides = [1, 1]} : vector<8x512xf32> to vector<8x128xf32>
    %cst_139 = arith.constant 5.000000e-01 : f32
    %299 = vector.broadcast %cst_139 : f32 to vector<8x128xf32>
    %300 = arith.mulf %299, %298 : vector<8x128xf32>
    %301 = math.tanh %300 : vector<8x128xf32>
    %cst_140 = arith.constant 5.000000e-01 : f32
    %302 = vector.broadcast %cst_140 : f32 to vector<8x128xf32>
    %303 = arith.mulf %302, %301 : vector<8x128xf32>
    %cst_141 = arith.constant 5.000000e-01 : f32
    %304 = vector.broadcast %cst_141 : f32 to vector<8x128xf32>
    %305 = arith.addf %303, %304 : vector<8x128xf32>
    %306 = vector.extract_strided_slice %292 {offsets = [0, 128], sizes = [8, 128], strides = [1, 1]} : vector<8x512xf32> to vector<8x128xf32>
    %cst_142 = arith.constant 5.000000e-01 : f32
    %307 = vector.broadcast %cst_142 : f32 to vector<8x128xf32>
    %308 = arith.mulf %307, %306 : vector<8x128xf32>
    %309 = math.tanh %308 : vector<8x128xf32>
    %cst_143 = arith.constant 5.000000e-01 : f32
    %310 = vector.broadcast %cst_143 : f32 to vector<8x128xf32>
    %311 = arith.mulf %310, %309 : vector<8x128xf32>
    %cst_144 = arith.constant 5.000000e-01 : f32
    %312 = vector.broadcast %cst_144 : f32 to vector<8x128xf32>
    %313 = arith.addf %311, %312 : vector<8x128xf32>
    %314 = vector.extract_strided_slice %292 {offsets = [0, 256], sizes = [8, 128], strides = [1, 1]} : vector<8x512xf32> to vector<8x128xf32>
    %315 = math.tanh %314 : vector<8x128xf32>
    %316 = vector.extract_strided_slice %292 {offsets = [0, 384], sizes = [8, 128], strides = [1, 1]} : vector<8x512xf32> to vector<8x128xf32>
    %cst_145 = arith.constant 5.000000e-01 : f32
    %317 = vector.broadcast %cst_145 : f32 to vector<8x128xf32>
    %318 = arith.mulf %317, %316 : vector<8x128xf32>
    %319 = math.tanh %318 : vector<8x128xf32>
    %cst_146 = arith.constant 5.000000e-01 : f32
    %320 = vector.broadcast %cst_146 : f32 to vector<8x128xf32>
    %321 = arith.mulf %320, %319 : vector<8x128xf32>
    %cst_147 = arith.constant 5.000000e-01 : f32
    %322 = vector.broadcast %cst_147 : f32 to vector<8x128xf32>
    %323 = arith.addf %321, %322 : vector<8x128xf32>
    %324 = arith.mulf %313, %240 : vector<8x128xf32>
    %325 = arith.mulf %305, %315 : vector<8x128xf32>
    %326 = arith.addf %324, %325 : vector<8x128xf32>
    %327 = math.tanh %326 : vector<8x128xf32>
    %328 = arith.mulf %323, %327 : vector<8x128xf32>
    %329 = vector.extract_strided_slice %297 {offsets = [0, 0], sizes = [8, 128], strides = [1, 1]} : vector<8x512xf32> to vector<8x128xf32>
    %cst_148 = arith.constant 5.000000e-01 : f32
    %330 = vector.broadcast %cst_148 : f32 to vector<8x128xf32>
    %331 = arith.mulf %330, %329 : vector<8x128xf32>
    %332 = math.tanh %331 : vector<8x128xf32>
    %cst_149 = arith.constant 5.000000e-01 : f32
    %333 = vector.broadcast %cst_149 : f32 to vector<8x128xf32>
    %334 = arith.mulf %333, %332 : vector<8x128xf32>
    %cst_150 = arith.constant 5.000000e-01 : f32
    %335 = vector.broadcast %cst_150 : f32 to vector<8x128xf32>
    %336 = arith.addf %334, %335 : vector<8x128xf32>
    %337 = vector.extract_strided_slice %297 {offsets = [0, 128], sizes = [8, 128], strides = [1, 1]} : vector<8x512xf32> to vector<8x128xf32>
    %cst_151 = arith.constant 5.000000e-01 : f32
    %338 = vector.broadcast %cst_151 : f32 to vector<8x128xf32>
    %339 = arith.mulf %338, %337 : vector<8x128xf32>
    %340 = math.tanh %339 : vector<8x128xf32>
    %cst_152 = arith.constant 5.000000e-01 : f32
    %341 = vector.broadcast %cst_152 : f32 to vector<8x128xf32>
    %342 = arith.mulf %341, %340 : vector<8x128xf32>
    %cst_153 = arith.constant 5.000000e-01 : f32
    %343 = vector.broadcast %cst_153 : f32 to vector<8x128xf32>
    %344 = arith.addf %342, %343 : vector<8x128xf32>
    %345 = vector.extract_strided_slice %297 {offsets = [0, 256], sizes = [8, 128], strides = [1, 1]} : vector<8x512xf32> to vector<8x128xf32>
    %346 = math.tanh %345 : vector<8x128xf32>
    %347 = vector.extract_strided_slice %297 {offsets = [0, 384], sizes = [8, 128], strides = [1, 1]} : vector<8x512xf32> to vector<8x128xf32>
    %cst_154 = arith.constant 5.000000e-01 : f32
    %348 = vector.broadcast %cst_154 : f32 to vector<8x128xf32>
    %349 = arith.mulf %348, %347 : vector<8x128xf32>
    %350 = math.tanh %349 : vector<8x128xf32>
    %cst_155 = arith.constant 5.000000e-01 : f32
    %351 = vector.broadcast %cst_155 : f32 to vector<8x128xf32>
    %352 = arith.mulf %351, %350 : vector<8x128xf32>
    %cst_156 = arith.constant 5.000000e-01 : f32
    %353 = vector.broadcast %cst_156 : f32 to vector<8x128xf32>
    %354 = arith.addf %352, %353 : vector<8x128xf32>
    %355 = arith.mulf %344, %271 : vector<8x128xf32>
    %356 = arith.mulf %336, %346 : vector<8x128xf32>
    %357 = arith.addf %355, %356 : vector<8x128xf32>
    %358 = math.tanh %357 : vector<8x128xf32>
    %359 = arith.mulf %354, %358 : vector<8x128xf32>
    %360 = arith.index_cast %c3_i32_127 : i32 to index
    %c0_157 = arith.constant 0 : index
    %c0_158 = arith.constant 0 : index
    %361 = vector.load %arg12[%360, %c0_157, %c0_158] : memref<4x8x128xf32, #tpu.memory_space<vmem>>, vector<1x8x128xf32>
    %362 = vector.shape_cast %361 : vector<1x8x128xf32> to vector<8x128xf32>
    %363 = vector.shape_cast %328 : vector<8x128xf32> to vector<1x8x128xf32>
    tpu.vector_store %arg12[%360, %c0_157, %c0_158], %363 {strides = array<i32>} : memref<4x8x128xf32, #tpu.memory_space<vmem>>, vector<1x8x128xf32>,
    %c3_i32_159 = arith.constant 3 : i32
    %364 = arith.subi %c3_i32_159, %c3_i32_127 : i32
    %365 = arith.index_cast %364 : i32 to index
    %c0_160 = arith.constant 0 : index
    %c0_161 = arith.constant 0 : index
    %366 = vector.load %arg13[%365, %c0_160, %c0_161] : memref<4x8x128xf32, #tpu.memory_space<vmem>>, vector<1x8x128xf32>
    %367 = vector.shape_cast %366 : vector<1x8x128xf32> to vector<8x128xf32>
    %368 = vector.shape_cast %359 : vector<8x128xf32> to vector<1x8x128xf32>
    tpu.vector_store %arg13[%365, %c0_160, %c0_161], %368 {strides = array<i32>} : memref<4x8x128xf32, #tpu.memory_space<vmem>>, vector<1x8x128xf32>,
    %c4_i32 = arith.constant 4 : i32
    %c0_162 = arith.constant 0 : index
    %c0_163 = arith.constant 0 : index
    %c0_164 = arith.constant 0 : index
    %369 = vector.load %arg16[%c0_162, %c0_163, %c0_164] : memref<4x8x128xf32, #tpu.memory_space<vmem>>, vector<1x8x128xf32>
    %370 = vector.shape_cast %369 : vector<1x8x128xf32> to vector<8x128xf32>
    %371 = vector.shape_cast %328 : vector<8x128xf32> to vector<1x8x128xf32>
    tpu.vector_store %arg16[%c0_162, %c0_163, %c0_164], %371 {strides = array<i32>} : memref<4x8x128xf32, #tpu.memory_space<vmem>>, vector<1x8x128xf32>,
    %c1_165 = arith.constant 1 : index
    %c0_166 = arith.constant 0 : index
    %c0_167 = arith.constant 0 : index
    %372 = vector.load %arg16[%c1_165, %c0_166, %c0_167] : memref<4x8x128xf32, #tpu.memory_space<vmem>>, vector<1x8x128xf32>
    %373 = vector.shape_cast %372 : vector<1x8x128xf32> to vector<8x128xf32>
    %374 = vector.shape_cast %326 : vector<8x128xf32> to vector<1x8x128xf32>
    tpu.vector_store %arg16[%c1_165, %c0_166, %c0_167], %374 {strides = array<i32>} : memref<4x8x128xf32, #tpu.memory_space<vmem>>, vector<1x8x128xf32>,
    %c2_168 = arith.constant 2 : index
    %c0_169 = arith.constant 0 : index
    %c0_170 = arith.constant 0 : index
    %375 = vector.load %arg16[%c2_168, %c0_169, %c0_170] : memref<4x8x128xf32, #tpu.memory_space<vmem>>, vector<1x8x128xf32>
    %376 = vector.shape_cast %375 : vector<1x8x128xf32> to vector<8x128xf32>
    %377 = vector.shape_cast %359 : vector<8x128xf32> to vector<1x8x128xf32>
    tpu.vector_store %arg16[%c2_168, %c0_169, %c0_170], %377 {strides = array<i32>} : memref<4x8x128xf32, #tpu.memory_space<vmem>>, vector<1x8x128xf32>,
    %c3_171 = arith.constant 3 : index
    %c0_172 = arith.constant 0 : index
    %c0_173 = arith.constant 0 : index
    %378 = vector.load %arg16[%c3_171, %c0_172, %c0_173] : memref<4x8x128xf32, #tpu.memory_space<vmem>>, vector<1x8x128xf32>
    %379 = vector.shape_cast %378 : vector<1x8x128xf32> to vector<8x128xf32>
    %380 = vector.shape_cast %357 : vector<8x128xf32> to vector<1x8x128xf32>
    tpu.vector_store %arg16[%c3_171, %c0_172, %c0_173], %380 {strides = array<i32>} : memref<4x8x128xf32, #tpu.memory_space<vmem>>, vector<1x8x128xf32>,
    %c1_i32_174 = arith.constant 1 : i32
    %381 = arith.cmpi eq, %arg0, %c1_i32_174 : i32
    %382 = arith.extui %381 : i1 to i32
    %c0_i32_175 = arith.constant 0 : i32
    %383 = arith.cmpi ne, %382, %c0_i32_175 : i32
    scf.if %383 {
      %c0_176 = arith.constant 0 : index
      %c0_177 = arith.constant 0 : index
      %384 = vector.load %arg9[%c0_176, %c0_177] : memref<128x128xf32, #tpu.memory_space<vmem>>, vector<128x128xf32>
      %cst_178 = arith.constant dense<0.000000e+00> : vector<8x128xf32>
      %385 = tpu.matmul %328, %384, %cst_178 {dimension_numbers = #tpu.dot_dimension_numbers<[1], [0], [0], [1], [0, 0, 1, 1], [], []>} : vector<8x128xf32>, vector<128x128xf32>, vector<8x128xf32> -> vector<8x128xf32>
      %c0_179 = arith.constant 0 : index
      %c0_180 = arith.constant 0 : index
      %386 = vector.load %arg10[%c0_179, %c0_180] : memref<128x128xf32, #tpu.memory_space<vmem>>, vector<128x128xf32>
      %cst_181 = arith.constant dense<0.000000e+00> : vector<8x128xf32>
      %387 = tpu.matmul %359, %386, %cst_181 {dimension_numbers = #tpu.dot_dimension_numbers<[1], [0], [0], [1], [0, 0, 1, 1], [], []>} : vector<8x128xf32>, vector<128x128xf32>, vector<8x128xf32> -> vector<8x128xf32>
      %388 = arith.addf %385, %387 : vector<8x128xf32>
      %c0_182 = arith.constant 0 : index
      %c0_183 = arith.constant 0 : index
      %389 = vector.load %arg11[%c0_182, %c0_183] : memref<1x128xf32, #tpu.memory_space<vmem>>, vector<1x128xf32>
      %390 = vector.broadcast %389 : vector<1x128xf32> to vector<8x128xf32>
      %391 = arith.addf %388, %390 : vector<8x128xf32>
      %392 = math.tanh %391 : vector<8x128xf32>
      %c0_184 = arith.constant 0 : index
      %c0_185 = arith.constant 0 : index
      %393 = vector.load %arg14[%c0_184, %c0_185] : memref<8x128xf32, #tpu.memory_space<vmem>>, vector<8x128xf32>
      tpu.vector_store %arg14[%c0_184, %c0_185], %392 {strides = array<i32>} : memref<8x128xf32, #tpu.memory_space<vmem>>, vector<8x128xf32>,
      %c0_186 = arith.constant 0 : index
      %c0_187 = arith.constant 0 : index
      %394 = vector.load %arg9[%c0_186, %c0_187] : memref<128x128xf32, #tpu.memory_space<vmem>>, vector<128x128xf32>
      %cst_188 = arith.constant dense<0.000000e+00> : vector<8x128xf32>
      %395 = tpu.matmul %326, %394, %cst_188 {dimension_numbers = #tpu.dot_dimension_numbers<[1], [0], [0], [1], [0, 0, 1, 1], [], []>} : vector<8x128xf32>, vector<128x128xf32>, vector<8x128xf32> -> vector<8x128xf32>
      %c0_189 = arith.constant 0 : index
      %c0_190 = arith.constant 0 : index
      %396 = vector.load %arg10[%c0_189, %c0_190] : memref<128x128xf32, #tpu.memory_space<vmem>>, vector<128x128xf32>
      %cst_191 = arith.constant dense<0.000000e+00> : vector<8x128xf32>
      %397 = tpu.matmul %357, %396, %cst_191 {dimension_numbers = #tpu.dot_dimension_numbers<[1], [0], [0], [1], [0, 0, 1, 1], [], []>} : vector<8x128xf32>, vector<128x128xf32>, vector<8x128xf32> -> vector<8x128xf32>
      %398 = arith.addf %395, %397 : vector<8x128xf32>
      %c0_192 = arith.constant 0 : index
      %c0_193 = arith.constant 0 : index
      %399 = vector.load %arg11[%c0_192, %c0_193] : memref<1x128xf32, #tpu.memory_space<vmem>>, vector<1x128xf32>
      %400 = vector.broadcast %399 : vector<1x128xf32> to vector<8x128xf32>
      %401 = arith.addf %398, %400 : vector<8x128xf32>
      %402 = math.tanh %401 : vector<8x128xf32>
      %c0_194 = arith.constant 0 : index
      %c0_195 = arith.constant 0 : index
      %403 = vector.load %arg15[%c0_194, %c0_195] : memref<8x128xf32, #tpu.memory_space<vmem>>, vector<8x128xf32>
      tpu.vector_store %arg15[%c0_194, %c0_195], %402 {strides = array<i32>} : memref<8x128xf32, #tpu.memory_space<vmem>>, vector<8x128xf32>,
    } else {
    }
    return
  }
  func.func @transform_0(%arg0: i32) -> (i32, i32) {
    %c0_i32 = arith.constant 0 : i32
    %c0_i32_0 = arith.constant 0 : i32
    return %arg0, %c0_i32 : i32, i32
  }
  func.func @transform_1(%arg0: i32) -> (i32, i32) {
    %c1_i32 = arith.constant 1 : i32
    %0 = arith.subi %c1_i32, %arg0 : i32
    %c0_i32 = arith.constant 0 : i32
    %c0_i32_0 = arith.constant 0 : i32
    return %0, %c0_i32 : i32, i32
  }
  func.func @transform_2(%arg0: i32) -> (i32, i32) {
    %c0_i32 = arith.constant 0 : i32
    %c0_i32_0 = arith.constant 0 : i32
    %c0_i32_1 = arith.constant 0 : i32
    return %c0_i32, %c0_i32_0 : i32, i32
  }
  func.func @transform_3(%arg0: i32) -> (i32, i32) {
    %c0_i32 = arith.constant 0 : i32
    %c0_i32_0 = arith.constant 0 : i32
    %c0_i32_1 = arith.constant 0 : i32
    return %c0_i32, %c0_i32_0 : i32, i32
  }
  func.func @transform_4(%arg0: i32) -> (i32, i32) {
    %c0_i32 = arith.constant 0 : i32
    %c0_i32_0 = arith.constant 0 : i32
    %c0_i32_1 = arith.constant 0 : i32
    return %c0_i32, %c0_i32_0 : i32, i32
  }
  func.func @transform_5(%arg0: i32) -> (i32, i32) {
    %c0_i32 = arith.constant 0 : i32
    %c0_i32_0 = arith.constant 0 : i32
    %c0_i32_1 = arith.constant 0 : i32
    return %c0_i32, %c0_i32_0 : i32, i32
  }
  func.func @transform_6(%arg0: i32) -> (i32, i32) {
    %c0_i32 = arith.constant 0 : i32
    %c0_i32_0 = arith.constant 0 : i32
    %c0_i32_1 = arith.constant 0 : i32
    return %c0_i32, %c0_i32_0 : i32, i32
  }
  func.func @transform_7(%arg0: i32) -> (i32, i32) {
    %c0_i32 = arith.constant 0 : i32
    %c0_i32_0 = arith.constant 0 : i32
    %c0_i32_1 = arith.constant 0 : i32
    return %c0_i32, %c0_i32_0 : i32, i32
  }
  func.func @transform_8(%arg0: i32) -> (i32, i32) {
    %c0_i32 = arith.constant 0 : i32
    %c0_i32_0 = arith.constant 0 : i32
    %c0_i32_1 = arith.constant 0 : i32
    return %c0_i32, %c0_i32_0 : i32, i32
  }
  func.func @transform_9(%arg0: i32) -> (i32, i32) {
    %c0_i32 = arith.constant 0 : i32
    %c0_i32_0 = arith.constant 0 : i32
    %c0_i32_1 = arith.constant 0 : i32
    return %c0_i32, %c0_i32_0 : i32, i32
  }
  func.func @transform_10(%arg0: i32) -> (i32, i32) {
    %c0_i32 = arith.constant 0 : i32
    %c0_i32_0 = arith.constant 0 : i32
    %c0_i32_1 = arith.constant 0 : i32
    return %c0_i32, %c0_i32_0 : i32, i32
  }
  func.func @transform_11(%arg0: i32) -> (i32, i32, i32) {
    %c0_i32 = arith.constant 0 : i32
    %c0_i32_0 = arith.constant 0 : i32
    %c0_i32_1 = arith.constant 0 : i32
    return %arg0, %c0_i32, %c0_i32_0 : i32, i32, i32
  }
  func.func @transform_12(%arg0: i32) -> (i32, i32, i32) {
    %c1_i32 = arith.constant 1 : i32
    %0 = arith.subi %c1_i32, %arg0 : i32
    %c0_i32 = arith.constant 0 : i32
    %c0_i32_0 = arith.constant 0 : i32
    %c0_i32_1 = arith.constant 0 : i32
    return %0, %c0_i32, %c0_i32_0 : i32, i32, i32
  }
  func.func @transform_13(%arg0: i32) -> (i32, i32) {
    %c0_i32 = arith.constant 0 : i32
    %c0_i32_0 = arith.constant 0 : i32
    %c0_i32_1 = arith.constant 0 : i32
    return %c0_i32, %c0_i32_0 : i32, i32
  }
  func.func @transform_14(%arg0: i32) -> (i32, i32) {
    %c0_i32 = arith.constant 0 : i32
    %c0_i32_0 = arith.constant 0 : i32
    %c0_i32_1 = arith.constant 0 : i32
    return %c0_i32, %c0_i32_0 : i32, i32
  }
}

</mosaic_0001>

<bundles_post_ra>
// kernel: encoder_forward.1
= control target key start
LH: loop header
LB: loop body
LE: loop exit
PB: predicated region body
PF: predicated region fallthrough
CT: control target
= control target key end

     0   :  { %s3826_s29 = smov 0   ;;  %s6242_s0 = inlined_call_operand.vmem [shape: f32[64,16], index: 0, kind: input, shape index: {}, may-alias: {0,1}]   ;;  %s6243_s1 = inlined_call_operand.vmem [shape: f32[64,16], index: 1, kind: input, shape index: {}, may-alias: {0,1}]   ;;  %s6244_s2 = inlined_call_operand.vmem [shape: f32[16,512], index: 2, kind: input, shape index: {}]   ;;  %s6245_s3 = inlined_call_operand.vmem [shape: f32[16,512], index: 3, kind: input, shape index: {}]   ;;  %s6246_s4 = inlined_call_operand.vmem [shape: f32[1,512], index: 4, kind: input, shape index: {}]   ;;  %s6247_s5 = inlined_call_operand.vmem [shape: f32[1,512], index: 5, kind: input, shape index: {}]   ;;  %s6248_s6 = inlined_call_operand.vmem [shape: f32[128,512], index: 6, kind: input, shape index: {}]   ;;  %s6249_s7 = inlined_call_operand.vmem [shape: f32[128,512], index: 7, kind: input, shape index: {}]   ;;  %s6250_s8 = inlined_call_operand.vmem [shape: f32[128,128], index: 8, kind: input, shape index: {}]   ;;  %s6251_s9 = inlined_call_operand.vmem [shape: f32[128,128], index: 9, kind: input, shape index: {}]   ;;  %s6252_s10 = inlined_call_operand.vmem [shape: f32[1,128], index: 10, kind: input, shape index: {}]   ;;  %s6253_s11 = inlined_call_operand.vmem [shape: f32[8,8,128], index: 11, kind: output, shape index: {0}]   ;;  %s6254_s12 = inlined_call_operand.vmem [shape: f32[8,8,128], index: 12, kind: output, shape index: {1}]   ;;  %s6255_s13 = inlined_call_operand.vmem [shape: f32[8,128], index: 13, kind: output, shape index: {2}]   ;;  %s6256_s14 = inlined_call_operand.vmem [shape: f32[8,128], index: 14, kind: output, shape index: {3}]  }
   0x1 LB: > { %6397 = sst [smem:[#allocation5_spill]] %s3745_s29  ;;  %s3832_s30 = sadd.s32 4294967295, %s3745_s29   ;;  %s3745_s29 = sphi %s3826_s29, %s25_s29  }
   0x2   : > { %p3398_p0 = scmp.ge.s32.totalorder %s3745_s29, 1  ;;  %p427_p1 = scmp.lt.s32.totalorder %s3745_s29, 3 }
   0x4   : > { %p428_p2 = pnand %p3398_p0, %p427_p1 }
   0x6   : > { %431 = sbr.rel (%p428_p2) target bundleno = 1350 (0x546), region = 64 }
   0xb   : > { %s3399_s15 = sshll.u32 %s3832_s30, 2  ;;  %s491_s16 = ssub.s32 1, %s3832_s30 }
   0xc   : > { %p486_p3 = scmp.lt.s32.totalorder %s3399_s15, 7  ;;  %s3401_s17 = sshll.u32 %s491_s16, 2 }
   0xd   : > { %p493_p4 = scmp.lt.s32.totalorder %s3401_s17, 7  ;;  %p3407_p5 = scmp.ne.s32.totalorder %s3832_s30, 0 }
   0xe   : > { %s6707_s15 = smov (!%p486_p3, %s3399_s15), 7 }
   0xf   : > { %s6709_s17 = smov (!%p493_p4, %s3401_s17), 7  ;;  %s3400_s18 = sshll.u32 %s6707_s15, 3 }
  0x10   : > { %s3841_s21 = scalar_lea.vmem %s6242_s0, %s3400_s18  ;;  %s3402_s22 = sshll.u32 %s6709_s17, 3 }
  0x11   : > { %s3846_s25 = scalar_lea.vmem %s6243_s1, %s3402_s22  ;;  %s3851_s28 = scalar_lea.vmem %s6253_s11, %s3400_s18 }
  0x12   : > { %s3856_s15 = scalar_lea.vmem %s6254_s12, %s3402_s22  ;;  %516 = sbr.rel (%p3407_p5) target bundleno = 26 (0x1a), region = 68 }
  0x17   : > { %v3747_v0 = vmov 0.0  }
  0x18   : > { %517 = vst [vmem:[#allocation2 + $0x10] sm:$0xff] %v3747_v0  ;;  %518 = vst [vmem:[#allocation2] sm:$0xff] %v3747_v0 }
  0x19   : > { %519 = vst [vmem:[#allocation2 + $0x18] sm:$0xff] %v3747_v0  ;;  %520 = vst [vmem:[#allocation2 + $0x8] sm:$0xff] %v3747_v0 }
  0x1a PF: > { %v530_v1 = vld [vmem:[%s6244_s2 + $0x28] sm:$0xff]  ;;  %v532_v2 = vld [vmem:[%s6244_s2 + $0x38] sm:$0xff]  ;;  %v529_v3 = vld [vmem:[%s6244_s2 + $0x20] sm:$0xff]  ;;  %vm555_vm0 = vcmask 130048   ;;  %v6258_v10 = vmov 0.0   ;;  %p3430_p6 = scmp.ne.s32.totalorder %s3832_s30, 1 }
  0x1b   : > { %596 = vmatprep.subr.mxu0 %v530_v1  ;;  %685 = vmatprep.subr.mxu1 %v532_v2  ;;  %v531_v4 = vld [vmem:[%s6244_s2 + $0x30] sm:$0xff]  ;;  %v526_v5 = vld [vmem:[%s6244_s2 + $0x8] sm:$0xff]  ;;  %v528_v6 = vld [vmem:[%s6244_s2 + $0x18] sm:$0xff] }
  0x1c   : > { %597 = vmatpush1.msra.mxu0 %v529_v3  ;;  %686 = vmatpush1.msra.mxu1 %v531_v4  ;;  %v525_v7 = vld [vmem:[%s6244_s2] sm:$0xff]  ;;  %v527_v8 = vld [vmem:[%s6244_s2 + $0x10] sm:$0xff]  ;;  %v771_v11 = vld [vmem:[%s6245_s3 + $0x28] sm:$0xff] }
  0x1d   : > { %598 = vmatprep.subr.mxu0 %v526_v5  ;;  %687 = vmatprep.subr.mxu1 %v528_v6  ;;  %v521_v9 = vld [vmem:[%s3841_s21] sm:$0xff]  ;;  %v767_v13 = vld [vmem:[%s6245_s3 + $0x8] sm:$0xff]  ;;  %v773_v14 = vld [vmem:[%s6245_s3 + $0x38] sm:$0xff] }
  0x1e   : > { %599 = vmatpush1.msra.mxu0 %v525_v7  ;;  %632 = vmatprep.mubr.f32.mxu0 %v6258_v10  ;;  %v770_v12 = vld [vmem:[%s6245_s3 + $0x20] sm:$0xff]  ;;  %v522_v15 = vld [vmem:[%s3841_s21 + $0x8] sm:$0xff]  ;;  %v772_v17 = vld [vmem:[%s6245_s3 + $0x30] sm:$0xff] }
  0x1f   : > { %688 = vmatpush1.msra.mxu1 %v527_v8  ;;  %721 = vmatprep.mubr.f32.mxu1 %v6258_v10  ;;  %v766_v16 = vld [vmem:[%s6245_s3] sm:$0xff]  ;;  %v769_v18 = vld [vmem:[%s6245_s3 + $0x18] sm:$0xff]  ;;  %v3917_v19 = vld [vmem:[%s6248_s6 + $0x1e8] sm:$0xff] }
  0x20   : > { %3408 = vmatmul.mubr.msk.f32.vlgmr.msra.gmra.mxu0 %vm555_vm0, %v521_v9  ;;  %3412 = vmatmul.mubr.msk.f32.vlgmr.msra.gmra.mxu1 %vm555_vm0, %v521_v9  ;;  %v523_v20 = vld [vmem:[%s3841_s21 + $0x10] sm:$0xff]  ;;  %v3931_v22 = vld [vmem:[%s6248_s6 + $0x1f8] sm:$0xff]  ;;  %v762_v24 = vld [vmem:[%s3846_s25] sm:$0xff] }
  0x21   : > { %836 = vmatprep.subr.mxu0 %v771_v11  ;;  %638 = vmatprep.mubr.f32.mxu0 %v6258_v10  ;;  %v768_v21 = vld [vmem:[%s6245_s3 + $0x10] sm:$0xff]  ;;  %v524_v23 = vld [vmem:[%s3841_s21 + $0x18] sm:$0xff]  ;;  %v3945_v25 = vld [vmem:[%s6248_s6 + $0x1e0] sm:$0xff] }
  0x22   : > { %837 = vmatpush1.msra.mxu0 %v770_v12  ;;  %727 = vmatprep.mubr.f32.mxu1 %v6258_v10  ;;  %v3950_v26 = vld [vmem:[%s6248_s6 + $0x1f0] sm:$0xff]  ;;  %v3955_v27 = vld [vmem:[%s6248_s6 + $0x1c8] sm:$0xff]  ;;  %v3960_v28 = vld [vmem:[%s6248_s6 + $0x1d8] sm:$0xff] }
  0x23   : > { %838 = vmatprep.subr.mxu0 %v767_v13  ;;  %925 = vmatprep.subr.mxu1 %v773_v14  ;;  %v3967_v29 = vld [vmem:[%s6248_s6 + $0x1c0] sm:$0xff]  ;;  %v3972_v30 = vld [vmem:[%s6248_s6 + $0x1d0] sm:$0xff]  ;;  %v3979_v31 = vld [vmem:[%s6248_s6 + $0x1a8] sm:$0xff] }
  0x24   : > { %3409 = vmatmul.mubr.msk.f32.gmra.mxu0 %vm555_vm0, %v522_v15  ;;  %3413 = vmatmul.mubr.msk.f32.gmra.mxu1 %vm555_vm0, %v522_v15  ;;  %v3984_v32 = vld [vmem:[%s6248_s6 + $0x1b8] sm:$0xff]  ;;  %v3991_v33 = vld [vmem:[%s6248_s6 + $0x1a0] sm:$0xff]  ;;  %v3996_v34 = vld [vmem:[%s6248_s6 + $0x1b0] sm:$0xff] }
  0x25   : > { %644 = vmatprep.mubr.f32.mxu0 %v6258_v10  ;;  %733 = vmatprep.mubr.f32.mxu1 %v6258_v10  ;;  %v4003_v35 = vld [vmem:[%s6248_s6 + $0x188] sm:$0xff]  ;;  %v4008_v36 = vld [vmem:[%s6248_s6 + $0x198] sm:$0xff]  ;;  %v4015_v37 = vld [vmem:[%s6248_s6 + $0x180] sm:$0xff] }
  0x26   : > { %839 = vmatpush1.msra.mxu0 %v766_v16  ;;  %926 = vmatpush1.msra.mxu1 %v772_v17  ;;  %v4020_v38 = vld [vmem:[%s6248_s6 + $0x190] sm:$0xff]  ;;  %v4027_v39 = vld [vmem:[%s6248_s6 + $0x168] sm:$0xff]  ;;  %v4032_v40 = vld [vmem:[%s6248_s6 + $0x178] sm:$0xff] }
  0x27   : > { %927 = vmatprep.subr.mxu1 %v769_v18  ;;  %1080 = vmatprep.subr.mxu0 %v3917_v19  ;;  %v4039_v41 = vld [vmem:[%s6248_s6 + $0x160] sm:$0xff]  ;;  %v4044_v42 = vld [vmem:[%s6248_s6 + $0x170] sm:$0xff]  ;;  %v4051_v43 = vld [vmem:[%s6248_s6 + $0x148] sm:$0xff] }
  0x28   : > { %3410 = vmatmul.mubr.msk.f32.gmra.mxu0 %vm555_vm0, %v523_v20  ;;  %3414 = vmatmul.mubr.msk.f32.gmra.mxu1 %vm555_vm0, %v523_v20  ;;  %v4056_v44 = vld [vmem:[%s6248_s6 + $0x158] sm:$0xff]  ;;  %v4063_v45 = vld [vmem:[%s6248_s6 + $0x140] sm:$0xff]  ;;  %v4068_v46 = vld [vmem:[%s6248_s6 + $0x150] sm:$0xff] }
  0x29   : > { %650 = vmatprep.mubr.f32.mxu0 %v6258_v10  ;;  %739 = vmatprep.mubr.f32.mxu1 %v6258_v10  ;;  %v4075_v47 = vld [vmem:[%s6248_s6 + $0x128] sm:$0xff]  ;;  %v4080_v48 = vld [vmem:[%s6248_s6 + $0x138] sm:$0xff]  ;;  %v4087_v49 = vld [vmem:[%s6248_s6 + $0x120] sm:$0xff] }
  0x2a   : > { %928 = vmatpush1.msra.mxu1 %v768_v21  ;;  %v4092_v50 = vld [vmem:[%s6248_s6 + $0x130] sm:$0xff]  ;;  %v4099_v51 = vld [vmem:[%s6248_s6 + $0x108] sm:$0xff]  ;;  %v4104_v52 = vld [vmem:[%s6248_s6 + $0x118] sm:$0xff] }
  0x2b   : > { %1151 = vmatprep.subr.mxu1 %v3931_v22  ;;  %v4111_v53 = vld [vmem:[%s6248_s6 + $0x100] sm:$0xff]  ;;  %v4116_v54 = vld [vmem:[%s6248_s6 + $0x110] sm:$0xff]  ;;  %v4123_v55 = vld [vmem:[%s6248_s6 + $0xe8] sm:$0xff] }
  0x2c   : > { %3411 = vmatmul.mubr.msk.f32.gmra.mxu0 %vm555_vm0, %v524_v23  ;;  %3415 = vmatmul.mubr.msk.f32.gmra.mxu1 %vm555_vm0, %v524_v23  ;;  %v4128_v56 = vld [vmem:[%s6248_s6 + $0xf8] sm:$0xff]  ;;  %v4135_v57 = vld [vmem:[%s6248_s6 + $0xe0] sm:$0xff]  ;;  %v4140_v58 = vld [vmem:[%s6248_s6 + $0xf0] sm:$0xff] }
  0x2d   : > { %872 = vmatprep.mubr.f32.mxu0 %v6258_v10  ;;  %961 = vmatprep.mubr.f32.mxu1 %v6258_v10  ;;  %v4147_v59 = vld [vmem:[%s6248_s6 + $0xc8] sm:$0xff]  ;;  %v4152_v60 = vld [vmem:[%s6248_s6 + $0xd8] sm:$0xff]  ;;  %v4161_v61 = vld [vmem:[%s6248_s6 + $0xc0] sm:$0xff] }
  0x2e   : > { %v4166_v62 = vld [vmem:[%s6248_s6 + $0xd0] sm:$0xff]  ;;  %v763_v63 = vld [vmem:[%s3846_s25 + $0x8] sm:$0xff]  ;;  %v4181_v1 = vld [vmem:[%s6248_s6 + $0xb8] sm:$0xff] }
  0x2f   : > { %v4176_v0 = vld [vmem:[%s6248_s6 + $0xa8] sm:$0xff]  ;;  %v4188_v2 = vld [vmem:[%s6248_s6 + $0xa0] sm:$0xff]  ;;  %v4193_v3 = vld [vmem:[%s6248_s6 + $0xb0] sm:$0xff] }
  0x30   : > { %3416 = vmatmul.mubr.msk.f32.vlgmr.msra.gmra.mxu0 %vm555_vm0, %v762_v24  ;;  %3420 = vmatmul.mubr.msk.f32.vlgmr.msra.gmra.mxu1 %vm555_vm0, %v762_v24  ;;  %v4200_v4 = vld [vmem:[%s6248_s6 + $0x88] sm:$0xff]  ;;  %v4205_v5 = vld [vmem:[%s6248_s6 + $0x98] sm:$0xff]  ;;  %v4214_v6 = vld [vmem:[%s6248_s6 + $0x80] sm:$0xff] }
  0x31   : > { %1081 = vmatpush1.msra.mxu0 %v3945_v25  ;;  %1152 = vmatpush1.msra.mxu1 %v3950_v26  ;;  %v4219_v7 = vld [vmem:[%s6248_s6 + $0x90] sm:$0xff]  ;;  %v4229_v9 = vld [vmem:[%s6248_s6 + $0x68] sm:$0xff]  ;;  %v4234_v11 = vld [vmem:[%s6248_s6 + $0x78] sm:$0xff] }
  0x32   : > { %1082 = vmatprep.subr.mxu0 %v3955_v27  ;;  %1153 = vmatprep.subr.mxu1 %v3960_v28  ;;  %v764_v8 = vld [vmem:[%s3846_s25 + $0x10] sm:$0xff]  ;;  %v4241_v12 = vld [vmem:[%s6248_s6 + $0x60] sm:$0xff]  ;;  %v4253_v14 = vld [vmem:[%s6248_s6 + $0x48] sm:$0xff] }
  0x33   : > { %1083 = vmatpush1.msra.mxu0 %v3967_v29  ;;  %1154 = vmatpush1.msra.mxu1 %v3972_v30  ;;  %v4246_v13 = vld [vmem:[%s6248_s6 + $0x70] sm:$0xff]  ;;  %v4258_v15 = vld [vmem:[%s6248_s6 + $0x58] sm:$0xff]  ;;  %v4267_v16 = vld [vmem:[%s6248_s6 + $0x40] sm:$0xff] }
  0x34   : > { %1084 = vmatprep.subr.mxu0 %v3979_v31  ;;  %1155 = vmatprep.subr.mxu1 %v3984_v32  ;;  %v4272_v17 = vld [vmem:[%s6248_s6 + $0x50] sm:$0xff]  ;;  %v765_v18 = vld [vmem:[%s3846_s25 + $0x18] sm:$0xff]  ;;  %v4282_v20 = vld [vmem:[%s6248_s6 + $0x28] sm:$0xff] }
  0x35   : > { %1085 = vmatpush1.msra.mxu0 %v3991_v33  ;;  %1156 = vmatpush1.msra.mxu1 %v3996_v34  ;;  %6398 = vst [vmem:[#allocation6_spill] sm:$0xff] %v4272_v17  ;;  %6399 = vst [vmem:[#allocation7_spill] sm:$0xff] %v4282_v20  ;;  %v4287_v21 = vld [vmem:[%s6248_s6 + $0x38] sm:$0xff]  ;;  %v4294_v23 = vld [vmem:[%s6248_s6 + $0x20] sm:$0xff] }
  0x36   : > { %1086 = vmatprep.subr.mxu0 %v4003_v35  ;;  %1157 = vmatprep.subr.mxu1 %v4008_v36  ;;  %6400 = vst [vmem:[#allocation8_spill] sm:$0xff] %v4287_v21  ;;  %6401 = vst [vmem:[#allocation9_spill] sm:$0xff] %v4294_v23  ;;  %v4299_v24 = vld [vmem:[%s6248_s6 + $0x30] sm:$0xff] }
  0x37   : > { %1087 = vmatpush1.msra.mxu0 %v4015_v37  ;;  %1158 = vmatpush1.msra.mxu1 %v4020_v38  ;;  %6402 = vst [vmem:[#allocation10_spill] sm:$0xff] %v4299_v24 }
  0x38   : > { %1088 = vmatprep.subr.mxu0 %v4027_v39  ;;  %1159 = vmatprep.subr.mxu1 %v4032_v40 }
  0x39   : > { %1089 = vmatpush1.msra.mxu0 %v4039_v41  ;;  %1160 = vmatpush1.msra.mxu1 %v4044_v42 }
  0x3a   : > { %1090 = vmatprep.subr.mxu0 %v4051_v43  ;;  %1161 = vmatprep.subr.mxu1 %v4056_v44 }
  0x3b   : > { %1091 = vmatpush1.msra.mxu0 %v4063_v45  ;;  %1162 = vmatpush1.msra.mxu1 %v4068_v46 }
  0x3c   : > { %1092 = vmatprep.subr.mxu0 %v4075_v47  ;;  %1163 = vmatprep.subr.mxu1 %v4080_v48 }
  0x3d   : > { %1093 = vmatpush1.msra.mxu0 %v4087_v49  ;;  %1164 = vmatpush1.msra.mxu1 %v4092_v50 }
  0x3e   : > { %1094 = vmatprep.subr.mxu0 %v4099_v51  ;;  %1165 = vmatprep.subr.mxu1 %v4104_v52 }
  0x3f   : > { %1095 = vmatpush1.msra.mxu0 %v4111_v53  ;;  %1166 = vmatpush1.msra.mxu1 %v4116_v54 }
  0x40   : > { %1096 = vmatprep.subr.mxu0 %v4123_v55  ;;  %1167 = vmatprep.subr.mxu1 %v4128_v56 }
  0x41   : > { %1097 = vmatpush1.msra.mxu0 %v4135_v57  ;;  %1168 = vmatpush1.msra.mxu1 %v4140_v58 }
  0x42   : > { %1098 = vmatprep.subr.mxu0 %v4147_v59  ;;  %1169 = vmatprep.subr.mxu1 %v4152_v60 }
  0x43   : > { %878 = vmatprep.mubr.f32.mxu0 %v6258_v10  ;;  %967 = vmatprep.mubr.f32.mxu1 %v6258_v10 }
  0x44   : > { %1099 = vmatpush1.msra.mxu0 %v4161_v61  ;;  %1170 = vmatpush1.msra.mxu1 %v4166_v62 }
  0x45   : > { %3417 = vmatmul.mubr.msk.f32.gmra.mxu0 %vm555_vm0, %v763_v63  ;;  %3421 = vmatmul.mubr.msk.f32.gmra.mxu1 %vm555_vm0, %v763_v63  ;;  %v4306_v63 = vld [vmem:[%s6248_s6 + $0x8] sm:$0xff] }
  0x46   : > { %1100 = vmatprep.subr.mxu0 %v4176_v0  ;;  %1171 = vmatprep.subr.mxu1 %v4181_v1  ;;  %6403 = vst [vmem:[#allocation11_spill] sm:$0xff] %v4306_v63 }
  0x47   : > { %1101 = vmatpush1.msra.mxu0 %v4188_v2  ;;  %1172 = vmatpush1.msra.mxu1 %v4193_v3 }
  0x48   : > { %1102 = vmatprep.subr.mxu0 %v4200_v4  ;;  %1173 = vmatprep.subr.mxu1 %v4205_v5 }
  0x49   : > { %884 = vmatprep.mubr.f32.mxu0 %v6258_v10  ;;  %973 = vmatprep.mubr.f32.mxu1 %v6258_v10 }
  0x4a   : > { %1103 = vmatpush1.msra.mxu0 %v4214_v6  ;;  %1174 = vmatpush1.msra.mxu1 %v4219_v7 }
  0x4b   : > { %3418 = vmatmul.mubr.msk.f32.gmra.mxu0 %vm555_vm0, %v764_v8  ;;  %3422 = vmatmul.mubr.msk.f32.gmra.mxu1 %vm555_vm0, %v764_v8  ;;  %v4311_v8 = vld [vmem:[%s6248_s6 + $0x18] sm:$0xff] }
  0x4c   : > { %1104 = vmatprep.subr.mxu0 %v4229_v9  ;;  %1175 = vmatprep.subr.mxu1 %v4234_v11  ;;  %6404 = vst [vmem:[#allocation12_spill] sm:$0xff] %v4311_v8 }
  0x4d   : > { %1105 = vmatpush1.msra.mxu0 %v4241_v12  ;;  %1176 = vmatpush1.msra.mxu1 %v4246_v13 }
  0x4e   : > { %1106 = vmatprep.subr.mxu0 %v4253_v14  ;;  %1177 = vmatprep.subr.mxu1 %v4258_v15 }
  0x4f   : > { %890 = vmatprep.mubr.f32.mxu0 %v6258_v10  ;;  %979 = vmatprep.mubr.f32.mxu1 %v6258_v10  ;;  %v4318_v10 = vld [vmem:[%s6248_s6] sm:$0xff] }
  0x50   : > { %1107 = vmatpush1.msra.mxu0 %v4267_v16  ;;  %1178 = vmatpush1.msra.mxu1 %v4272_v17  ;;  %6405 = vst [vmem:[#allocation13_spill] sm:$0xff] %v4318_v10  ;;  %v4368_v17 = vld [vmem:[%s6249_s7 + $0x1c0] sm:$0xff] }
  0x51   : > { %3419 = vmatmul.mubr.msk.f32.gmra.mxu0 %vm555_vm0, %v765_v18  ;;  %3423 = vmatmul.mubr.msk.f32.gmra.mxu1 %vm555_vm0, %v765_v18  ;;  %v4325_v18 = vld [vmem:[%s6248_s6 + $0x10] sm:$0xff]  ;;  %6414 = vst [vmem:[#allocation21_spill] sm:$0xff] %v4368_v17 }
  0x52   : > { %1108 = vmatprep.subr.mxu0 %v4282_v20  ;;  %1179 = vmatprep.subr.mxu1 %v4287_v21  ;;  %6406 = vst [vmem:[#allocation14_spill] sm:$0xff] %v4325_v18  ;;  %v1002_v20 = vld [vmem:[#allocation2 + $0x10] sm:$0xff]  ;;  %v6407_v21 = vmov 0.0  }
  0x53   : > { %1109 = vmatpush1.msra.mxu0 %v4294_v23  ;;  %1180 = vmatpush1.msra.mxu1 %v4299_v24  ;;  %v4334_v23 = vld [vmem:[%s6249_s7 + $0x1e8] sm:$0xff]  ;;  %v4339_v24 = vld [vmem:[%s6249_s7 + $0x1f8] sm:$0xff] }
  0x54   : > { %1110 = vmatprep.subr.mxu0 %v4306_v63  ;;  %1181 = vmatprep.subr.mxu1 %v4311_v8  ;;  %6408 = vst [vmem:[#allocation15_spill] sm:$0xff] %v4334_v23  ;;  %6409 = vst [vmem:[#allocation16_spill] sm:$0xff] %v4339_v24  ;;  %v4351_v8 = vld [vmem:[%s6249_s7 + $0x1f0] sm:$0xff]  ;;  %v4356_v63 = vld [vmem:[%s6249_s7 + $0x1c8] sm:$0xff] }
  0x55   : > { %1111 = vmatpush1.msra.mxu0 %v4318_v10  ;;  %1144 = vmatprep.mubr.f32.mxu0 %v6407_v21  ;;  %v4346_v10 = vld [vmem:[%s6249_s7 + $0x1e0] sm:$0xff]  ;;  %6411 = vst [vmem:[#allocation18_spill] sm:$0xff] %v4351_v8  ;;  %6412 = vst [vmem:[#allocation19_spill] sm:$0xff] %v4356_v63 }
  0x56   : > { %1182 = vmatpush1.msra.mxu1 %v4325_v18  ;;  %1215 = vmatprep.mubr.f32.mxu1 %v6407_v21  ;;  %6410 = vst [vmem:[#allocation17_spill] sm:$0xff] %v4346_v10  ;;  %v4361_v18 = vld [vmem:[%s6249_s7 + $0x1d8] sm:$0xff] }
  0x57   : > { %1145 = vmatmul.mubr.f32.vlgmr.msra.gmra.mxu0 %v1002_v20  ;;  %1216 = vmatmul.mubr.f32.vlgmr.msra.gmra.mxu1 %v1002_v20  ;;  %6413 = vst [vmem:[#allocation20_spill] sm:$0xff] %v4361_v18  ;;  %v4373_v20 = vld [vmem:[%s6249_s7 + $0x1d0] sm:$0xff] }
  0x58   : > { %1297 = vmatprep.subr.mxu0 %v4334_v23  ;;  %1368 = vmatprep.subr.mxu1 %v4339_v24  ;;  %6415 = vst [vmem:[#allocation22_spill] sm:$0xff] %v4373_v20  ;;  %v4380_v23 = vld [vmem:[%s6249_s7 + $0x1a8] sm:$0xff]  ;;  %v4385_v24 = vld [vmem:[%s6249_s7 + $0x1b8] sm:$0xff] }
  0x59   : > { %1298 = vmatpush1.msra.mxu0 %v4346_v10  ;;  %1369 = vmatpush1.msra.mxu1 %v4351_v8  ;;  %6416 = vst [vmem:[#allocation23_spill] sm:$0xff] %v4380_v23  ;;  %6417 = vst [vmem:[#allocation24_spill] sm:$0xff] %v4385_v24  ;;  %v4392_v10 = vld [vmem:[%s6249_s7 + $0x1a0] sm:$0xff]  ;;  %v4397_v8 = vld [vmem:[%s6249_s7 + $0x1b0] sm:$0xff] }
  0x5a   : > { %1299 = vmatprep.subr.mxu0 %v4356_v63  ;;  %1370 = vmatprep.subr.mxu1 %v4361_v18  ;;  %6418 = vst [vmem:[#allocation25_spill] sm:$0xff] %v4392_v10  ;;  %6419 = vst [vmem:[#allocation26_spill] sm:$0xff] %v4397_v8  ;;  %v4404_v63 = vld [vmem:[%s6249_s7 + $0x188] sm:$0xff]  ;;  %v4409_v18 = vld [vmem:[%s6249_s7 + $0x198] sm:$0xff] }
  0x5b   : > { %1300 = vmatpush1.msra.mxu0 %v4368_v17  ;;  %1371 = vmatpush1.msra.mxu1 %v4373_v20  ;;  %6420 = vst [vmem:[#allocation27_spill] sm:$0xff] %v4404_v63  ;;  %6421 = vst [vmem:[#allocation28_spill] sm:$0xff] %v4409_v18  ;;  %v4416_v17 = vld [vmem:[%s6249_s7 + $0x180] sm:$0xff]  ;;  %v4421_v20 = vld [vmem:[%s6249_s7 + $0x190] sm:$0xff] }
  0x5c   : > { %1301 = vmatprep.subr.mxu0 %v4380_v23  ;;  %1372 = vmatprep.subr.mxu1 %v4385_v24  ;;  %6422 = vst [vmem:[#allocation29_spill] sm:$0xff] %v4416_v17  ;;  %6423 = vst [vmem:[#allocation30_spill] sm:$0xff] %v4421_v20  ;;  %v4428_v23 = vld [vmem:[%s6249_s7 + $0x168] sm:$0xff]  ;;  %v4433_v24 = vld [vmem:[%s6249_s7 + $0x178] sm:$0xff] }
  0x5d   : > { %1302 = vmatpush1.msra.mxu0 %v4392_v10  ;;  %1373 = vmatpush1.msra.mxu1 %v4397_v8  ;;  %6424 = vst [vmem:[#allocation31_spill] sm:$0xff] %v4428_v23  ;;  %6425 = vst [vmem:[#allocation32_spill] sm:$0xff] %v4433_v24  ;;  %v4440_v10 = vld [vmem:[%s6249_s7 + $0x160] sm:$0xff]  ;;  %v4445_v8 = vld [vmem:[%s6249_s7 + $0x170] sm:$0xff] }
  0x5e   : > { %1303 = vmatprep.subr.mxu0 %v4404_v63  ;;  %1374 = vmatprep.subr.mxu1 %v4409_v18  ;;  %6426 = vst [vmem:[#allocation33_spill] sm:$0xff] %v4440_v10  ;;  %6427 = vst [vmem:[#allocation34_spill] sm:$0xff] %v4445_v8  ;;  %v4452_v63 = vld [vmem:[%s6249_s7 + $0x148] sm:$0xff]  ;;  %v4457_v18 = vld [vmem:[%s6249_s7 + $0x158] sm:$0xff] }
  0x5f   : > { %1304 = vmatpush1.msra.mxu0 %v4416_v17  ;;  %1375 = vmatpush1.msra.mxu1 %v4421_v20  ;;  %6428 = vst [vmem:[#allocation35_spill] sm:$0xff] %v4452_v63  ;;  %6429 = vst [vmem:[#allocation36_spill] sm:$0xff] %v4457_v18  ;;  %v4464_v17 = vld [vmem:[%s6249_s7 + $0x140] sm:$0xff]  ;;  %v4469_v20 = vld [vmem:[%s6249_s7 + $0x150] sm:$0xff] }
  0x60   : > { %1305 = vmatprep.subr.mxu0 %v4428_v23  ;;  %1376 = vmatprep.subr.mxu1 %v4433_v24  ;;  %6430 = vst [vmem:[#allocation37_spill] sm:$0xff] %v4464_v17  ;;  %6431 = vst [vmem:[#allocation38_spill] sm:$0xff] %v4469_v20  ;;  %v4476_v23 = vld [vmem:[%s6249_s7 + $0x128] sm:$0xff]  ;;  %v4481_v24 = vld [vmem:[%s6249_s7 + $0x138] sm:$0xff] }
  0x61   : > { %1306 = vmatpush1.msra.mxu0 %v4440_v10  ;;  %1377 = vmatpush1.msra.mxu1 %v4445_v8  ;;  %6432 = vst [vmem:[#allocation39_spill] sm:$0xff] %v4476_v23  ;;  %6433 = vst [vmem:[#allocation40_spill] sm:$0xff] %v4481_v24  ;;  %v4488_v10 = vld [vmem:[%s6249_s7 + $0x120] sm:$0xff]  ;;  %v4493_v8 = vld [vmem:[%s6249_s7 + $0x130] sm:$0xff] }
  0x62   : > { %1307 = vmatprep.subr.mxu0 %v4452_v63  ;;  %1378 = vmatprep.subr.mxu1 %v4457_v18  ;;  %6434 = vst [vmem:[#allocation41_spill] sm:$0xff] %v4488_v10  ;;  %6435 = vst [vmem:[#allocation42_spill] sm:$0xff] %v4493_v8  ;;  %v4500_v63 = vld [vmem:[%s6249_s7 + $0x108] sm:$0xff]  ;;  %v4505_v18 = vld [vmem:[%s6249_s7 + $0x118] sm:$0xff] }
  0x63   : > { %1308 = vmatpush1.msra.mxu0 %v4464_v17  ;;  %1379 = vmatpush1.msra.mxu1 %v4469_v20  ;;  %6436 = vst [vmem:[#allocation43_spill] sm:$0xff] %v4500_v63  ;;  %6437 = vst [vmem:[#allocation44_spill] sm:$0xff] %v4505_v18  ;;  %v4512_v17 = vld [vmem:[%s6249_s7 + $0x100] sm:$0xff]  ;;  %v4517_v20 = vld [vmem:[%s6249_s7 + $0x110] sm:$0xff] }
  0x64   : > { %1309 = vmatprep.subr.mxu0 %v4476_v23  ;;  %1380 = vmatprep.subr.mxu1 %v4481_v24  ;;  %6438 = vst [vmem:[#allocation45_spill] sm:$0xff] %v4512_v17  ;;  %6439 = vst [vmem:[#allocation46_spill] sm:$0xff] %v4517_v20  ;;  %v4524_v23 = vld [vmem:[%s6249_s7 + $0xe8] sm:$0xff]  ;;  %v4529_v24 = vld [vmem:[%s6249_s7 + $0xf8] sm:$0xff] }
  0x65   : > { %1310 = vmatpush1.msra.mxu0 %v4488_v10  ;;  %1381 = vmatpush1.msra.mxu1 %v4493_v8  ;;  %6440 = vst [vmem:[#allocation47_spill] sm:$0xff] %v4524_v23  ;;  %6441 = vst [vmem:[#allocation48_spill] sm:$0xff] %v4529_v24  ;;  %v4536_v10 = vld [vmem:[%s6249_s7 + $0xe0] sm:$0xff]  ;;  %v4541_v8 = vld [vmem:[%s6249_s7 + $0xf0] sm:$0xff] }
  0x66   : > { %1311 = vmatprep.subr.mxu0 %v4500_v63  ;;  %1382 = vmatprep.subr.mxu1 %v4505_v18  ;;  %6442 = vst [vmem:[#allocation49_spill] sm:$0xff] %v4536_v10  ;;  %6443 = vst [vmem:[#allocation50_spill] sm:$0xff] %v4541_v8  ;;  %v4548_v63 = vld [vmem:[%s6249_s7 + $0xc8] sm:$0xff]  ;;  %v4553_v18 = vld [vmem:[%s6249_s7 + $0xd8] sm:$0xff] }
  0x67   : > { %1312 = vmatpush1.msra.mxu0 %v4512_v17  ;;  %1383 = vmatpush1.msra.mxu1 %v4517_v20  ;;  %6444 = vst [vmem:[#allocation51_spill] sm:$0xff] %v4548_v63  ;;  %6445 = vst [vmem:[#allocation52_spill] sm:$0xff] %v4553_v18  ;;  %v4560_v17 = vld [vmem:[%s6249_s7 + $0xc0] sm:$0xff]  ;;  %v4565_v20 = vld [vmem:[%s6249_s7 + $0xd0] sm:$0xff] }
  0x68   : > { %1313 = vmatprep.subr.mxu0 %v4524_v23  ;;  %1384 = vmatprep.subr.mxu1 %v4529_v24  ;;  %6446 = vst [vmem:[#allocation53_spill] sm:$0xff] %v4560_v17  ;;  %6447 = vst [vmem:[#allocation54_spill] sm:$0xff] %v4565_v20  ;;  %v4572_v23 = vld [vmem:[%s6249_s7 + $0xa8] sm:$0xff]  ;;  %v4577_v24 = vld [vmem:[%s6249_s7 + $0xb8] sm:$0xff] }
  0x69   : > { %1314 = vmatpush1.msra.mxu0 %v4536_v10  ;;  %1385 = vmatpush1.msra.mxu1 %v4541_v8  ;;  %6448 = vst [vmem:[#allocation55_spill] sm:$0xff] %v4572_v23  ;;  %6449 = vst [vmem:[#allocation56_spill] sm:$0xff] %v4577_v24  ;;  %v4584_v10 = vld [vmem:[%s6249_s7 + $0xa0] sm:$0xff]  ;;  %v4589_v8 = vld [vmem:[%s6249_s7 + $0xb0] sm:$0xff] }
  0x6a   : > { %1315 = vmatprep.subr.mxu0 %v4548_v63  ;;  %1386 = vmatprep.subr.mxu1 %v4553_v18  ;;  %6450 = vst [vmem:[#allocation57_spill] sm:$0xff] %v4584_v10  ;;  %6451 = vst [vmem:[#allocation58_spill] sm:$0xff] %v4589_v8  ;;  %v4596_v63 = vld [vmem:[%s6249_s7 + $0x88] sm:$0xff]  ;;  %v4601_v18 = vld [vmem:[%s6249_s7 + $0x98] sm:$0xff] }
  0x6b   : > { %1316 = vmatpush1.msra.mxu0 %v4560_v17  ;;  %1387 = vmatpush1.msra.mxu1 %v4565_v20  ;;  %6452 = vst [vmem:[#allocation59_spill] sm:$0xff] %v4596_v63  ;;  %6453 = vst [vmem:[#allocation60_spill] sm:$0xff] %v4601_v18  ;;  %v4608_v17 = vld [vmem:[%s6249_s7 + $0x80] sm:$0xff]  ;;  %v4613_v20 = vld [vmem:[%s6249_s7 + $0x90] sm:$0xff] }
  0x6c   : > { %1317 = vmatprep.subr.mxu0 %v4572_v23  ;;  %1388 = vmatprep.subr.mxu1 %v4577_v24  ;;  %6454 = vst [vmem:[#allocation61_spill] sm:$0xff] %v4608_v17  ;;  %6455 = vst [vmem:[#allocation62_spill] sm:$0xff] %v4613_v20  ;;  %v4620_v23 = vld [vmem:[%s6249_s7 + $0x68] sm:$0xff]  ;;  %v4625_v24 = vld [vmem:[%s6249_s7 + $0x78] sm:$0xff] }
  0x6d   : > { %1318 = vmatpush1.msra.mxu0 %v4584_v10  ;;  %1389 = vmatpush1.msra.mxu1 %v4589_v8  ;;  %6456 = vst [vmem:[#allocation63_spill] sm:$0xff] %v4620_v23  ;;  %6457 = vst [vmem:[#allocation64_spill] sm:$0xff] %v4625_v24  ;;  %v4632_v10 = vld [vmem:[%s6249_s7 + $0x60] sm:$0xff]  ;;  %v4637_v8 = vld [vmem:[%s6249_s7 + $0x70] sm:$0xff] }
  0x6e   : > { %1319 = vmatprep.subr.mxu0 %v4596_v63  ;;  %1390 = vmatprep.subr.mxu1 %v4601_v18  ;;  %6458 = vst [vmem:[#allocation65_spill] sm:$0xff] %v4632_v10  ;;  %6459 = vst [vmem:[#allocation66_spill] sm:$0xff] %v4637_v8  ;;  %v4644_v63 = vld [vmem:[%s6249_s7 + $0x48] sm:$0xff]  ;;  %v4649_v18 = vld [vmem:[%s6249_s7 + $0x58] sm:$0xff] }
  0x6f   : > { %1320 = vmatpush1.msra.mxu0 %v4608_v17  ;;  %1391 = vmatpush1.msra.mxu1 %v4613_v20  ;;  %6460 = vst [vmem:[#allocation67_spill] sm:$0xff] %v4644_v63  ;;  %6461 = vst [vmem:[#allocation68_spill] sm:$0xff] %v4649_v18  ;;  %v4656_v17 = vld [vmem:[%s6249_s7 + $0x40] sm:$0xff]  ;;  %v4661_v20 = vld [vmem:[%s6249_s7 + $0x50] sm:$0xff] }
  0x70   : > { %1321 = vmatprep.subr.mxu0 %v4620_v23  ;;  %1392 = vmatprep.subr.mxu1 %v4625_v24  ;;  %6462 = vst [vmem:[#allocation69_spill] sm:$0xff] %v4656_v17  ;;  %6463 = vst [vmem:[#allocation70_spill] sm:$0xff] %v4661_v20  ;;  %v4668_v23 = vld [vmem:[%s6249_s7 + $0x28] sm:$0xff]  ;;  %v4673_v24 = vld [vmem:[%s6249_s7 + $0x38] sm:$0xff] }
  0x71   : > { %1322 = vmatpush1.msra.mxu0 %v4632_v10  ;;  %1393 = vmatpush1.msra.mxu1 %v4637_v8  ;;  %6464 = vst [vmem:[#allocation71_spill] sm:$0xff] %v4668_v23  ;;  %v4680_v10 = vld [vmem:[%s6249_s7 + $0x20] sm:$0xff]  ;;  %v4685_v8 = vld [vmem:[%s6249_s7 + $0x30] sm:$0xff] }
  0x72   : > { %1323 = vmatprep.subr.mxu0 %v4644_v63  ;;  %1394 = vmatprep.subr.mxu1 %v4649_v18  ;;  %v4692_v63 = vld [vmem:[%s6249_s7 + $0x8] sm:$0xff]  ;;  %v4697_v18 = vld [vmem:[%s6249_s7 + $0x18] sm:$0xff] }
  0x73   : > { %1324 = vmatpush1.msra.mxu0 %v4656_v17  ;;  %1395 = vmatpush1.msra.mxu1 %v4661_v20  ;;  %v4704_v17 = vld [vmem:[%s6249_s7] sm:$0xff]  ;;  %v4711_v20 = vld [vmem:[%s6249_s7 + $0x10] sm:$0xff] }
  0x74   : > { %1325 = vmatprep.subr.mxu0 %v4668_v23  ;;  %1396 = vmatprep.subr.mxu1 %v4673_v24  ;;  %v1006_v23 = vld [vmem:[#allocation2 + $0x18] sm:$0xff] }
  0x75   : > { %1326 = vmatpush1.msra.mxu0 %v4680_v10  ;;  %1397 = vmatpush1.msra.mxu1 %v4685_v8 }
  0x76   : > { %1327 = vmatprep.subr.mxu0 %v4692_v63  ;;  %1398 = vmatprep.subr.mxu1 %v4697_v18 }
  0x77   : > { %1328 = vmatpush1.msra.mxu0 %v4704_v17  ;;  %1361 = vmatprep.mubr.f32.mxu0 %v6407_v21 }
  0x78   : > { %1399 = vmatpush1.msra.mxu1 %v4711_v20  ;;  %1432 = vmatprep.mubr.f32.mxu1 %v6407_v21 }
  0x79   : > { %1362 = vmatmul.mubr.f32.vlgmr.msra.gmra.mxu0 %v1006_v23  ;;  %1433 = vmatmul.mubr.f32.vlgmr.msra.gmra.mxu1 %v1006_v23 }
  0x7a   : > { %1553 = vmatprep.subr.mxu0 %v3917_v19  ;;  %1624 = vmatprep.subr.mxu1 %v3931_v22  ;;  %v6465_v19 = vld [vmem:[#allocation6_spill] sm:$0xff]  ;;  %v6466_v22 = vld [vmem:[#allocation7_spill] sm:$0xff] }
  0x7b   : > { %1554 = vmatpush1.msra.mxu0 %v3945_v25  ;;  %1625 = vmatpush1.msra.mxu1 %v3950_v26  ;;  %v6467_v25 = vld [vmem:[#allocation8_spill] sm:$0xff]  ;;  %v6468_v26 = vld [vmem:[#allocation9_spill] sm:$0xff] }
  0x7c   : > { %1555 = vmatprep.subr.mxu0 %v3955_v27  ;;  %1626 = vmatprep.subr.mxu1 %v3960_v28  ;;  %v6469_v27 = vld [vmem:[#allocation10_spill] sm:$0xff]  ;;  %v6470_v28 = vld [vmem:[#allocation11_spill] sm:$0xff] }
  0x7d   : > { %1556 = vmatpush1.msra.mxu0 %v3967_v29  ;;  %1627 = vmatpush1.msra.mxu1 %v3972_v30  ;;  %v6471_v29 = vld [vmem:[#allocation12_spill] sm:$0xff]  ;;  %v6472_v30 = vld [vmem:[#allocation13_spill] sm:$0xff] }
  0x7e   : > { %1557 = vmatprep.subr.mxu0 %v3979_v31  ;;  %1628 = vmatprep.subr.mxu1 %v3984_v32  ;;  %v6473_v31 = vld [vmem:[#allocation14_spill] sm:$0xff]  ;;  %v6474_v32 = vld [vmem:[#allocation15_spill] sm:$0xff] }
  0x7f   : > { %1558 = vmatpush1.msra.mxu0 %v3991_v33  ;;  %1629 = vmatpush1.msra.mxu1 %v3996_v34  ;;  %v6475_v33 = vld [vmem:[#allocation16_spill] sm:$0xff]  ;;  %v535_v34 = vlaneseq }
  0x80   : > { %1559 = vmatprep.subr.mxu0 %v4003_v35  ;;  %1630 = vmatprep.subr.mxu1 %v4008_v36 }
  0x81   : > { %1560 = vmatpush1.msra.mxu0 %v4015_v37  ;;  %1631 = vmatpush1.msra.mxu1 %v4020_v38  ;;  %v536_v35 = vshrl.u32 %v535_v34, 7  ;;  %v533_v38 = vld [vmem:[%s6246_s4] sm:$0xf] }
  0x82   : > { %1561 = vmatprep.subr.mxu0 %v4027_v39  ;;  %1632 = vmatprep.subr.mxu1 %v4032_v40 }
  0x83   : > { %1562 = vmatpush1.msra.mxu0 %v4039_v41  ;;  %1633 = vmatpush1.msra.mxu1 %v4044_v42  ;;  %v537_v36 = vsub.s32 0, %v536_v35  ;;  %v545_v37 = vsub.s32 2, %v536_v35  ;;  %v541_v41 = vsub.s32 1, %v536_v35  ;;  %v549_v42 = vsub.s32 3, %v536_v35 }
  0x84   : > { %1563 = vmatprep.subr.mxu0 %v4051_v43  ;;  %1634 = vmatprep.subr.mxu1 %v4056_v44 }
  0x85   : > { %1564 = vmatpush1.msra.mxu0 %v4063_v45  ;;  %1635 = vmatpush1.msra.mxu1 %v4068_v46  ;;  %v538_v45 = vrot.slane %v533_v38, %v537_v36  ;;  %v4798_v46 = vrot.slane %v533_v38, %v545_v37 }
  0x86   : > { %1565 = vmatprep.subr.mxu0 %v4075_v47  ;;  %1636 = vmatprep.subr.mxu1 %v4080_v48 }
  0x87   : > { %1566 = vmatpush1.msra.mxu0 %v4087_v49  ;;  %1637 = vmatpush1.msra.mxu1 %v4092_v50  ;;  %v542_v49 = vrot.slane %v533_v38, %v541_v41 }
  0x88   : > { %1567 = vmatprep.subr.mxu0 %v4099_v51  ;;  %1638 = vmatprep.subr.mxu1 %v4104_v52  ;;  %v4802_v51 = vrot.slane %v533_v38, %v549_v42 }
  0x89   : > { %1568 = vmatpush1.msra.mxu0 %v4111_v53  ;;  %1639 = vmatpush1.msra.mxu1 %v4116_v54 }
  0x8a   : > { %1569 = vmatprep.subr.mxu0 %v4123_v55  ;;  %1640 = vmatprep.subr.mxu1 %v4128_v56 }
  0x8b   : > { %1570 = vmatpush1.msra.mxu0 %v4135_v57  ;;  %1641 = vmatpush1.msra.mxu1 %v4140_v58 }
  0x8c   : > { %1571 = vmatprep.subr.mxu0 %v4147_v59  ;;  %1642 = vmatprep.subr.mxu1 %v4152_v60 }
  0x8d   : > { %1572 = vmatpush1.msra.mxu0 %v4161_v61  ;;  %1643 = vmatpush1.msra.mxu1 %v4166_v62  ;;  %v774_v62 = vld [vmem:[%s6247_s5] sm:$0xf] }
  0x8e   : > { %1573 = vmatprep.subr.mxu0 %v4176_v0  ;;  %1644 = vmatprep.subr.mxu1 %v4181_v1 }
  0x8f   : > { %1574 = vmatpush1.msra.mxu0 %v4188_v2  ;;  %1645 = vmatpush1.msra.mxu1 %v4193_v3 }
  0x90   : > { %1575 = vmatprep.subr.mxu0 %v4200_v4  ;;  %1646 = vmatprep.subr.mxu1 %v4205_v5 }
  0x91   : > { %1576 = vmatpush1.msra.mxu0 %v4214_v6  ;;  %1647 = vmatpush1.msra.mxu1 %v4219_v7  ;;  %v4827_v6 = vrot.slane %v774_v62, %v537_v36 }
  0x92   : > { %1577 = vmatprep.subr.mxu0 %v4229_v9  ;;  %1648 = vmatprep.subr.mxu1 %v4234_v11  ;;  %v4832_v9 = vrot.slane %v774_v62, %v545_v37 }
  0x93   : > { %1578 = vmatpush1.msra.mxu0 %v4241_v12  ;;  %1649 = vmatpush1.msra.mxu1 %v4246_v13 }
  0x94   : > { %1579 = vmatprep.subr.mxu0 %v4253_v14  ;;  %1650 = vmatprep.subr.mxu1 %v4258_v15  ;;  %v4836_v14 = vrot.slane %v774_v62, %v541_v41 }
  0x95   : > { %1580 = vmatpush1.msra.mxu0 %v4267_v16  ;;  %1651 = vmatpush1.msra.mxu1 %v6465_v19  ;;  %v4841_v16 = vrot.slane %v774_v62, %v549_v42 }
  0x96   : > { %1581 = vmatprep.subr.mxu0 %v6466_v22  ;;  %1652 = vmatprep.subr.mxu1 %v6467_v25 }
  0x97   : > { %1582 = vmatpush1.msra.mxu0 %v6468_v26  ;;  %1653 = vmatpush1.msra.mxu1 %v6469_v27 }
  0x98   : > { %1583 = vmatprep.subr.mxu0 %v6470_v28  ;;  %1654 = vmatprep.subr.mxu1 %v6471_v29 }
  0x99   : > { %1584 = vmatpush1.msra.mxu0 %v6472_v30  ;;  %1617 = vmatprep.mubr.f32.mxu0 %v6407_v21 }
  0x9a   : > { %1655 = vmatpush1.msra.mxu1 %v6473_v31  ;;  %1688 = vmatprep.mubr.f32.mxu1 %v6407_v21 }
  0x9b   : > { %1770 = vmatprep.subr.mxu0 %v6474_v32  ;;  %1841 = vmatprep.subr.mxu1 %v6475_v33 }
  0xe0   : > { %v4790_v39 = vpop.f32.mrf.mxu0  ;;  %v4792_v40 = vpop.f32.mrf.mxu1 }
  0xe2   : > { %v4794_v43 = vpop.f32.mrf.mxu0  ;;  %v4796_v44 = vpop.f32.mrf.mxu1 }
  0xe4   : > { %v640_v47 = vpop.f32.mrf.mxu0  ;;  %v729_v48 = vpop.f32.mrf.mxu1 }
  0xe5   : > { %v4800_v50 = vadd.f32 %v640_v47, %v538_v45  ;;  %v4805_v52 = vadd.f32 %v729_v48, %v4798_v46 }
  0xe6   : > { %v642_v53 = vpop.f32.mrf.mxu0  ;;  %v731_v54 = vpop.f32.mrf.mxu1 }
  0xe7   : > { %v4807_v55 = vadd.f32 %v642_v53, %v542_v49  ;;  %v4810_v56 = vadd.f32 %v731_v54, %v4802_v51 }
  0xe8   : > { %v646_v57 = vpop.f32.mrf.mxu0  ;;  %v735_v58 = vpop.f32.mrf.mxu1 }
  0xe9   : > { %v4812_v59 = vadd.f32 %v646_v57, %v538_v45  ;;  %v4815_v60 = vadd.f32 %v735_v58, %v4798_v46 }
  0xea   : > { %v648_v61 = vpop.f32.mrf.mxu0  ;;  %v737_v0 = vpop.f32.mrf.mxu1 }
  0xeb   : > { %6476 = vst [vmem:[#allocation6_spill] sm:$0xff] %v4812_v59  ;;  %6477 = vst [vmem:[#allocation7_spill] sm:$0xff] %v4815_v60  ;;  %v4820_v1 = vadd.f32 %v648_v61, %v542_v49  ;;  %v4823_v2 = vadd.f32 %v737_v0, %v4802_v51  ;;  %v635_v0 = vadd.f32 %v4790_v39, %v538_v45  ;;  %v5266_v60 = vld [vmem:[%s6248_s6 + $0x60] sm:$0xff]  ;;  %v5278_v59 = vld [vmem:[%s6248_s6 + $0x48] sm:$0xff] }
  0xec   : > { %v652_v3 = vpop.f32.mrf.mxu0  ;;  %v741_v4 = vpop.f32.mrf.mxu1  ;;  %v726_v39 = vadd.f32 %v4796_v44, %v4802_v51 }
  0xed   : > { %6478 = vst [vmem:[#allocation8_spill] sm:$0xff] %v4820_v1  ;;  %6479 = vst [vmem:[#allocation9_spill] sm:$0xff] %v4823_v2  ;;  %v4825_v5 = vadd.f32 %v652_v3, %v538_v45  ;;  %v4830_v7 = vadd.f32 %v741_v4, %v4798_v46  ;;  %v5259_v2 = vld [vmem:[%s6248_s6 + $0x78] sm:$0xff]  ;;  %v5271_v1 = vld [vmem:[%s6248_s6 + $0x70] sm:$0xff] }
  0xee   : > { %v654_v11 = vpop.f32.mrf.mxu0  ;;  %v743_v12 = vpop.f32.mrf.mxu1 }
  0xef   : > { %6480 = vst [vmem:[#allocation10_spill] sm:$0xff] %v4825_v5  ;;  %6481 = vst [vmem:[#allocation11_spill] sm:$0xff] %v4830_v7  ;;  %v4834_v13 = vadd.f32 %v654_v11, %v542_v49  ;;  %v4839_v15 = vadd.f32 %v743_v12, %v4802_v51  ;;  %v637_v11 = vadd.f32 %v4794_v43, %v542_v49  ;;  %v5218_v7 = vld [vmem:[%s6248_s6 + $0xa0] sm:$0xff]  ;;  %v5230_v5 = vld [vmem:[%s6248_s6 + $0x88] sm:$0xff] }
  0xf0   : > { %v874_v23 = vpop.f32.mrf.mxu0  ;;  %v963_v19 = vpop.f32.mrf.mxu1 }
  0xf1   : > { %6482 = vst [vmem:[#allocation12_spill] sm:$0xff] %v4834_v13  ;;  %6483 = vst [vmem:[#allocation13_spill] sm:$0xff] %v4839_v15  ;;  %v4844_v22 = vadd.f32 %v874_v23, %v4827_v6  ;;  %v4847_v25 = vadd.f32 %v963_v19, %v4832_v9  ;;  %v5211_v15 = vld [vmem:[%s6248_s6 + $0xb8] sm:$0xff]  ;;  %v5223_v13 = vld [vmem:[%s6248_s6 + $0xb0] sm:$0xff] }
  0xf2   : > { %v876_v26 = vpop.f32.mrf.mxu0  ;;  %v965_v27 = vpop.f32.mrf.mxu1 }
  0xf3   : > { %6484 = vst [vmem:[#allocation14_spill] sm:$0xff] %v4844_v22  ;;  %6485 = vst [vmem:[#allocation15_spill] sm:$0xff] %v4847_v25  ;;  %v4850_v28 = vadd.f32 %v876_v26, %v4836_v14  ;;  %v4853_v29 = vadd.f32 %v965_v27, %v4841_v16  ;;  %v5194_v25 = vld [vmem:[%s6248_s6 + $0xc0] sm:$0xff]  ;;  %v5206_v22 = vld [vmem:[%s6248_s6 + $0xa8] sm:$0xff] }
  0xf5   : > { %6486 = vst [vmem:[#allocation16_spill] sm:$0xff] %v4850_v28  ;;  %6487 = vst [vmem:[#allocation72_spill] sm:$0xff] %v4853_v29  ;;  %v5185_v29 = vld [vmem:[%s6248_s6 + $0xd8] sm:$0xff]  ;;  %v5199_v28 = vld [vmem:[%s6248_s6 + $0xd0] sm:$0xff] }
 0x105   : > { %v880_v30 = vpop.f32.mrf.mxu0  ;;  %v969_v31 = vpop.f32.mrf.mxu1 }
 0x106   : > { %v4856_v32 = vadd.f32 %v880_v30, %v4827_v6  ;;  %v4859_v33 = vadd.f32 %v969_v31, %v4832_v9  ;;  %v724_v30 = vadd.f32 %v4792_v40, %v4798_v46 }
 0x107   : > { %v882_v34 = vpop.f32.mrf.mxu0  ;;  %v971_v35 = vpop.f32.mrf.mxu1 }
 0x108   : > { %6488 = vst [vmem:[#allocation73_spill] sm:$0xff] %v4856_v32  ;;  %6489 = vst [vmem:[#allocation74_spill] sm:$0xff] %v4859_v33  ;;  %v4862_v36 = vadd.f32 %v882_v34, %v4836_v14  ;;  %v4865_v37 = vadd.f32 %v971_v35, %v4841_v16  ;;  %v5242_v33 = vld [vmem:[%s6248_s6 + $0x80] sm:$0xff]  ;;  %v5254_v32 = vld [vmem:[%s6248_s6 + $0x68] sm:$0xff] }
 0x10a   : > { %6490 = vst [vmem:[#allocation75_spill] sm:$0xff] %v4862_v36  ;;  %6491 = vst [vmem:[#allocation76_spill] sm:$0xff] %v4865_v37  ;;  %v5235_v37 = vld [vmem:[%s6248_s6 + $0x98] sm:$0xff]  ;;  %v5247_v36 = vld [vmem:[%s6248_s6 + $0x90] sm:$0xff] }
 0x10b   : > { %v886_v38 = vpop.f32.mrf.mxu0  ;;  %v975_v41 = vpop.f32.mrf.mxu1 }
 0x10c   : > { %v4868_v42 = vadd.f32 %v886_v38, %v4827_v6  ;;  %v4871_v47 = vadd.f32 %v975_v41, %v4832_v9 }
 0x10d   : > { %v888_v48 = vpop.f32.mrf.mxu0  ;;  %v977_v53 = vpop.f32.mrf.mxu1 }
 0x10e   : > { %v4874_v54 = vadd.f32 %v888_v48, %v4836_v14  ;;  %v4877_v57 = vadd.f32 %v977_v53, %v4841_v16 }
 0x111   : > { %v892_v58 = vpop.f32.mrf.mxu0  ;;  %v981_v61 = vpop.f32.mrf.mxu1 }
 0x112   : > { %v893_v44 = vadd.f32 %v892_v58, %v4827_v6 }
 0x113   : > { %v894_v62 = vpop.f32.mrf.mxu0  ;;  %v983_v3 = vpop.f32.mrf.mxu1 }
 0x117   : > { %v1146_v4 = vpop.f32.mrf.mxu0  ;;  %v1217_v27 = vpop.f32.mrf.mxu1 }
 0x118   : > { %v1222_v12 = vadd.f32 %v1146_v4, %v635_v0  ;;  %v1224_v34 = vadd.f32 %v1217_v27, %v724_v30  ;;  %v1004_v0 = vld [vmem:[#allocation2] sm:$0xff] }
 0x119   : > { %v1148_v23 = vpop.f32.mrf.mxu0  ;;  %v1219_v35 = vpop.f32.mrf.mxu1 }
 0x11a   : > { %v1443_v19 = vmul.f32 0.5, %v1222_v12  ;;  %v1223_v26 = vadd.f32 %v1148_v23, %v637_v11  ;;  %v1225_v45 = vadd.f32 %v1219_v35, %v726_v39  ;;  %v982_v39 = vadd.f32 %v981_v61, %v4832_v9  ;;  %v6494_v9 = vld [vmem:[#allocation19_spill] sm:$0xff]  ;;  %v6495_v61 = vld [vmem:[#allocation20_spill] sm:$0xff] }
 0x11b   : > { %6549 = vst [vmem:[#allocation19_spill] sm:$0xff] %v5199_v28  ;;  %6550 = vst [vmem:[#allocation20_spill] sm:$0xff] %v5206_v22 }
 0x11c   : > { %3655 = vtanh.f32 %v1443_v19  ;;  %v1447_v31 = vmul.f32 0.5, %v1223_v26  ;;  %v1452_v38 = vmul.f32 0.5, %v1225_v45  ;;  %v895_v19 = vadd.f32 %v894_v62, %v4836_v14  ;;  %v6492_v14 = vld [vmem:[#allocation17_spill] sm:$0xff]  ;;  %v6493_v62 = vld [vmem:[#allocation18_spill] sm:$0xff] }
 0x11d   : > { %6547 = vst [vmem:[#allocation17_spill] sm:$0xff] %v5185_v29  ;;  %6548 = vst [vmem:[#allocation18_spill] sm:$0xff] %v5194_v25 }
 0x11e   : > { %3657 = vtanh.f32 %v1447_v31 }
 0x11f   : > { %3659 = vtanh.f32 %v1224_v34 }
 0x120   : > { %3661 = vtanh.f32 %v1452_v38 }
 0x129   : > { %v3656_v43 = vpop.eup %3655 }
 0x12a   : > { %v1445_v49 = vmul.f32 0.5, %v3656_v43 }
 0x12b   : > { %v3658_v41 = vpop.eup %3657 }
 0x12c   : > { %v1446_v48 = vadd.f32 0.5, %v1445_v49  ;;  %v1449_v53 = vmul.f32 0.5, %v3658_v41  ;;  %v3660_v40 = vpop.eup %3659  ;;  %v984_v41 = vadd.f32 %v983_v3, %v4841_v16  ;;  %v6499_v16 = vld [vmem:[#allocation24_spill] sm:$0xff]  ;;  %v6500_v3 = vld [vmem:[#allocation25_spill] sm:$0xff] }
 0x12d   : > { %v3662_v51 = vpop.eup %3661  ;;  %6554 = vst [vmem:[#allocation24_spill] sm:$0xff] %v5230_v5  ;;  %6555 = vst [vmem:[#allocation25_spill] sm:$0xff] %v5235_v37 }
 0x12e   : > { %v1450_v4 = vadd.f32 0.5, %v1449_v53  ;;  %v1457_v11 = vmul.f32 %v3660_v40, %v1446_v48  ;;  %v1454_v30 = vmul.f32 0.5, %v3662_v51  ;;  %v6496_v53 = vld [vmem:[#allocation21_spill] sm:$0xff]  ;;  %v6501_v40 = vld [vmem:[#allocation26_spill] sm:$0xff] }
 0x12f   : > { %6551 = vst [vmem:[#allocation21_spill] sm:$0xff] %v5211_v15  ;;  %6556 = vst [vmem:[#allocation26_spill] sm:$0xff] %v5242_v33 }
 0x130   : > { %v1456_v46 = vmul.f32 %v1450_v4, %v1004_v0  ;;  %v1455_v38 = vadd.f32 0.5, %v1454_v30  ;;  %v6497_v0 = vld [vmem:[#allocation22_spill] sm:$0xff]  ;;  %v6498_v4 = vld [vmem:[#allocation23_spill] sm:$0xff]  ;;  %v6507_v30 = vld [vmem:[#allocation32_spill] sm:$0xff] }
 0x131   : > { %6552 = vst [vmem:[#allocation22_spill] sm:$0xff] %v5218_v7  ;;  %6553 = vst [vmem:[#allocation23_spill] sm:$0xff] %v5223_v13 }
 0x132   : > { %v4885_v12 = vadd.f32 %v1457_v11, %v1456_v46  ;;  %v6502_v11 = vld [vmem:[#allocation27_spill] sm:$0xff]  ;;  %6562 = vst [vmem:[#allocation32_spill] sm:$0xff] %v5278_v59 }
 0x133   : > { %6557 = vst [vmem:[#allocation27_spill] sm:$0xff] %v5247_v36 }
 0x134   : > { %3663 = vtanh.f32 %v4885_v12 }
 0x139   : > { %v1363_v23 = vpop.f32.mrf.mxu0  ;;  %v1434_v35 = vpop.f32.mrf.mxu1 }
 0x13a   : > { %v1439_v26 = vadd.f32 %v1363_v23, %v893_v44  ;;  %v1441_v43 = vadd.f32 %v1434_v35, %v982_v39  ;;  %v6503_v44 = vld [vmem:[#allocation28_spill] sm:$0xff]  ;;  %v6504_v23 = vld [vmem:[#allocation29_spill] sm:$0xff]  ;;  %v6509_v35 = vld [vmem:[#allocation34_spill] sm:$0xff] }
 0x13b   : > { %v1365_v27 = vpop.f32.mrf.mxu0  ;;  %v1436_v58 = vpop.f32.mrf.mxu1  ;;  %6558 = vst [vmem:[#allocation28_spill] sm:$0xff] %v5254_v32  ;;  %6559 = vst [vmem:[#allocation29_spill] sm:$0xff] %v5259_v2 }
 0x13c   : > { %v1461_v31 = vmul.f32 0.5, %v1439_v26  ;;  %v1440_v34 = vadd.f32 %v1365_v27, %v895_v19  ;;  %v1442_v48 = vadd.f32 %v1436_v58, %v984_v41  ;;  %v6505_v19 = vld [vmem:[#allocation30_spill] sm:$0xff]  ;;  %v6506_v27 = vld [vmem:[#allocation31_spill] sm:$0xff] }
 0x13d   : > { %v6513_v58 = vld [vmem:[#allocation38_spill] sm:$0xff]  ;;  %6560 = vst [vmem:[#allocation30_spill] sm:$0xff] %v5266_v60  ;;  %6561 = vst [vmem:[#allocation31_spill] sm:$0xff] %v5271_v1 }
 0x13e   : > { %3665 = vtanh.f32 %v1461_v31  ;;  %v1465_v45 = vmul.f32 0.5, %v1440_v34  ;;  %v1470_v46 = vmul.f32 0.5, %v1442_v48  ;;  %v6508_v34 = vld [vmem:[#allocation33_spill] sm:$0xff] }
 0x140   : > { %3667 = vtanh.f32 %v1465_v45 }
 0x141   : > { %v3664_v49 = vpop.eup %3663  ;;  %3669 = vtanh.f32 %v1441_v43  ;;  %v6511_v43 = vld [vmem:[#allocation36_spill] sm:$0xff] }
 0x142   : > { %v1460_v6 = vmul.f32 %v3664_v49, %v1455_v38  ;;  %3671 = vtanh.f32 %v1470_v46  ;;  %v6510_v38 = vld [vmem:[#allocation35_spill] sm:$0xff] }
 0x143   : > { %v1008_v49 = vld [vmem:[#allocation2 + $0x8] sm:$0xff] }
 0x144   : > { %1479 = vst [vmem:[%s3851_s28] sm:$0xff] %v1460_v6  ;;  %1618 = vmatmul.mubr.f32.vlgmr.msra.gmra.mxu0 %v1460_v6  ;;  %1689 = vmatmul.mubr.f32.vlgmr.msra.gmra.mxu1 %v1460_v6  ;;  %v6512_v6 = vld [vmem:[#allocation37_spill] sm:$0xff] }
 0x145   : > { %1771 = vmatpush1.msra.mxu0 %v6492_v14  ;;  %1842 = vmatpush1.msra.mxu1 %v6493_v62  ;;  %v6514_v14 = vld [vmem:[#allocation39_spill] sm:$0xff]  ;;  %v6515_v62 = vld [vmem:[#allocation40_spill] sm:$0xff] }
 0x146   : > { %1772 = vmatprep.subr.mxu0 %v6494_v9  ;;  %1843 = vmatprep.subr.mxu1 %v6495_v61  ;;  %v6516_v9 = vld [vmem:[#allocation41_spill] sm:$0xff]  ;;  %v6517_v61 = vld [vmem:[#allocation42_spill] sm:$0xff] }
 0x147   : > { %1773 = vmatpush1.msra.mxu0 %v6496_v53  ;;  %1844 = vmatpush1.msra.mxu1 %v6497_v0 }
 0x148   : > { %1774 = vmatprep.subr.mxu0 %v6498_v4  ;;  %1845 = vmatprep.subr.mxu1 %v6499_v16  ;;  %v6518_v4 = vld [vmem:[#allocation43_spill] sm:$0xff]  ;;  %v6519_v16 = vld [vmem:[#allocation44_spill] sm:$0xff] }
 0x149   : > { %1775 = vmatpush1.msra.mxu0 %v6500_v3  ;;  %1846 = vmatpush1.msra.mxu1 %v6501_v40  ;;  %v6520_v3 = vld [vmem:[#allocation45_spill] sm:$0xff]  ;;  %v6521_v40 = vld [vmem:[#allocation46_spill] sm:$0xff] }
 0x14a   : > { %1776 = vmatprep.subr.mxu0 %v6502_v11  ;;  %1847 = vmatprep.subr.mxu1 %v6503_v44  ;;  %v6522_v11 = vld [vmem:[#allocation47_spill] sm:$0xff]  ;;  %v6523_v44 = vld [vmem:[#allocation48_spill] sm:$0xff] }
 0x14b   : > { %v3666_v51 = vpop.eup %3665  ;;  %1777 = vmatpush1.msra.mxu0 %v6504_v23  ;;  %1848 = vmatpush1.msra.mxu1 %v6505_v19  ;;  %v6525_v23 = vld [vmem:[#allocation50_spill] sm:$0xff]  ;;  %v6526_v19 = vld [vmem:[#allocation51_spill] sm:$0xff] }
 0x14c   : > { %v1463_v26 = vmul.f32 0.5, %v3666_v51  ;;  %1778 = vmatprep.subr.mxu0 %v6506_v27  ;;  %1849 = vmatprep.subr.mxu1 %v6507_v30  ;;  %v6524_v51 = vld [vmem:[#allocation49_spill] sm:$0xff]  ;;  %v6529_v30 = vld [vmem:[#allocation54_spill] sm:$0xff] }
 0x14d   : > { %v3668_v31 = vpop.eup %3667  ;;  %1779 = vmatpush1.msra.mxu0 %v6508_v34  ;;  %1850 = vmatpush1.msra.mxu1 %v6509_v35  ;;  %v6528_v27 = vld [vmem:[#allocation53_spill] sm:$0xff]  ;;  %v6531_v34 = vld [vmem:[#allocation56_spill] sm:$0xff] }
 0x14e   : > { %v1464_v39 = vadd.f32 0.5, %v1463_v26  ;;  %v1467_v45 = vmul.f32 0.5, %v3668_v31  ;;  %1780 = vmatprep.subr.mxu0 %v6510_v38  ;;  %1851 = vmatprep.subr.mxu1 %v6511_v43  ;;  %v3670_v48 = vpop.eup %3669  ;;  %v6527_v26 = vld [vmem:[#allocation52_spill] sm:$0xff]  ;;  %v6530_v31 = vld [vmem:[#allocation55_spill] sm:$0xff]  ;;  %v6532_v35 = vld [vmem:[#allocation57_spill] sm:$0xff] }
 0x14f   : > { %1781 = vmatpush1.msra.mxu0 %v6512_v6  ;;  %1852 = vmatpush1.msra.mxu1 %v6513_v58  ;;  %v6535_v38 = vld [vmem:[#allocation60_spill] sm:$0xff]  ;;  %v3672_v43 = vpop.eup %3671  ;;  %v6537_v6 = vld [vmem:[#allocation62_spill] sm:$0xff]  ;;  %v6538_v58 = vld [vmem:[#allocation63_spill] sm:$0xff] }
 0x150   : > { %v1468_v41 = vadd.f32 0.5, %v1467_v45  ;;  %1782 = vmatprep.subr.mxu0 %v6514_v14  ;;  %1853 = vmatprep.subr.mxu1 %v6515_v62  ;;  %v1475_v0 = vmul.f32 %v3670_v48, %v1464_v39  ;;  %v6533_v39 = vld [vmem:[#allocation58_spill] sm:$0xff]  ;;  %v6534_v45 = vld [vmem:[#allocation59_spill] sm:$0xff]  ;;  %v6540_v14 = vld [vmem:[#allocation65_spill] sm:$0xff]  ;;  %v1472_v48 = vmul.f32 0.5, %v3672_v43 }
 0x151   : > { %1783 = vmatpush1.msra.mxu0 %v6516_v9  ;;  %1854 = vmatpush1.msra.mxu1 %v6517_v61  ;;  %v6541_v62 = vld [vmem:[#allocation66_spill] sm:$0xff]  ;;  %v6542_v9 = vld [vmem:[#allocation67_spill] sm:$0xff]  ;;  %v6543_v61 = vld [vmem:[#allocation68_spill] sm:$0xff] }
 0x152   : > { %v1474_v53 = vmul.f32 %v1468_v41, %v1008_v49  ;;  %1784 = vmatprep.subr.mxu0 %v6518_v4  ;;  %1855 = vmatprep.subr.mxu1 %v6519_v16  ;;  %v6536_v49 = vld [vmem:[#allocation61_spill] sm:$0xff]  ;;  %v6539_v41 = vld [vmem:[#allocation64_spill] sm:$0xff]  ;;  %v6546_v4 = vld [vmem:[#allocation71_spill] sm:$0xff]  ;;  %v1473_v16 = vadd.f32 0.5, %v1472_v48 }
 0x153   : > { %1785 = vmatpush1.msra.mxu0 %v6520_v3  ;;  %1856 = vmatpush1.msra.mxu1 %v6521_v40  ;;  %v5091_v43 = vld [vmem:[%s6248_s6 + $0x158] sm:$0xff]  ;;  %v5134_v48 = vld [vmem:[%s6248_s6 + $0x108] sm:$0xff] }
 0x154   : > { %v4923_v46 = vadd.f32 %v1475_v0, %v1474_v53  ;;  %1786 = vmatprep.subr.mxu0 %v6522_v11  ;;  %1857 = vmatprep.subr.mxu1 %v6523_v44  ;;  %v6544_v53 = vld [vmem:[#allocation69_spill] sm:$0xff]  ;;  %v6545_v0 = vld [vmem:[#allocation70_spill] sm:$0xff]  ;;  %v5007_v11 = vld [vmem:[%s6248_s6 + $0x1d0] sm:$0xff] }
 0x155   : > { %1787 = vmatpush1.msra.mxu0 %v6524_v51  ;;  %1858 = vmatpush1.msra.mxu1 %v6525_v23  ;;  %v5014_v44 = vld [vmem:[%s6248_s6 + $0x1a8] sm:$0xff]  ;;  %v5019_v51 = vld [vmem:[%s6248_s6 + $0x1b8] sm:$0xff]  ;;  %v5026_v23 = vld [vmem:[%s6248_s6 + $0x1a0] sm:$0xff] }
 0x156   : > { %3673 = vtanh.f32 %v4923_v46  ;;  %1788 = vmatprep.subr.mxu0 %v6526_v19  ;;  %1859 = vmatprep.subr.mxu1 %v6527_v26  ;;  %v5031_v19 = vld [vmem:[%s6248_s6 + $0x1b0] sm:$0xff]  ;;  %v5038_v26 = vld [vmem:[%s6248_s6 + $0x188] sm:$0xff] }
 0x157   : > { %1789 = vmatpush1.msra.mxu0 %v6528_v27  ;;  %1860 = vmatpush1.msra.mxu1 %v6529_v30  ;;  %v5043_v27 = vld [vmem:[%s6248_s6 + $0x198] sm:$0xff]  ;;  %v5050_v30 = vld [vmem:[%s6248_s6 + $0x180] sm:$0xff] }
 0x158   : > { %1790 = vmatprep.subr.mxu0 %v6530_v31  ;;  %1861 = vmatprep.subr.mxu1 %v6531_v34  ;;  %v5055_v31 = vld [vmem:[%s6248_s6 + $0x190] sm:$0xff]  ;;  %v5062_v34 = vld [vmem:[%s6248_s6 + $0x168] sm:$0xff] }
 0x159   : > { %1791 = vmatpush1.msra.mxu0 %v6532_v35  ;;  %1862 = vmatpush1.msra.mxu1 %v6533_v39  ;;  %v5067_v35 = vld [vmem:[%s6248_s6 + $0x178] sm:$0xff]  ;;  %v5074_v39 = vld [vmem:[%s6248_s6 + $0x160] sm:$0xff] }
 0x15a   : > { %1792 = vmatprep.subr.mxu0 %v6534_v45  ;;  %1863 = vmatprep.subr.mxu1 %v6535_v38  ;;  %v5079_v45 = vld [vmem:[%s6248_s6 + $0x170] sm:$0xff]  ;;  %v5086_v38 = vld [vmem:[%s6248_s6 + $0x148] sm:$0xff] }
 0x15b   : > { %1793 = vmatpush1.msra.mxu0 %v6536_v49  ;;  %1864 = vmatpush1.msra.mxu1 %v6537_v6  ;;  %v5098_v49 = vld [vmem:[%s6248_s6 + $0x140] sm:$0xff]  ;;  %v5103_v6 = vld [vmem:[%s6248_s6 + $0x150] sm:$0xff] }
 0x15c   : > { %1794 = vmatprep.subr.mxu0 %v6538_v58  ;;  %1865 = vmatprep.subr.mxu1 %v6539_v41  ;;  %v5110_v58 = vld [vmem:[%s6248_s6 + $0x128] sm:$0xff]  ;;  %v5115_v41 = vld [vmem:[%s6248_s6 + $0x138] sm:$0xff] }
 0x15d   : > { %1795 = vmatpush1.msra.mxu0 %v6540_v14  ;;  %1866 = vmatpush1.msra.mxu1 %v6541_v62  ;;  %v5122_v14 = vld [vmem:[%s6248_s6 + $0x120] sm:$0xff]  ;;  %v5127_v62 = vld [vmem:[%s6248_s6 + $0x130] sm:$0xff] }
 0x15e   : > { %1796 = vmatprep.subr.mxu0 %v6542_v9  ;;  %1867 = vmatprep.subr.mxu1 %v6543_v61  ;;  %v5139_v9 = vld [vmem:[%s6248_s6 + $0x118] sm:$0xff]  ;;  %v5144_v61 = vld [vmem:[%s6248_s6 + $0x100] sm:$0xff] }
 0x15f   : > { %1797 = vmatpush1.msra.mxu0 %v6544_v53  ;;  %1868 = vmatpush1.msra.mxu1 %v6545_v0  ;;  %v5151_v53 = vld [vmem:[%s6248_s6 + $0x110] sm:$0xff]  ;;  %v5156_v0 = vld [vmem:[%s6248_s6 + $0xe8] sm:$0xff] }
 0x160   : > { %1798 = vmatprep.subr.mxu0 %v6546_v4  ;;  %1869 = vmatprep.subr.mxu1 %v4673_v24  ;;  %v4978_v24 = vld [vmem:[%s6248_s6 + $0x1e0] sm:$0xff]  ;;  %v5161_v4 = vld [vmem:[%s6248_s6 + $0xf8] sm:$0xff] }
 0x161   : > { %1799 = vmatpush1.msra.mxu0 %v4680_v10  ;;  %1870 = vmatpush1.msra.mxu1 %v4685_v8  ;;  %v4966_v10 = vld [vmem:[%s6248_s6 + $0x1e8] sm:$0xff] }
 0x162   : > { %1800 = vmatprep.subr.mxu0 %v4692_v63  ;;  %1871 = vmatprep.subr.mxu1 %v4697_v18  ;;  %v4983_v63 = vld [vmem:[%s6248_s6 + $0x1f0] sm:$0xff]  ;;  %v4990_v8 = vld [vmem:[%s6248_s6 + $0x1c8] sm:$0xff]  ;;  %v4995_v18 = vld [vmem:[%s6248_s6 + $0x1d8] sm:$0xff] }
 0x163   : > { %v3674_v3 = vpop.eup %3673  ;;  %1801 = vmatpush1.msra.mxu0 %v4704_v17  ;;  %1834 = vmatprep.mubr.f32.mxu0 %v6407_v21  ;;  %v4971_v17 = vld [vmem:[%s6248_s6 + $0x1f8] sm:$0xff] }
 0x164   : > { %1872 = vmatpush1.msra.mxu1 %v4711_v20  ;;  %1905 = vmatprep.mubr.f32.mxu1 %v6407_v21  ;;  %v1478_v40 = vmul.f32 %v3674_v3, %v1473_v16  ;;  %v5002_v20 = vld [vmem:[%s6248_s6 + $0x1c0] sm:$0xff]  ;;  %v5173_v3 = vld [vmem:[%s6248_s6 + $0xf0] sm:$0xff] }
 0x165   : > { %2026 = vmatprep.subr.mxu0 %v4966_v10  ;;  %2097 = vmatprep.subr.mxu1 %v4971_v17  ;;  %v5168_v16 = vld [vmem:[%s6248_s6 + $0xe0] sm:$0xff] }
 0x166   : > { %3424 = vst [vmem:[%s3856_s15 + $0x18] sm:$0xff] %v1478_v40  ;;  %1835 = vmatmul.mubr.f32.vlgmr.msra.gmra.mxu0 %v1478_v40  ;;  %1906 = vmatmul.mubr.f32.vlgmr.msra.gmra.mxu1 %v1478_v40  ;;  %v5178_v40 = vld [vmem:[%s6248_s6 + $0xc8] sm:$0xff] }
 0x167   : > { %2090 = vmatprep.mubr.f32.mxu0 %v6407_v21  ;;  %2161 = vmatprep.mubr.f32.mxu1 %v6407_v21 }
 0x168   : > { %2027 = vmatpush1.msra.mxu0 %v4978_v24  ;;  %2098 = vmatpush1.msra.mxu1 %v4983_v63 }
 0x169   : > { %2028 = vmatprep.subr.mxu0 %v4990_v8  ;;  %2099 = vmatprep.subr.mxu1 %v4995_v18 }
 0x16a   : > { %2029 = vmatpush1.msra.mxu0 %v5002_v20  ;;  %2100 = vmatpush1.msra.mxu1 %v5007_v11 }
 0x16b   : > { %2030 = vmatprep.subr.mxu0 %v5014_v44  ;;  %2101 = vmatprep.subr.mxu1 %v5019_v51 }
 0x16c   : > { %2031 = vmatpush1.msra.mxu0 %v5026_v23  ;;  %2102 = vmatpush1.msra.mxu1 %v5031_v19 }
 0x16d   : > { %2032 = vmatprep.subr.mxu0 %v5038_v26  ;;  %2103 = vmatprep.subr.mxu1 %v5043_v27 }
 0x16e   : > { %2033 = vmatpush1.msra.mxu0 %v5050_v30  ;;  %2104 = vmatpush1.msra.mxu1 %v5055_v31 }
 0x16f   : > { %2034 = vmatprep.subr.mxu0 %v5062_v34  ;;  %2105 = vmatprep.subr.mxu1 %v5067_v35 }
 0x170   : > { %2035 = vmatpush1.msra.mxu0 %v5074_v39  ;;  %2106 = vmatpush1.msra.mxu1 %v5079_v45 }
 0x171   : > { %2036 = vmatprep.subr.mxu0 %v5086_v38  ;;  %2107 = vmatprep.subr.mxu1 %v5091_v43 }
 0x172   : > { %2037 = vmatpush1.msra.mxu0 %v5098_v49  ;;  %2108 = vmatpush1.msra.mxu1 %v5103_v6 }
 0x173   : > { %2038 = vmatprep.subr.mxu0 %v5110_v58  ;;  %2109 = vmatprep.subr.mxu1 %v5115_v41 }
 0x174   : > { %2039 = vmatpush1.msra.mxu0 %v5122_v14  ;;  %2110 = vmatpush1.msra.mxu1 %v5127_v62 }
 0x175   : > { %2040 = vmatprep.subr.mxu0 %v5134_v48  ;;  %2111 = vmatprep.subr.mxu1 %v5139_v9 }
 0x176   : > { %2041 = vmatpush1.msra.mxu0 %v5144_v61  ;;  %2112 = vmatpush1.msra.mxu1 %v5151_v53 }
 0x177   : > { %2042 = vmatprep.subr.mxu0 %v5156_v0  ;;  %2113 = vmatprep.subr.mxu1 %v5161_v4 }
 0x178   : > { %2043 = vmatpush1.msra.mxu0 %v5168_v16  ;;  %2114 = vmatpush1.msra.mxu1 %v5173_v3 }
 0x179   : > { %2044 = vmatprep.subr.mxu0 %v5178_v40  ;;  %2115 = vmatprep.subr.mxu1 %v5185_v29 }
 0x17a   : > { %2045 = vmatpush1.msra.mxu0 %v5194_v25  ;;  %2116 = vmatpush1.msra.mxu1 %v5199_v28 }
 0x17b   : > { %2046 = vmatprep.subr.mxu0 %v5206_v22  ;;  %2117 = vmatprep.subr.mxu1 %v5211_v15 }
 0x17c   : > { %2047 = vmatpush1.msra.mxu0 %v5218_v7  ;;  %2118 = vmatpush1.msra.mxu1 %v5223_v13 }
 0x17d   : > { %2048 = vmatprep.subr.mxu0 %v5230_v5  ;;  %2119 = vmatprep.subr.mxu1 %v5235_v37 }
 0x17e   : > { %2049 = vmatpush1.msra.mxu0 %v5242_v33  ;;  %2120 = vmatpush1.msra.mxu1 %v5247_v36 }
 0x17f   : > { %2050 = vmatprep.subr.mxu0 %v5254_v32  ;;  %2121 = vmatprep.subr.mxu1 %v5259_v2  ;;  %v5283_v2 = vld [vmem:[%s6248_s6 + $0x58] sm:$0xff] }
 0x180   : > { %2051 = vmatpush1.msra.mxu0 %v5266_v60  ;;  %2122 = vmatpush1.msra.mxu1 %v5271_v1  ;;  %6563 = vst [vmem:[#allocation33_spill] sm:$0xff] %v5283_v2  ;;  %v5290_v60 = vld [vmem:[%s6248_s6 + $0x40] sm:$0xff]  ;;  %v5295_v1 = vld [vmem:[%s6248_s6 + $0x50] sm:$0xff] }
 0x181   : > { %2052 = vmatprep.subr.mxu0 %v5278_v59  ;;  %2123 = vmatprep.subr.mxu1 %v5283_v2  ;;  %6564 = vst [vmem:[#allocation34_spill] sm:$0xff] %v5290_v60  ;;  %6565 = vst [vmem:[#allocation35_spill] sm:$0xff] %v5295_v1  ;;  %v5302_v59 = vld [vmem:[%s6248_s6 + $0x28] sm:$0xff]  ;;  %v5307_v2 = vld [vmem:[%s6248_s6 + $0x38] sm:$0xff] }
 0x182   : > { %2053 = vmatpush1.msra.mxu0 %v5290_v60  ;;  %2124 = vmatpush1.msra.mxu1 %v5295_v1  ;;  %6566 = vst [vmem:[#allocation36_spill] sm:$0xff] %v5302_v59  ;;  %6567 = vst [vmem:[#allocation37_spill] sm:$0xff] %v5307_v2  ;;  %v5314_v60 = vld [vmem:[%s6248_s6 + $0x20] sm:$0xff]  ;;  %v5319_v1 = vld [vmem:[%s6248_s6 + $0x30] sm:$0xff] }
 0x183   : > { %2054 = vmatprep.subr.mxu0 %v5302_v59  ;;  %2125 = vmatprep.subr.mxu1 %v5307_v2  ;;  %6568 = vst [vmem:[#allocation38_spill] sm:$0xff] %v5314_v60  ;;  %6569 = vst [vmem:[#allocation39_spill] sm:$0xff] %v5319_v1  ;;  %v5326_v59 = vld [vmem:[%s6248_s6 + $0x8] sm:$0xff]  ;;  %v5331_v2 = vld [vmem:[%s6248_s6 + $0x18] sm:$0xff] }
 0x184   : > { %2055 = vmatpush1.msra.mxu0 %v5314_v60  ;;  %2126 = vmatpush1.msra.mxu1 %v5319_v1  ;;  %6570 = vst [vmem:[#allocation40_spill] sm:$0xff] %v5326_v59  ;;  %6571 = vst [vmem:[#allocation41_spill] sm:$0xff] %v5331_v2  ;;  %v5338_v60 = vld [vmem:[%s6248_s6] sm:$0xff]  ;;  %v5343_v1 = vld [vmem:[%s6248_s6 + $0x10] sm:$0xff] }
 0x185   : > { %2056 = vmatprep.subr.mxu0 %v5326_v59  ;;  %2127 = vmatprep.subr.mxu1 %v5331_v2  ;;  %6572 = vst [vmem:[#allocation42_spill] sm:$0xff] %v5338_v60  ;;  %6573 = vst [vmem:[#allocation43_spill] sm:$0xff] %v5343_v1  ;;  %v5350_v59 = vld [vmem:[%s6249_s7 + $0x1e8] sm:$0xff]  ;;  %v5355_v2 = vld [vmem:[%s6249_s7 + $0x1f8] sm:$0xff] }
 0x186   : > { %2057 = vmatpush1.msra.mxu0 %v5338_v60  ;;  %2128 = vmatpush1.msra.mxu1 %v5343_v1  ;;  %6574 = vst [vmem:[#allocation44_spill] sm:$0xff] %v5350_v59  ;;  %6575 = vst [vmem:[#allocation45_spill] sm:$0xff] %v5355_v2 }
 0x187   : > { %2242 = vmatprep.subr.mxu0 %v5350_v59  ;;  %2313 = vmatprep.subr.mxu1 %v5355_v2 }
 0x204   : > { %v1619_v32 = vpop.f32.mrf.mxu0  ;;  %v1690_v60 = vpop.f32.mrf.mxu1 }
 0x205   : > { %v1695_v36 = vadd.f32 %v1619_v32, %v4800_v50  ;;  %v1697_v5 = vadd.f32 %v1690_v60, %v4805_v52 }
 0x206   : > { %v1621_v33 = vpop.f32.mrf.mxu0  ;;  %v1692_v7 = vpop.f32.mrf.mxu1 }
 0x207   : > { %v1916_v1 = vmul.f32 0.5, %v1695_v36  ;;  %v1696_v37 = vadd.f32 %v1621_v33, %v4807_v55  ;;  %v1698_v15 = vadd.f32 %v1692_v7, %v4810_v56  ;;  %v5373_v33 = vld [vmem:[%s6249_s7 + $0x1e0] sm:$0xff] }
 0x209   : > { %3675 = vtanh.f32 %v1916_v1  ;;  %v1920_v13 = vmul.f32 0.5, %v1696_v37  ;;  %v1925_v59 = vmul.f32 0.5, %v1698_v15  ;;  %v5378_v37 = vld [vmem:[%s6249_s7 + $0x1f0] sm:$0xff] }
 0x20b   : > { %3677 = vtanh.f32 %v1920_v13 }
 0x20c   : > { %3679 = vtanh.f32 %v1697_v5 }
 0x20d   : > { %3681 = vtanh.f32 %v1925_v59 }
 0x216   : > { %v3676_v22 = vpop.eup %3675 }
 0x217   : > { %v1918_v2 = vmul.f32 0.5, %v3676_v22 }
 0x218   : > { %v3678_v28 = vpop.eup %3677 }
 0x219   : > { %v1919_v25 = vadd.f32 0.5, %v1918_v2  ;;  %v1922_v50 = vmul.f32 0.5, %v3678_v28  ;;  %v3680_v32 = vpop.eup %3679 }
 0x21a   : > { %v3682_v52 = vpop.eup %3681 }
 0x21b   : > { %v1923_v36 = vadd.f32 0.5, %v1922_v50  ;;  %v1930_v29 = vmul.f32 %v3680_v32, %v1919_v25  ;;  %v1927_v13 = vmul.f32 0.5, %v3682_v52  ;;  %v5399_v50 = vld [vmem:[%s6249_s7 + $0x1d0] sm:$0xff]  ;;  %v5406_v32 = vld [vmem:[%s6249_s7 + $0x1a8] sm:$0xff]  ;;  %v5419_v52 = vld [vmem:[%s6249_s7 + $0x1a0] sm:$0xff] }
 0x21d   : > { %v1929_v55 = vmul.f32 %v1923_v36, %v4885_v12  ;;  %v1928_v25 = vadd.f32 0.5, %v1927_v13  ;;  %v5394_v12 = vld [vmem:[%s6249_s7 + $0x1c0] sm:$0xff]  ;;  %v5411_v36 = vld [vmem:[%s6249_s7 + $0x1b8] sm:$0xff]  ;;  %v5455_v13 = vld [vmem:[%s6249_s7 + $0x168] sm:$0xff] }
 0x21e   : > { %6580 = vst [vmem:[#allocation50_spill] sm:$0xff] %v5455_v13 }
 0x21f   : > { %v5364_v1 = vadd.f32 %v1930_v29, %v1929_v55 }
 0x221   : > { %3683 = vtanh.f32 %v5364_v1 }
 0x226   : > { %v1836_v60 = vpop.f32.mrf.mxu0  ;;  %v1907_v5 = vpop.f32.mrf.mxu1 }
 0x227   : > { %v1912_v56 = vadd.f32 %v1836_v60, %v4868_v42  ;;  %v1914_v2 = vadd.f32 %v1907_v5, %v4871_v47  ;;  %v5383_v47 = vld [vmem:[%s6249_s7 + $0x1c8] sm:$0xff]  ;;  %v5424_v60 = vld [vmem:[%s6249_s7 + $0x1b0] sm:$0xff]  ;;  %v5443_v5 = vld [vmem:[%s6249_s7 + $0x180] sm:$0xff] }
 0x228   : > { %v1838_v7 = vpop.f32.mrf.mxu0  ;;  %v1909_v42 = vpop.f32.mrf.mxu1  ;;  %6578 = vst [vmem:[#allocation48_spill] sm:$0xff] %v5443_v5 }
 0x229   : > { %v1934_v15 = vmul.f32 0.5, %v1912_v56  ;;  %v1913_v59 = vadd.f32 %v1838_v7, %v4874_v54  ;;  %v5388_v54 = vld [vmem:[%s6249_s7 + $0x1d8] sm:$0xff]  ;;  %v1915_v55 = vadd.f32 %v1909_v42, %v4877_v57  ;;  %v5431_v57 = vld [vmem:[%s6249_s7 + $0x188] sm:$0xff]  ;;  %v5448_v7 = vld [vmem:[%s6249_s7 + $0x190] sm:$0xff] }
 0x22a   : > { %6576 = vst [vmem:[#allocation46_spill] sm:$0xff] %v5431_v57  ;;  %v5436_v56 = vld [vmem:[%s6249_s7 + $0x198] sm:$0xff]  ;;  %6579 = vst [vmem:[#allocation49_spill] sm:$0xff] %v5448_v7 }
 0x22b   : > { %3685 = vtanh.f32 %v1934_v15  ;;  %v1938_v22 = vmul.f32 0.5, %v1913_v59  ;;  %6577 = vst [vmem:[#allocation47_spill] sm:$0xff] %v5436_v56  ;;  %v5460_v15 = vld [vmem:[%s6249_s7 + $0x178] sm:$0xff]  ;;  %v1943_v59 = vmul.f32 0.5, %v1915_v55  ;;  %v5491_v55 = vld [vmem:[%s6249_s7 + $0x140] sm:$0xff] }
 0x22c   : > { %6581 = vst [vmem:[#allocation51_spill] sm:$0xff] %v5460_v15  ;;  %6585 = vst [vmem:[#allocation55_spill] sm:$0xff] %v5491_v55 }
 0x22d   : > { %3687 = vtanh.f32 %v1938_v22  ;;  %v5472_v22 = vld [vmem:[%s6249_s7 + $0x170] sm:$0xff] }
 0x22e   : > { %v3684_v28 = vpop.eup %3683  ;;  %3689 = vtanh.f32 %v1914_v2  ;;  %v5467_v2 = vld [vmem:[%s6249_s7 + $0x160] sm:$0xff]  ;;  %6583 = vst [vmem:[#allocation53_spill] sm:$0xff] %v5472_v22 }
 0x22f   : > { %v1933_v29 = vmul.f32 %v3684_v28, %v1928_v25  ;;  %6582 = vst [vmem:[#allocation52_spill] sm:$0xff] %v5467_v2  ;;  %v5479_v28 = vld [vmem:[%s6249_s7 + $0x148] sm:$0xff]  ;;  %3691 = vtanh.f32 %v1943_v59  ;;  %v5532_v59 = vld [vmem:[%s6249_s7 + $0x118] sm:$0xff] }
 0x230   : > { %6589 = vst [vmem:[#allocation59_spill] sm:$0xff] %v5532_v59 }
 0x231   : > { %2091 = vmatmul.mubr.f32.vlgmr.msra.gmra.mxu0 %v1933_v29  ;;  %3425 = vst [vmem:[%s3851_s28 + $0x8] sm:$0xff] %v1933_v29  ;;  %2162 = vmatmul.mubr.f32.vlgmr.msra.gmra.mxu1 %v1933_v29  ;;  %v5484_v29 = vld [vmem:[%s6249_s7 + $0x158] sm:$0xff] }
 0x232   : > { %2243 = vmatpush1.msra.mxu0 %v5373_v33  ;;  %2314 = vmatpush1.msra.mxu1 %v5378_v37  ;;  %6584 = vst [vmem:[#allocation54_spill] sm:$0xff] %v5484_v29 }
 0x233   : > { %2244 = vmatprep.subr.mxu0 %v5383_v47  ;;  %2315 = vmatprep.subr.mxu1 %v5388_v54 }
 0x234   : > { %2245 = vmatpush1.msra.mxu0 %v5394_v12  ;;  %2316 = vmatpush1.msra.mxu1 %v5399_v50 }
 0x235   : > { %2246 = vmatprep.subr.mxu0 %v5406_v32  ;;  %2317 = vmatprep.subr.mxu1 %v5411_v36 }
 0x236   : > { %2247 = vmatpush1.msra.mxu0 %v5419_v52  ;;  %2318 = vmatpush1.msra.mxu1 %v5424_v60 }
 0x237   : > { %2248 = vmatprep.subr.mxu0 %v5431_v57  ;;  %2319 = vmatprep.subr.mxu1 %v5436_v56 }
 0x238   : > { %v3686_v25 = vpop.eup %3685  ;;  %2249 = vmatpush1.msra.mxu0 %v5443_v5  ;;  %2320 = vmatpush1.msra.mxu1 %v5448_v7  ;;  %v5496_v7 = vld [vmem:[%s6249_s7 + $0x150] sm:$0xff] }
 0x239   : > { %v1936_v42 = vmul.f32 0.5, %v3686_v25  ;;  %2250 = vmatprep.subr.mxu0 %v5455_v13  ;;  %2321 = vmatprep.subr.mxu1 %v5460_v15  ;;  %6586 = vst [vmem:[#allocation56_spill] sm:$0xff] %v5496_v7  ;;  %v5503_v25 = vld [vmem:[%s6249_s7 + $0x128] sm:$0xff]  ;;  %v5508_v15 = vld [vmem:[%s6249_s7 + $0x138] sm:$0xff] }
 0x23a   : > { %v3688_v5 = vpop.eup %3687  ;;  %2251 = vmatpush1.msra.mxu0 %v5467_v2  ;;  %2322 = vmatpush1.msra.mxu1 %v5472_v22  ;;  %v5515_v22 = vld [vmem:[%s6249_s7 + $0x120] sm:$0xff]  ;;  %v5520_v2 = vld [vmem:[%s6249_s7 + $0x130] sm:$0xff] }
 0x23b   : > { %v1937_v13 = vadd.f32 0.5, %v1936_v42  ;;  %v1940_v56 = vmul.f32 0.5, %v3688_v5  ;;  %2252 = vmatprep.subr.mxu0 %v5479_v28  ;;  %2323 = vmatprep.subr.mxu1 %v5484_v29  ;;  %6587 = vst [vmem:[#allocation57_spill] sm:$0xff] %v5515_v22  ;;  %6588 = vst [vmem:[#allocation58_spill] sm:$0xff] %v5520_v2  ;;  %v3690_v57 = vpop.eup %3689  ;;  %v5527_v5 = vld [vmem:[%s6249_s7 + $0x108] sm:$0xff] }
 0x23c   : > { %2253 = vmatpush1.msra.mxu0 %v5491_v55  ;;  %2324 = vmatpush1.msra.mxu1 %v5496_v7  ;;  %v5539_v7 = vld [vmem:[%s6249_s7 + $0x100] sm:$0xff]  ;;  %v5544_v55 = vld [vmem:[%s6249_s7 + $0x110] sm:$0xff] }
 0x23d   : > { %v1941_v42 = vadd.f32 0.5, %v1940_v56  ;;  %v1948_v29 = vmul.f32 %v3690_v57, %v1937_v13  ;;  %2254 = vmatprep.subr.mxu0 %v5503_v25  ;;  %2325 = vmatprep.subr.mxu1 %v5508_v15  ;;  %6590 = vst [vmem:[#allocation60_spill] sm:$0xff] %v5539_v7  ;;  %6591 = vst [vmem:[#allocation61_spill] sm:$0xff] %v5544_v55  ;;  %v5551_v57 = vld [vmem:[%s6249_s7 + $0xe8] sm:$0xff]  ;;  %v5556_v56 = vld [vmem:[%s6249_s7 + $0xf8] sm:$0xff] }
 0x23e   : > { %2255 = vmatpush1.msra.mxu0 %v5515_v22  ;;  %2326 = vmatpush1.msra.mxu1 %v5520_v2  ;;  %6592 = vst [vmem:[#allocation62_spill] sm:$0xff] %v5551_v57  ;;  %6593 = vst [vmem:[#allocation63_spill] sm:$0xff] %v5556_v56  ;;  %v5564_v2 = vld [vmem:[%s6249_s7 + $0xe0] sm:$0xff]  ;;  %v5569_v22 = vld [vmem:[%s6249_s7 + $0xf0] sm:$0xff] }
 0x23f   : > { %v1947_v13 = vmul.f32 %v1941_v42, %v4923_v46  ;;  %2256 = vmatprep.subr.mxu0 %v5527_v5  ;;  %2327 = vmatprep.subr.mxu1 %v5532_v59  ;;  %6594 = vst [vmem:[#allocation64_spill] sm:$0xff] %v5564_v2  ;;  %6595 = vst [vmem:[#allocation65_spill] sm:$0xff] %v5569_v22  ;;  %v5576_v46 = vld [vmem:[%s6249_s7 + $0xc8] sm:$0xff]  ;;  %v5581_v42 = vld [vmem:[%s6249_s7 + $0xd8] sm:$0xff] }
 0x240   : > { %2257 = vmatpush1.msra.mxu0 %v5539_v7  ;;  %2328 = vmatpush1.msra.mxu1 %v5544_v55  ;;  %6596 = vst [vmem:[#allocation66_spill] sm:$0xff] %v5576_v46  ;;  %6597 = vst [vmem:[#allocation67_spill] sm:$0xff] %v5581_v42  ;;  %v5590_v55 = vld [vmem:[%s6249_s7 + $0xc0] sm:$0xff]  ;;  %v5595_v7 = vld [vmem:[%s6249_s7 + $0xd0] sm:$0xff] }
 0x241   : > { %v5583_v59 = vadd.f32 %v1948_v29, %v1947_v13  ;;  %2258 = vmatprep.subr.mxu0 %v5551_v57  ;;  %2329 = vmatprep.subr.mxu1 %v5556_v56  ;;  %6598 = vst [vmem:[#allocation68_spill] sm:$0xff] %v5590_v55  ;;  %6599 = vst [vmem:[#allocation69_spill] sm:$0xff] %v5595_v7  ;;  %v5602_v29 = vld [vmem:[%s6249_s7 + $0xa8] sm:$0xff]  ;;  %v5607_v13 = vld [vmem:[%s6249_s7 + $0xb8] sm:$0xff]  ;;  %v3692_v56 = vpop.eup %3691 }
 0x242   : > { %2259 = vmatpush1.msra.mxu0 %v5564_v2  ;;  %2330 = vmatpush1.msra.mxu1 %v5569_v22  ;;  %6600 = vst [vmem:[#allocation70_spill] sm:$0xff] %v5602_v29  ;;  %6601 = vst [vmem:[#allocation71_spill] sm:$0xff] %v5607_v13  ;;  %v5615_v22 = vld [vmem:[%s6249_s7 + $0xa0] sm:$0xff]  ;;  %v5620_v2 = vld [vmem:[%s6249_s7 + $0xb0] sm:$0xff]  ;;  %v1945_v57 = vmul.f32 0.5, %v3692_v56 }
 0x243   : > { %3693 = vtanh.f32 %v5583_v59  ;;  %2260 = vmatprep.subr.mxu0 %v5576_v46  ;;  %2331 = vmatprep.subr.mxu1 %v5581_v42  ;;  %6602 = vst [vmem:[#allocation77_spill] sm:$0xff] %v5615_v22  ;;  %6603 = vst [vmem:[#allocation78_spill] sm:$0xff] %v5620_v2  ;;  %v5627_v46 = vld [vmem:[%s6249_s7 + $0x88] sm:$0xff]  ;;  %v5632_v42 = vld [vmem:[%s6249_s7 + $0x98] sm:$0xff] }
 0x244   : > { %2261 = vmatpush1.msra.mxu0 %v5590_v55  ;;  %2332 = vmatpush1.msra.mxu1 %v5595_v7  ;;  %6604 = vst [vmem:[#allocation79_spill] sm:$0xff] %v5627_v46  ;;  %6605 = vst [vmem:[#allocation80_spill] sm:$0xff] %v5632_v42  ;;  %v5639_v55 = vld [vmem:[%s6249_s7 + $0x80] sm:$0xff]  ;;  %v5644_v7 = vld [vmem:[%s6249_s7 + $0x90] sm:$0xff] }
 0x245   : > { %2262 = vmatprep.subr.mxu0 %v5602_v29  ;;  %2333 = vmatprep.subr.mxu1 %v5607_v13  ;;  %6606 = vst [vmem:[#allocation81_spill] sm:$0xff] %v5639_v55  ;;  %6607 = vst [vmem:[#allocation82_spill] sm:$0xff] %v5644_v7  ;;  %v5651_v29 = vld [vmem:[%s6249_s7 + $0x68] sm:$0xff]  ;;  %v5656_v13 = vld [vmem:[%s6249_s7 + $0x78] sm:$0xff] }
 0x246   : > { %2263 = vmatpush1.msra.mxu0 %v5615_v22  ;;  %2334 = vmatpush1.msra.mxu1 %v5620_v2  ;;  %6608 = vst [vmem:[#allocation83_spill] sm:$0xff] %v5651_v29  ;;  %6609 = vst [vmem:[#allocation84_spill] sm:$0xff] %v5656_v13  ;;  %v5663_v22 = vld [vmem:[%s6249_s7 + $0x60] sm:$0xff]  ;;  %v5668_v2 = vld [vmem:[%s6249_s7 + $0x70] sm:$0xff] }
 0x247   : > { %2264 = vmatprep.subr.mxu0 %v5627_v46  ;;  %2335 = vmatprep.subr.mxu1 %v5632_v42  ;;  %6610 = vst [vmem:[#allocation85_spill] sm:$0xff] %v5663_v22  ;;  %6611 = vst [vmem:[#allocation86_spill] sm:$0xff] %v5668_v2  ;;  %v5675_v46 = vld [vmem:[%s6249_s7 + $0x48] sm:$0xff]  ;;  %v5680_v42 = vld [vmem:[%s6249_s7 + $0x58] sm:$0xff] }
 0x248   : > { %2265 = vmatpush1.msra.mxu0 %v5639_v55  ;;  %2336 = vmatpush1.msra.mxu1 %v5644_v7  ;;  %6612 = vst [vmem:[#allocation87_spill] sm:$0xff] %v5675_v46  ;;  %6613 = vst [vmem:[#allocation88_spill] sm:$0xff] %v5680_v42  ;;  %v5687_v55 = vld [vmem:[%s6249_s7 + $0x40] sm:$0xff]  ;;  %v5692_v7 = vld [vmem:[%s6249_s7 + $0x50] sm:$0xff] }
 0x249   : > { %2266 = vmatprep.subr.mxu0 %v5651_v29  ;;  %2337 = vmatprep.subr.mxu1 %v5656_v13  ;;  %6614 = vst [vmem:[#allocation89_spill] sm:$0xff] %v5687_v55  ;;  %6615 = vst [vmem:[#allocation90_spill] sm:$0xff] %v5692_v7  ;;  %v5699_v29 = vld [vmem:[%s6249_s7 + $0x28] sm:$0xff]  ;;  %v5704_v13 = vld [vmem:[%s6249_s7 + $0x38] sm:$0xff] }
 0x24a   : > { %2267 = vmatpush1.msra.mxu0 %v5663_v22  ;;  %2338 = vmatpush1.msra.mxu1 %v5668_v2  ;;  %6616 = vst [vmem:[#allocation91_spill] sm:$0xff] %v5704_v13  ;;  %v5711_v22 = vld [vmem:[%s6249_s7 + $0x20] sm:$0xff]  ;;  %v5716_v2 = vld [vmem:[%s6249_s7 + $0x30] sm:$0xff]  ;;  %v5723_v56 = vld [vmem:[%s6249_s7 + $0x8] sm:$0xff] }
 0x24b   : > { %2268 = vmatprep.subr.mxu0 %v5675_v46  ;;  %2339 = vmatprep.subr.mxu1 %v5680_v42  ;;  %6617 = vst [vmem:[#allocation92_spill] sm:$0xff] %v5716_v2  ;;  %v5728_v42 = vld [vmem:[%s6249_s7 + $0x18] sm:$0xff]  ;;  %v1946_v46 = vadd.f32 0.5, %v1945_v57 }
 0x24c   : > { %2269 = vmatpush1.msra.mxu0 %v5687_v55  ;;  %2340 = vmatpush1.msra.mxu1 %v5692_v7  ;;  %v5735_v55 = vld [vmem:[%s6249_s7] sm:$0xff]  ;;  %v5742_v7 = vld [vmem:[%s6249_s7 + $0x10] sm:$0xff] }
 0x24d   : > { %2270 = vmatprep.subr.mxu0 %v5699_v29  ;;  %2341 = vmatprep.subr.mxu1 %v5704_v13 }
 0x24e   : > { %2271 = vmatpush1.msra.mxu0 %v5711_v22  ;;  %2342 = vmatpush1.msra.mxu1 %v5716_v2 }
 0x24f   : > { %2272 = vmatprep.subr.mxu0 %v5723_v56  ;;  %2343 = vmatprep.subr.mxu1 %v5728_v42 }
 0x250   : > { %v3694_v13 = vpop.eup %3693  ;;  %2273 = vmatpush1.msra.mxu0 %v5735_v55  ;;  %2306 = vmatprep.mubr.f32.mxu0 %v6407_v21 }
 0x251   : > { %2344 = vmatpush1.msra.mxu1 %v5742_v7  ;;  %2377 = vmatprep.mubr.f32.mxu1 %v6407_v21  ;;  %v1951_v2 = vmul.f32 %v3694_v13, %v1946_v46 }
 0x252   : > { %2498 = vmatprep.subr.mxu0 %v4966_v10  ;;  %2569 = vmatprep.subr.mxu1 %v4971_v17  ;;  %v6618_v10 = vld [vmem:[#allocation17_spill] sm:$0xff]  ;;  %v6619_v17 = vld [vmem:[#allocation18_spill] sm:$0xff] }
 0x253   : > { %2307 = vmatmul.mubr.f32.vlgmr.msra.gmra.mxu0 %v1951_v2  ;;  %3426 = vst [vmem:[%s3856_s15 + $0x10] sm:$0xff] %v1951_v2  ;;  %2378 = vmatmul.mubr.f32.vlgmr.msra.gmra.mxu1 %v1951_v2  ;;  %v6649_v2 = vld [vmem:[#allocation7_spill] sm:$0xff] }
 0x254   : > { %2499 = vmatpush1.msra.mxu0 %v4978_v24  ;;  %2570 = vmatpush1.msra.mxu1 %v4983_v63  ;;  %v6620_v24 = vld [vmem:[#allocation19_spill] sm:$0xff]  ;;  %v6621_v63 = vld [vmem:[#allocation20_spill] sm:$0xff] }
 0x255   : > { %2500 = vmatprep.subr.mxu0 %v4990_v8  ;;  %2571 = vmatprep.subr.mxu1 %v4995_v18  ;;  %v6622_v8 = vld [vmem:[#allocation21_spill] sm:$0xff]  ;;  %v6623_v18 = vld [vmem:[#allocation22_spill] sm:$0xff] }
 0x256   : > { %2501 = vmatpush1.msra.mxu0 %v5002_v20  ;;  %2572 = vmatpush1.msra.mxu1 %v5007_v11  ;;  %v6624_v20 = vld [vmem:[#allocation23_spill] sm:$0xff]  ;;  %v6625_v11 = vld [vmem:[#allocation24_spill] sm:$0xff] }
 0x257   : > { %2502 = vmatprep.subr.mxu0 %v5014_v44  ;;  %2573 = vmatprep.subr.mxu1 %v5019_v51  ;;  %v6626_v44 = vld [vmem:[#allocation25_spill] sm:$0xff]  ;;  %v6627_v51 = vld [vmem:[#allocation26_spill] sm:$0xff] }
 0x258   : > { %2503 = vmatpush1.msra.mxu0 %v5026_v23  ;;  %2574 = vmatpush1.msra.mxu1 %v5031_v19  ;;  %v6628_v23 = vld [vmem:[#allocation27_spill] sm:$0xff]  ;;  %v6629_v19 = vld [vmem:[#allocation28_spill] sm:$0xff] }
 0x259   : > { %2504 = vmatprep.subr.mxu0 %v5038_v26  ;;  %2575 = vmatprep.subr.mxu1 %v5043_v27  ;;  %v6630_v26 = vld [vmem:[#allocation29_spill] sm:$0xff]  ;;  %v6631_v27 = vld [vmem:[#allocation30_spill] sm:$0xff] }
 0x25a   : > { %2505 = vmatpush1.msra.mxu0 %v5050_v30  ;;  %2576 = vmatpush1.msra.mxu1 %v5055_v31  ;;  %v6632_v30 = vld [vmem:[#allocation31_spill] sm:$0xff]  ;;  %v6633_v31 = vld [vmem:[#allocation32_spill] sm:$0xff] }
 0x25b   : > { %2506 = vmatprep.subr.mxu0 %v5062_v34  ;;  %2577 = vmatprep.subr.mxu1 %v5067_v35  ;;  %v6634_v34 = vld [vmem:[#allocation33_spill] sm:$0xff]  ;;  %v6635_v35 = vld [vmem:[#allocation34_spill] sm:$0xff] }
 0x25c   : > { %2507 = vmatpush1.msra.mxu0 %v5074_v39  ;;  %2578 = vmatpush1.msra.mxu1 %v5079_v45  ;;  %v6636_v39 = vld [vmem:[#allocation35_spill] sm:$0xff]  ;;  %v6637_v45 = vld [vmem:[#allocation36_spill] sm:$0xff] }
 0x25d   : > { %2508 = vmatprep.subr.mxu0 %v5086_v38  ;;  %2579 = vmatprep.subr.mxu1 %v5091_v43  ;;  %v6638_v38 = vld [vmem:[#allocation37_spill] sm:$0xff]  ;;  %v6639_v43 = vld [vmem:[#allocation38_spill] sm:$0xff] }
 0x25e   : > { %2509 = vmatpush1.msra.mxu0 %v5098_v49  ;;  %2580 = vmatpush1.msra.mxu1 %v5103_v6  ;;  %v6640_v49 = vld [vmem:[#allocation39_spill] sm:$0xff]  ;;  %v6641_v6 = vld [vmem:[#allocation40_spill] sm:$0xff] }
 0x25f   : > { %2510 = vmatprep.subr.mxu0 %v5110_v58  ;;  %2581 = vmatprep.subr.mxu1 %v5115_v41  ;;  %v6642_v58 = vld [vmem:[#allocation41_spill] sm:$0xff]  ;;  %v6643_v41 = vld [vmem:[#allocation42_spill] sm:$0xff] }
 0x260   : > { %2511 = vmatpush1.msra.mxu0 %v5122_v14  ;;  %2582 = vmatpush1.msra.mxu1 %v5127_v62  ;;  %v6644_v14 = vld [vmem:[#allocation43_spill] sm:$0xff]  ;;  %v6645_v62 = vld [vmem:[#allocation44_spill] sm:$0xff] }
 0x261   : > { %2512 = vmatprep.subr.mxu0 %v5134_v48  ;;  %2583 = vmatprep.subr.mxu1 %v5139_v9  ;;  %v6646_v48 = vld [vmem:[#allocation45_spill] sm:$0xff] }
 0x262   : > { %2513 = vmatpush1.msra.mxu0 %v5144_v61  ;;  %2584 = vmatpush1.msra.mxu1 %v5151_v53  ;;  %v6647_v61 = vld [vmem:[#allocation6_spill] sm:$0xff] }
 0x263   : > { %2514 = vmatprep.subr.mxu0 %v5156_v0  ;;  %2585 = vmatprep.subr.mxu1 %v5161_v4 }
 0x264   : > { %2515 = vmatpush1.msra.mxu0 %v5168_v16  ;;  %2586 = vmatpush1.msra.mxu1 %v5173_v3  ;;  %v6648_v3 = vld [vmem:[#allocation8_spill] sm:$0xff] }
 0x265   : > { %2516 = vmatprep.subr.mxu0 %v5178_v40  ;;  %2587 = vmatprep.subr.mxu1 %v6618_v10  ;;  %v6650_v10 = vld [vmem:[#allocation9_spill] sm:$0xff] }
 0x266   : > { %2517 = vmatpush1.msra.mxu0 %v6619_v17  ;;  %2588 = vmatpush1.msra.mxu1 %v6620_v24 }
 0x267   : > { %2518 = vmatprep.subr.mxu0 %v6621_v63  ;;  %2589 = vmatprep.subr.mxu1 %v6622_v8 }
 0x268   : > { %2519 = vmatpush1.msra.mxu0 %v6623_v18  ;;  %2590 = vmatpush1.msra.mxu1 %v6624_v20 }
 0x269   : > { %2520 = vmatprep.subr.mxu0 %v6625_v11  ;;  %2591 = vmatprep.subr.mxu1 %v6626_v44 }
 0x26a   : > { %2521 = vmatpush1.msra.mxu0 %v6627_v51  ;;  %2592 = vmatpush1.msra.mxu1 %v6628_v23 }
 0x26b   : > { %2522 = vmatprep.subr.mxu0 %v6629_v19  ;;  %2593 = vmatprep.subr.mxu1 %v6630_v26 }
 0x26c   : > { %2523 = vmatpush1.msra.mxu0 %v6631_v27  ;;  %2594 = vmatpush1.msra.mxu1 %v6632_v30 }
 0x26d   : > { %2524 = vmatprep.subr.mxu0 %v6633_v31  ;;  %2595 = vmatprep.subr.mxu1 %v6634_v34  ;;  %v6651_v31 = vld [vmem:[#allocation73_spill] sm:$0xff] }
 0x26e   : > { %2525 = vmatpush1.msra.mxu0 %v6635_v35  ;;  %2596 = vmatpush1.msra.mxu1 %v6636_v39 }
 0x26f   : > { %2526 = vmatprep.subr.mxu0 %v6637_v45  ;;  %2597 = vmatprep.subr.mxu1 %v6638_v38 }
 0x270   : > { %2527 = vmatpush1.msra.mxu0 %v6639_v43  ;;  %2598 = vmatpush1.msra.mxu1 %v6640_v49  ;;  %v6652_v43 = vld [vmem:[#allocation75_spill] sm:$0xff] }
 0x271   : > { %2528 = vmatprep.subr.mxu0 %v6641_v6  ;;  %2599 = vmatprep.subr.mxu1 %v6642_v58  ;;  %v6653_v6 = vld [vmem:[#allocation74_spill] sm:$0xff] }
 0x272   : > { %2529 = vmatpush1.msra.mxu0 %v6643_v41  ;;  %2562 = vmatprep.mubr.f32.mxu0 %v6407_v21 }
 0x273   : > { %2600 = vmatpush1.msra.mxu1 %v6644_v14  ;;  %2633 = vmatprep.mubr.f32.mxu1 %v6407_v21 }
 0x274   : > { %2714 = vmatprep.subr.mxu0 %v6645_v62  ;;  %2785 = vmatprep.subr.mxu1 %v6646_v48 }
 0x2f1   : > { %v2092_v9 = vpop.f32.mrf.mxu0  ;;  %v2163_v0 = vpop.f32.mrf.mxu1 }
 0x2f2   : > { %v2168_v53 = vadd.f32 %v2092_v9, %v6647_v61  ;;  %v2170_v57 = vadd.f32 %v2163_v0, %v6649_v2  ;;  %v6654_v9 = vld [vmem:[#allocation76_spill] sm:$0xff]  ;;  %v6664_v2 = vld [vmem:[#allocation55_spill] sm:$0xff] }
 0x2f3   : > { %v2094_v4 = vpop.f32.mrf.mxu0  ;;  %v2165_v13 = vpop.f32.mrf.mxu1  ;;  %v6657_v0 = vld [vmem:[#allocation48_spill] sm:$0xff] }
 0x2f4   : > { %v2388_v16 = vmul.f32 0.5, %v2168_v53  ;;  %v2169_v40 = vadd.f32 %v2094_v4, %v6648_v3  ;;  %v2171_v17 = vadd.f32 %v2165_v13, %v6650_v10  ;;  %v6656_v53 = vld [vmem:[#allocation47_spill] sm:$0xff]  ;;  %v6661_v4 = vld [vmem:[#allocation52_spill] sm:$0xff]  ;;  %v6663_v3 = vld [vmem:[#allocation54_spill] sm:$0xff] }
 0x2f5   : > { %v6666_v10 = vld [vmem:[#allocation57_spill] sm:$0xff] }
 0x2f6   : > { %3695 = vtanh.f32 %v2388_v16  ;;  %v2392_v46 = vmul.f32 0.5, %v2169_v40  ;;  %v2397_v24 = vmul.f32 0.5, %v2171_v17  ;;  %v6667_v17 = vld [vmem:[#allocation58_spill] sm:$0xff] }
 0x2f8   : > { %3697 = vtanh.f32 %v2392_v46 }
 0x2f9   : > { %3699 = vtanh.f32 %v2170_v57  ;;  %v6665_v57 = vld [vmem:[#allocation56_spill] sm:$0xff] }
 0x2fa   : > { %3701 = vtanh.f32 %v2397_v24 }
 0x303   : > { %v3696_v63 = vpop.eup %3695 }
 0x304   : > { %v2390_v8 = vmul.f32 0.5, %v3696_v63  ;;  %v6669_v63 = vld [vmem:[#allocation60_spill] sm:$0xff] }
 0x305   : > { %v3698_v18 = vpop.eup %3697 }
 0x306   : > { %v2391_v20 = vadd.f32 0.5, %v2390_v8  ;;  %v2394_v11 = vmul.f32 0.5, %v3698_v18  ;;  %v3700_v44 = vpop.eup %3699  ;;  %v6670_v8 = vld [vmem:[#allocation61_spill] sm:$0xff] }
 0x307   : > { %v3702_v27 = vpop.eup %3701 }
 0x308   : > { %v2395_v51 = vadd.f32 0.5, %v2394_v11  ;;  %v2402_v23 = vmul.f32 %v3700_v44, %v2391_v20  ;;  %v2399_v45 = vmul.f32 0.5, %v3702_v27  ;;  %v6671_v20 = vld [vmem:[#allocation62_spill] sm:$0xff]  ;;  %v6674_v11 = vld [vmem:[#allocation65_spill] sm:$0xff]  ;;  %v6677_v44 = vld [vmem:[#allocation68_spill] sm:$0xff] }
 0x309   : > { %v6681_v27 = vld [vmem:[#allocation77_spill] sm:$0xff] }
 0x30a   : > { %v2401_v19 = vmul.f32 %v2395_v51, %v5364_v1  ;;  %v2400_v1 = vadd.f32 0.5, %v2399_v45  ;;  %v6678_v51 = vld [vmem:[#allocation69_spill] sm:$0xff]  ;;  %v6686_v45 = vld [vmem:[#allocation82_spill] sm:$0xff] }
 0x30c   : > { %v5824_v26 = vadd.f32 %v2402_v23, %v2401_v19  ;;  %v6679_v23 = vld [vmem:[#allocation70_spill] sm:$0xff]  ;;  %v6680_v19 = vld [vmem:[#allocation71_spill] sm:$0xff] }
 0x30e   : > { %3703 = vtanh.f32 %v5824_v26 }
 0x313   : > { %v2308_v30 = vpop.f32.mrf.mxu0  ;;  %v2379_v35 = vpop.f32.mrf.mxu1 }
 0x314   : > { %v2384_v34 = vadd.f32 %v2308_v30, %v6651_v31  ;;  %v2386_v58 = vadd.f32 %v2379_v35, %v6653_v6  ;;  %v6682_v30 = vld [vmem:[#allocation78_spill] sm:$0xff]  ;;  %v6683_v31 = vld [vmem:[#allocation79_spill] sm:$0xff] }
 0x315   : > { %v2310_v39 = vpop.f32.mrf.mxu0  ;;  %v2381_v48 = vpop.f32.mrf.mxu1  ;;  %v6690_v6 = vld [vmem:[#allocation86_spill] sm:$0xff] }
 0x316   : > { %v2406_v38 = vmul.f32 0.5, %v2384_v34  ;;  %v2385_v49 = vadd.f32 %v2310_v39, %v6652_v43  ;;  %v2387_v61 = vadd.f32 %v2381_v48, %v6654_v9  ;;  %v6684_v34 = vld [vmem:[#allocation80_spill] sm:$0xff]  ;;  %v6685_v39 = vld [vmem:[#allocation81_spill] sm:$0xff]  ;;  %v6695_v48 = vld [vmem:[#allocation91_spill] sm:$0xff] }
 0x317   : > { %v6688_v43 = vld [vmem:[#allocation84_spill] sm:$0xff] }
 0x318   : > { %3705 = vtanh.f32 %v2406_v38  ;;  %v2410_v41 = vmul.f32 0.5, %v2385_v49  ;;  %v6687_v38 = vld [vmem:[#allocation83_spill] sm:$0xff]  ;;  %v6689_v49 = vld [vmem:[#allocation85_spill] sm:$0xff]  ;;  %v6696_v9 = vld [vmem:[#allocation92_spill] sm:$0xff] }
 0x31a   : > { %3707 = vtanh.f32 %v2410_v41  ;;  %v6691_v41 = vld [vmem:[#allocation87_spill] sm:$0xff] }
 0x31b   : > { %v3704_v14 = vpop.eup %3703  ;;  %3709 = vtanh.f32 %v2386_v58 }
 0x31c   : > { %v2405_v62 = vmul.f32 %v3704_v14, %v2400_v1  ;;  %v6692_v1 = vld [vmem:[#allocation88_spill] sm:$0xff]  ;;  %v6693_v14 = vld [vmem:[#allocation89_spill] sm:$0xff] }
 0x31e   : > { %2563 = vmatmul.mubr.f32.vlgmr.msra.gmra.mxu0 %v2405_v62  ;;  %3427 = vst [vmem:[%s3851_s28 + $0x10] sm:$0xff] %v2405_v62  ;;  %2634 = vmatmul.mubr.f32.vlgmr.msra.gmra.mxu1 %v2405_v62  ;;  %v6694_v62 = vld [vmem:[#allocation90_spill] sm:$0xff] }
 0x31f   : > { %2715 = vmatpush1.msra.mxu0 %v5373_v33  ;;  %2786 = vmatpush1.msra.mxu1 %v5378_v37  ;;  %v2415_v33 = vmul.f32 0.5, %v2387_v61  ;;  %v6655_v37 = vld [vmem:[#allocation46_spill] sm:$0xff] }
 0x320   : > { %2716 = vmatprep.subr.mxu0 %v5383_v47  ;;  %2787 = vmatprep.subr.mxu1 %v5388_v54  ;;  %v6658_v54 = vld [vmem:[#allocation49_spill] sm:$0xff] }
 0x321   : > { %2717 = vmatpush1.msra.mxu0 %v5394_v12  ;;  %2788 = vmatpush1.msra.mxu1 %v5399_v50  ;;  %v6659_v50 = vld [vmem:[#allocation50_spill] sm:$0xff]  ;;  %3711 = vtanh.f32 %v2415_v33 }
 0x322   : > { %2718 = vmatprep.subr.mxu0 %v5406_v32  ;;  %2789 = vmatprep.subr.mxu1 %v5411_v36  ;;  %v6660_v32 = vld [vmem:[#allocation51_spill] sm:$0xff] }
 0x323   : > { %2719 = vmatpush1.msra.mxu0 %v5419_v52  ;;  %2790 = vmatpush1.msra.mxu1 %v5424_v60  ;;  %v6662_v52 = vld [vmem:[#allocation53_spill] sm:$0xff] }
 0x324   : > { %2720 = vmatprep.subr.mxu0 %v6655_v37  ;;  %2791 = vmatprep.subr.mxu1 %v6656_v53  ;;  %v6697_v37 = vld [vmem:[#allocation10_spill] sm:$0xff] }
 0x325   : > { %v3706_v47 = vpop.eup %3705  ;;  %2721 = vmatpush1.msra.mxu0 %v6657_v0  ;;  %2792 = vmatpush1.msra.mxu1 %v6658_v54 }
 0x326   : > { %v2408_v12 = vmul.f32 0.5, %v3706_v47  ;;  %2722 = vmatprep.subr.mxu0 %v6659_v50  ;;  %2793 = vmatprep.subr.mxu1 %v6660_v32 }
 0x327   : > { %v3708_v36 = vpop.eup %3707  ;;  %2723 = vmatpush1.msra.mxu0 %v6661_v4  ;;  %2794 = vmatpush1.msra.mxu1 %v6662_v52 }
 0x328   : > { %v2409_v60 = vadd.f32 0.5, %v2408_v12  ;;  %v2412_v16 = vmul.f32 0.5, %v3708_v36  ;;  %2724 = vmatprep.subr.mxu0 %v5479_v28  ;;  %2795 = vmatprep.subr.mxu1 %v6663_v3  ;;  %v3710_v40 = vpop.eup %3709  ;;  %v6668_v28 = vld [vmem:[#allocation59_spill] sm:$0xff] }
 0x329   : > { %2725 = vmatpush1.msra.mxu0 %v6664_v2  ;;  %2796 = vmatpush1.msra.mxu1 %v6665_v57 }
 0x32a   : > { %v2413_v46 = vadd.f32 0.5, %v2412_v16  ;;  %v2420_v13 = vmul.f32 %v3710_v40, %v2409_v60  ;;  %2726 = vmatprep.subr.mxu0 %v5503_v25  ;;  %2797 = vmatprep.subr.mxu1 %v5508_v15  ;;  %v6672_v25 = vld [vmem:[#allocation63_spill] sm:$0xff]  ;;  %v6673_v15 = vld [vmem:[#allocation64_spill] sm:$0xff] }
 0x32b   : > { %2727 = vmatpush1.msra.mxu0 %v6666_v10  ;;  %2798 = vmatpush1.msra.mxu1 %v6667_v17 }
 0x32c   : > { %v2419_v24 = vmul.f32 %v2413_v46, %v5583_v59  ;;  %2728 = vmatprep.subr.mxu0 %v5527_v5  ;;  %2799 = vmatprep.subr.mxu1 %v6668_v28  ;;  %v6675_v59 = vld [vmem:[#allocation66_spill] sm:$0xff]  ;;  %v6676_v5 = vld [vmem:[#allocation67_spill] sm:$0xff] }
 0x32d   : > { %2729 = vmatpush1.msra.mxu0 %v6669_v63  ;;  %2800 = vmatpush1.msra.mxu1 %v6670_v8 }
 0x32e   : > { %v5863_v18 = vadd.f32 %v2420_v13, %v2419_v24  ;;  %2730 = vmatprep.subr.mxu0 %v6671_v20  ;;  %2801 = vmatprep.subr.mxu1 %v6672_v25  ;;  %v3712_v35 = vpop.eup %3711  ;;  %v6701_v24 = vld [vmem:[#allocation14_spill] sm:$0xff] }
 0x32f   : > { %2731 = vmatpush1.msra.mxu0 %v6673_v15  ;;  %2802 = vmatpush1.msra.mxu1 %v6674_v11  ;;  %v2417_v58 = vmul.f32 0.5, %v3712_v35  ;;  %v6702_v15 = vld [vmem:[#allocation16_spill] sm:$0xff] }
 0x330   : > { %3713 = vtanh.f32 %v5863_v18  ;;  %2732 = vmatprep.subr.mxu0 %v6675_v59  ;;  %2803 = vmatprep.subr.mxu1 %v6676_v5  ;;  %v6703_v59 = vld [vmem:[#allocation15_spill] sm:$0xff] }
 0x331   : > { %2733 = vmatpush1.msra.mxu0 %v6677_v44  ;;  %2804 = vmatpush1.msra.mxu1 %v6678_v51  ;;  %v2418_v61 = vadd.f32 0.5, %v2417_v58 }
 0x332   : > { %2734 = vmatprep.subr.mxu0 %v6679_v23  ;;  %2805 = vmatprep.subr.mxu1 %v6680_v19 }
 0x333   : > { %2735 = vmatpush1.msra.mxu0 %v6681_v27  ;;  %2806 = vmatpush1.msra.mxu1 %v6682_v30  ;;  %v6704_v27 = vld [vmem:[#allocation72_spill] sm:$0xff] }
 0x334   : > { %2736 = vmatprep.subr.mxu0 %v6683_v31  ;;  %2807 = vmatprep.subr.mxu1 %v6684_v34 }
 0x335   : > { %2737 = vmatpush1.msra.mxu0 %v6685_v39  ;;  %2808 = vmatpush1.msra.mxu1 %v6686_v45 }
 0x336   : > { %2738 = vmatprep.subr.mxu0 %v6687_v38  ;;  %2809 = vmatprep.subr.mxu1 %v6688_v43 }
 0x337   : > { %2739 = vmatpush1.msra.mxu0 %v6689_v49  ;;  %2810 = vmatpush1.msra.mxu1 %v6690_v6 }
 0x338   : > { %2740 = vmatprep.subr.mxu0 %v6691_v41  ;;  %2811 = vmatprep.subr.mxu1 %v6692_v1 }
 0x339   : > { %2741 = vmatpush1.msra.mxu0 %v6693_v14  ;;  %2812 = vmatpush1.msra.mxu1 %v6694_v62 }
 0x33a   : > { %2742 = vmatprep.subr.mxu0 %v5699_v29  ;;  %2813 = vmatprep.subr.mxu1 %v6695_v48 }
 0x33b   : > { %2743 = vmatpush1.msra.mxu0 %v5711_v22  ;;  %2814 = vmatpush1.msra.mxu1 %v6696_v9 }
 0x33c   : > { %2744 = vmatprep.subr.mxu0 %v5723_v56  ;;  %2815 = vmatprep.subr.mxu1 %v5728_v42  ;;  %v6698_v42 = vld [vmem:[#allocation12_spill] sm:$0xff] }
 0x33d   : > { %v3714_v33 = vpop.eup %3713  ;;  %2745 = vmatpush1.msra.mxu0 %v5735_v55  ;;  %2778 = vmatprep.mubr.f32.mxu0 %v6407_v21  ;;  %v6699_v55 = vld [vmem:[#allocation11_spill] sm:$0xff] }
 0x33e   : > { %2816 = vmatpush1.msra.mxu1 %v5742_v7  ;;  %2849 = vmatprep.mubr.f32.mxu1 %v6407_v21  ;;  %v2423_v29 = vmul.f32 %v3714_v33, %v2418_v61  ;;  %v6700_v21 = vld [vmem:[#allocation13_spill] sm:$0xff] }
 0x340   : > { %2779 = vmatmul.mubr.f32.vlgmr.msra.gmra.mxu0 %v2423_v29  ;;  %3428 = vst [vmem:[%s3856_s15 + $0x8] sm:$0xff] %v2423_v29  ;;  %2850 = vmatmul.mubr.f32.vlgmr.msra.gmra.mxu1 %v2423_v29 }
 0x3de   : > { %v2564_v22 = vpop.f32.mrf.mxu0  ;;  %v2635_v47 = vpop.f32.mrf.mxu1 }
 0x3df   : > { %v2640_v53 = vadd.f32 %v2564_v22, %v6697_v37  ;;  %v2642_v12 = vadd.f32 %v2635_v47, %v6699_v55 }
 0x3e0   : > { %v2566_v56 = vpop.f32.mrf.mxu0  ;;  %v2637_v7 = vpop.f32.mrf.mxu1 }
 0x3e1   : > { %v2860_v0 = vmul.f32 0.5, %v2640_v53  ;;  %v2641_v54 = vadd.f32 %v2566_v56, %v6698_v42  ;;  %v2643_v32 = vadd.f32 %v2637_v7, %v6700_v21 }
 0x3e3   : > { %3715 = vtanh.f32 %v2860_v0  ;;  %v2864_v50 = vmul.f32 0.5, %v2641_v54  ;;  %v2869_v36 = vmul.f32 0.5, %v2643_v32 }
 0x3e5   : > { %3717 = vtanh.f32 %v2864_v50 }
 0x3e6   : > { %3719 = vtanh.f32 %v2642_v12 }
 0x3e7   : > { %3721 = vtanh.f32 %v2869_v36 }
 0x3f0   : > { %v3716_v4 = vpop.eup %3715 }
 0x3f1   : > { %v2862_v52 = vmul.f32 0.5, %v3716_v4 }
 0x3f2   : > { %v3718_v60 = vpop.eup %3717 }
 0x3f3   : > { %v2863_v16 = vadd.f32 0.5, %v2862_v52  ;;  %v2866_v3 = vmul.f32 0.5, %v3718_v60  ;;  %v3720_v40 = vpop.eup %3719 }
 0x3f4   : > { %v3722_v10 = vpop.eup %3721 }
 0x3f5   : > { %v2867_v2 = vadd.f32 0.5, %v2866_v3  ;;  %v2874_v57 = vmul.f32 %v3720_v40, %v2863_v16  ;;  %v2871_v20 = vmul.f32 0.5, %v3722_v10 }
 0x3f7   : > { %v2873_v46 = vmul.f32 %v2867_v2, %v5824_v26  ;;  %v2872_v44 = vadd.f32 0.5, %v2871_v20 }
 0x3f9   : > { %v5906_v13 = vadd.f32 %v2874_v57, %v2873_v46 }
 0x3fb   : > { %3723 = vtanh.f32 %v5906_v13  ;;  %2900 = vst [vmem:[#allocation2] sm:$0xff] %v5906_v13 }
 0x400   : > { %v2780_v17 = vpop.f32.mrf.mxu0  ;;  %v2851_v63 = vpop.f32.mrf.mxu1 }
 0x401   : > { %v2856_v28 = vadd.f32 %v2780_v17, %v6701_v24  ;;  %v2858_v26 = vadd.f32 %v2851_v63, %v6703_v59 }
 0x402   : > { %v2782_v8 = vpop.f32.mrf.mxu0  ;;  %v2853_v19 = vpop.f32.mrf.mxu1 }
 0x403   : > { %v2878_v25 = vmul.f32 0.5, %v2856_v28  ;;  %v2857_v11 = vadd.f32 %v2782_v8, %v6702_v15  ;;  %v2859_v30 = vadd.f32 %v2853_v19, %v6704_v27 }
 0x405   : > { %3725 = vtanh.f32 %v2878_v25  ;;  %v2882_v5 = vmul.f32 0.5, %v2857_v11  ;;  %v2887_v31 = vmul.f32 0.5, %v2859_v30 }
 0x407   : > { %3727 = vtanh.f32 %v2882_v5 }
 0x408   : > { %v3724_v51 = vpop.eup %3723  ;;  %3729 = vtanh.f32 %v2858_v26 }
 0x409   : > { %v5913_v23 = vmul.f32 %v3724_v51, %v2872_v44  ;;  %3731 = vtanh.f32 %v2887_v31 }
 0x40b   : > { %3429 = vst [vmem:[%s3851_s28 + $0x18] sm:$0xff] %v5913_v23  ;;  %2899 = vst [vmem:[#allocation2 + $0x10] sm:$0xff] %v5913_v23 }
 0x412   : > { %v3726_v34 = vpop.eup %3725 }
 0x413   : > { %v2880_v35 = vmul.f32 0.5, %v3726_v34 }
 0x414   : > { %v3728_v39 = vpop.eup %3727 }
 0x415   : > { %v2881_v45 = vadd.f32 0.5, %v2880_v35  ;;  %v2884_v38 = vmul.f32 0.5, %v3728_v39  ;;  %v3730_v43 = vpop.eup %3729 }
 0x416   : > { %v3732_v1 = vpop.eup %3731 }
 0x417   : > { %v2885_v49 = vadd.f32 0.5, %v2884_v38  ;;  %v2892_v6 = vmul.f32 %v3730_v43, %v2881_v45  ;;  %v2889_v14 = vmul.f32 0.5, %v3732_v1 }
 0x419   : > { %v2891_v58 = vmul.f32 %v2885_v49, %v5863_v18  ;;  %v2890_v62 = vadd.f32 0.5, %v2889_v14 }
 0x41b   : > { %v5920_v41 = vadd.f32 %v2892_v6, %v2891_v58 }
 0x41d   : > { %3733 = vtanh.f32 %v5920_v41  ;;  %2902 = vst [vmem:[#allocation2 + $0x8] sm:$0xff] %v5920_v41 }
 0x429   : > { %2906 = sbr.rel (%p3430_p6) target bundleno = 1350 (0x546), region = 72 }
 0x42a   : > { %v3734_v48 = vpop.eup %3733 }
 0x42b   : > { %v5924_v9 = vmul.f32 %v3734_v48, %v2890_v62 }
 0x42d   : > { %2898 = vst [vmem:[%s3856_s15] sm:$0xff] %v5924_v9  ;;  %2901 = vst [vmem:[#allocation2 + $0x18] sm:$0xff] %v5924_v9 }
 0x42e   : > { %v5933_v18 = vld [vmem:[%s6251_s9 + $0x78] sm:$0xff]  ;;  %v3749_v33 = vmov 0.0   ;;  %v5945_v29 = vld [vmem:[%s6251_s9 + $0x70] sm:$0xff]  ;;  %v5959_v37 = vld [vmem:[%s6251_s9 + $0x68] sm:$0xff]  ;;  %vm3750_vm1 = vmmov 0  }
 0x42f   : > { %v5938_v61 = vld [vmem:[%s6250_s8 + $0x78] sm:$0xff]  ;;  %3503 = vmatprep.subr.mxu0 %v3749_v33  ;;  %3538 = vmatprep.subr.mxu1 %v3749_v33  ;;  %v5950_v22 = vld [vmem:[%s6250_s8 + $0x70] sm:$0xff]  ;;  %v5964_v53 = vld [vmem:[%s6250_s8 + $0x68] sm:$0xff] }
 0x430   : > { %3504 = vmatpush3.msra.mxu0 %v5933_v18  ;;  %3539 = vmatpush3.msra.mxu1 %v5938_v61  ;;  %v5973_v47 = vld [vmem:[%s6251_s9 + $0x60] sm:$0xff]  ;;  %v5987_v0 = vld [vmem:[%s6251_s9 + $0x58] sm:$0xff]  ;;  %v6001_v54 = vld [vmem:[%s6251_s9 + $0x50] sm:$0xff] }
 0x431   : > { %3505 = vmatprep.subr.mxu0 %v3749_v33  ;;  %3540 = vmatprep.subr.mxu1 %v3749_v33  ;;  %v5978_v56 = vld [vmem:[%s6250_s8 + $0x60] sm:$0xff]  ;;  %v5992_v42 = vld [vmem:[%s6250_s8 + $0x58] sm:$0xff]  ;;  %v6006_v55 = vld [vmem:[%s6250_s8 + $0x50] sm:$0xff] }
 0x432   : > { %3506 = vmatpush3.msra.mxu0 %v5945_v29  ;;  %3541 = vmatpush3.msra.mxu1 %v5950_v22  ;;  %v6015_v12 = vld [vmem:[%s6251_s9 + $0x48] sm:$0xff]  ;;  %v6029_v7 = vld [vmem:[%s6251_s9 + $0x40] sm:$0xff]  ;;  %v6043_v32 = vld [vmem:[%s6251_s9 + $0x38] sm:$0xff] }
 0x433   : > { %3507 = vmatprep.subr.mxu0 %v3749_v33  ;;  %3542 = vmatprep.subr.mxu1 %v3749_v33  ;;  %v6020_v50 = vld [vmem:[%s6250_s8 + $0x48] sm:$0xff]  ;;  %v6034_v21 = vld [vmem:[%s6250_s8 + $0x40] sm:$0xff]  ;;  %v6048_v36 = vld [vmem:[%s6250_s8 + $0x38] sm:$0xff] }
 0x434   : > { %3508 = vmatpush3.msra.mxu0 %v5959_v37  ;;  %3543 = vmatpush3.msra.mxu1 %v5964_v53  ;;  %v6057_v4 = vld [vmem:[%s6251_s9 + $0x30] sm:$0xff]  ;;  %v6071_v60 = vld [vmem:[%s6251_s9 + $0x28] sm:$0xff]  ;;  %v6085_v3 = vld [vmem:[%s6251_s9 + $0x20] sm:$0xff] }
 0x435   : > { %3509 = vmatprep.subr.mxu0 %v3749_v33  ;;  %3544 = vmatprep.subr.mxu1 %v3749_v33  ;;  %v6062_v52 = vld [vmem:[%s6250_s8 + $0x30] sm:$0xff]  ;;  %v6076_v16 = vld [vmem:[%s6250_s8 + $0x28] sm:$0xff]  ;;  %v6090_v40 = vld [vmem:[%s6250_s8 + $0x20] sm:$0xff] }
 0x436   : > { %3510 = vmatpush3.msra.mxu0 %v5973_v47  ;;  %3545 = vmatpush3.msra.mxu1 %v5978_v56  ;;  %v6099_v2 = vld [vmem:[%s6251_s9 + $0x18] sm:$0xff]  ;;  %v6113_v46 = vld [vmem:[%s6251_s9 + $0x10] sm:$0xff]  ;;  %v6127_v17 = vld [vmem:[%s6251_s9 + $0x8] sm:$0xff] }
 0x437   : > { %3511 = vmatprep.subr.mxu0 %v3749_v33  ;;  %3546 = vmatprep.subr.mxu1 %v3749_v33  ;;  %v6104_v57 = vld [vmem:[%s6250_s8 + $0x18] sm:$0xff]  ;;  %v6118_v10 = vld [vmem:[%s6250_s8 + $0x10] sm:$0xff]  ;;  %v6132_v24 = vld [vmem:[%s6250_s8 + $0x8] sm:$0xff] }
 0x438   : > { %3512 = vmatpush3.msra.mxu0 %v5987_v0  ;;  %3547 = vmatpush3.msra.mxu1 %v5992_v42  ;;  %v6141_v28 = vld [vmem:[%s6251_s9] sm:$0xff] }
 0x439   : > { %3513 = vmatprep.subr.mxu0 %v3749_v33  ;;  %3548 = vmatprep.subr.mxu1 %v3749_v33  ;;  %v6148_v63 = vld [vmem:[%s6250_s8] sm:$0xff] }
 0x43a   : > { %3514 = vmatpush3.msra.mxu0 %v6001_v54  ;;  %3549 = vmatpush3.msra.mxu1 %v6006_v55  ;;  %v3431_v25 = vld [vmem:[%s6252_s10] ss:$0 sm:$0xff] }
 0x43b   : > { %3515 = vmatprep.subr.mxu0 %v3749_v33  ;;  %3550 = vmatprep.subr.mxu1 %v3749_v33 }
 0x43c   : > { %3516 = vmatpush3.msra.mxu0 %v6015_v12  ;;  %3551 = vmatpush3.msra.mxu1 %v6020_v50 }
 0x43d   : > { %3517 = vmatprep.subr.mxu0 %v3749_v33  ;;  %3552 = vmatprep.subr.mxu1 %v3749_v33 }
 0x43e   : > { %3518 = vmatpush3.msra.mxu0 %v6029_v7  ;;  %3553 = vmatpush3.msra.mxu1 %v6034_v21 }
 0x43f   : > { %3519 = vmatprep.subr.mxu0 %v3749_v33  ;;  %3554 = vmatprep.subr.mxu1 %v3749_v33 }
 0x440   : > { %3520 = vmatpush3.msra.mxu0 %v6043_v32  ;;  %3555 = vmatpush3.msra.mxu1 %v6048_v36 }
 0x441   : > { %3521 = vmatprep.subr.mxu0 %v3749_v33  ;;  %3556 = vmatprep.subr.mxu1 %v3749_v33 }
 0x442   : > { %3522 = vmatpush3.msra.mxu0 %v6057_v4  ;;  %3557 = vmatpush3.msra.mxu1 %v6062_v52 }
 0x443   : > { %3523 = vmatprep.subr.mxu0 %v3749_v33  ;;  %3558 = vmatprep.subr.mxu1 %v3749_v33 }
 0x444   : > { %3524 = vmatpush3.msra.mxu0 %v6071_v60  ;;  %3559 = vmatpush3.msra.mxu1 %v6076_v16 }
 0x445   : > { %3525 = vmatprep.subr.mxu0 %v3749_v33  ;;  %3560 = vmatprep.subr.mxu1 %v3749_v33 }
 0x446   : > { %3526 = vmatpush3.msra.mxu0 %v6085_v3  ;;  %3561 = vmatpush3.msra.mxu1 %v6090_v40 }
 0x447   : > { %3527 = vmatprep.subr.mxu0 %v3749_v33  ;;  %3562 = vmatprep.subr.mxu1 %v3749_v33 }
 0x448   : > { %3528 = vmatpush3.msra.mxu0 %v6099_v2  ;;  %3563 = vmatpush3.msra.mxu1 %v6104_v57 }
 0x449   : > { %3529 = vmatprep.subr.mxu0 %v3749_v33  ;;  %3564 = vmatprep.subr.mxu1 %v3749_v33 }
 0x44a   : > { %3530 = vmatpush3.msra.mxu0 %v6113_v46  ;;  %3565 = vmatpush3.msra.mxu1 %v6118_v10 }
 0x44b   : > { %3531 = vmatprep.subr.mxu0 %v3749_v33  ;;  %3566 = vmatprep.subr.mxu1 %v3749_v33 }
 0x44c   : > { %3532 = vmatpush3.msra.mxu0 %v6127_v17  ;;  %3567 = vmatpush3.msra.mxu1 %v6132_v24 }
 0x44d   : > { %3533 = vmatprep.subr.mxu0 %v3749_v33  ;;  %3568 = vmatprep.subr.mxu1 %v3749_v33 }
 0x44e   : > { %3534 = vmatpush3.msra.mxu0 %v6141_v28  ;;  %3535 = vmatprep.mubr.msk.f32.mxu0 %vm3750_vm1, %v3749_v33 }
 0x44f   : > { %3569 = vmatpush3.msra.mxu1 %v6148_v63  ;;  %3570 = vmatprep.mubr.msk.f32.mxu1 %vm3750_vm1, %v3749_v33 }
 0x450   : > { %3536 = vmatmul.mubr.f32.vlgmr.msra.gmra.mxu0 %v5924_v9  ;;  %3571 = vmatmul.mubr.f32.vlgmr.msra.gmra.mxu1 %v5913_v23 }
 0x451   : > { %3573 = vmatprep.subr.mxu0 %v3749_v33  ;;  %3608 = vmatprep.subr.mxu1 %v3749_v33 }
 0x452   : > { %3574 = vmatpush3.msra.mxu0 %v5933_v18  ;;  %3609 = vmatpush3.msra.mxu1 %v5938_v61 }
 0x453   : > { %3575 = vmatprep.subr.mxu0 %v3749_v33  ;;  %3610 = vmatprep.subr.mxu1 %v3749_v33 }
 0x454   : > { %3576 = vmatpush3.msra.mxu0 %v5945_v29  ;;  %3611 = vmatpush3.msra.mxu1 %v5950_v22 }
 0x455   : > { %3577 = vmatprep.subr.mxu0 %v3749_v33  ;;  %3612 = vmatprep.subr.mxu1 %v3749_v33 }
 0x456   : > { %3578 = vmatpush3.msra.mxu0 %v5959_v37  ;;  %3613 = vmatpush3.msra.mxu1 %v5964_v53 }
 0x457   : > { %3579 = vmatprep.subr.mxu0 %v3749_v33  ;;  %3614 = vmatprep.subr.mxu1 %v3749_v33 }
 0x458   : > { %3580 = vmatpush3.msra.mxu0 %v5973_v47  ;;  %3615 = vmatpush3.msra.mxu1 %v5978_v56 }
 0x459   : > { %3581 = vmatprep.subr.mxu0 %v3749_v33  ;;  %3616 = vmatprep.subr.mxu1 %v3749_v33 }
 0x45a   : > { %3582 = vmatpush3.msra.mxu0 %v5987_v0  ;;  %3617 = vmatpush3.msra.mxu1 %v5992_v42 }
 0x45b   : > { %3583 = vmatprep.subr.mxu0 %v3749_v33  ;;  %3618 = vmatprep.subr.mxu1 %v3749_v33 }
 0x45c   : > { %3584 = vmatpush3.msra.mxu0 %v6001_v54  ;;  %3619 = vmatpush3.msra.mxu1 %v6006_v55 }
 0x45d   : > { %3585 = vmatprep.subr.mxu0 %v3749_v33  ;;  %3620 = vmatprep.subr.mxu1 %v3749_v33 }
 0x45e   : > { %3586 = vmatpush3.msra.mxu0 %v6015_v12  ;;  %3621 = vmatpush3.msra.mxu1 %v6020_v50 }
 0x45f   : > { %3587 = vmatprep.subr.mxu0 %v3749_v33  ;;  %3622 = vmatprep.subr.mxu1 %v3749_v33 }
 0x460   : > { %3588 = vmatpush3.msra.mxu0 %v6029_v7  ;;  %3623 = vmatpush3.msra.mxu1 %v6034_v21 }
 0x461   : > { %3589 = vmatprep.subr.mxu0 %v3749_v33  ;;  %3624 = vmatprep.subr.mxu1 %v3749_v33 }
 0x462   : > { %3590 = vmatpush3.msra.mxu0 %v6043_v32  ;;  %3625 = vmatpush3.msra.mxu1 %v6048_v36 }
 0x463   : > { %3591 = vmatprep.subr.mxu0 %v3749_v33  ;;  %3626 = vmatprep.subr.mxu1 %v3749_v33 }
 0x464   : > { %3592 = vmatpush3.msra.mxu0 %v6057_v4  ;;  %3627 = vmatpush3.msra.mxu1 %v6062_v52 }
 0x465   : > { %3593 = vmatprep.subr.mxu0 %v3749_v33  ;;  %3628 = vmatprep.subr.mxu1 %v3749_v33 }
 0x466   : > { %3594 = vmatpush3.msra.mxu0 %v6071_v60  ;;  %3629 = vmatpush3.msra.mxu1 %v6076_v16 }
 0x467   : > { %3595 = vmatprep.subr.mxu0 %v3749_v33  ;;  %3630 = vmatprep.subr.mxu1 %v3749_v33 }
 0x468   : > { %3596 = vmatpush3.msra.mxu0 %v6085_v3  ;;  %3631 = vmatpush3.msra.mxu1 %v6090_v40 }
 0x469   : > { %3597 = vmatprep.subr.mxu0 %v3749_v33  ;;  %3632 = vmatprep.subr.mxu1 %v3749_v33 }
 0x46a   : > { %3598 = vmatpush3.msra.mxu0 %v6099_v2  ;;  %3633 = vmatpush3.msra.mxu1 %v6104_v57 }
 0x46b   : > { %3599 = vmatprep.subr.mxu0 %v3749_v33  ;;  %3634 = vmatprep.subr.mxu1 %v3749_v33 }
 0x46c   : > { %3600 = vmatpush3.msra.mxu0 %v6113_v46  ;;  %3635 = vmatpush3.msra.mxu1 %v6118_v10 }
 0x46d   : > { %3601 = vmatprep.subr.mxu0 %v3749_v33  ;;  %3636 = vmatprep.subr.mxu1 %v3749_v33 }
 0x46e   : > { %3602 = vmatpush3.msra.mxu0 %v6127_v17  ;;  %3637 = vmatpush3.msra.mxu1 %v6132_v24 }
 0x46f   : > { %3603 = vmatprep.subr.mxu0 %v3749_v33  ;;  %3638 = vmatprep.subr.mxu1 %v3749_v33 }
 0x470   : > { %3604 = vmatpush3.msra.mxu0 %v6141_v28  ;;  %3605 = vmatprep.mubr.msk.f32.mxu0 %vm3750_vm1, %v3749_v33 }
 0x471   : > { %3639 = vmatpush3.msra.mxu1 %v6148_v63  ;;  %3640 = vmatprep.mubr.msk.f32.mxu1 %vm3750_vm1, %v3749_v33 }
 0x472   : > { %3606 = vmatmul.mubr.f32.vlgmr.msra.gmra.mxu0 %v5920_v41  ;;  %3641 = vmatmul.mubr.f32.vlgmr.msra.gmra.mxu1 %v5906_v13 }
 0x510   : > { %v3005_v8 = vpop.f32.mrf.mxu0  ;;  %v3075_v20 = vpop.f32.mrf.mxu1 }
 0x511   : > { %v3076_v15 = vadd.f32 %v3075_v20, %v3005_v8 }
 0x512   : > { %v3537_v11 = vpop.f32.mrf.mxu0  ;;  %v3572_v59 = vpop.f32.mrf.mxu1 }
 0x513   : > { %v3086_v26 = vadd.f32 %v3431_v25, %v3076_v15 }
 0x515   : > { %3735 = vtanh.f32 %v3086_v26 }
 0x522   : > { %v3736_v5 = vpop.eup %3735 }
 0x523   : > { %3088 = vst [vmem:[%s6255_s13] sm:$0xff] %v3736_v5 }
 0x532   : > { %v3187_v44 = vpop.f32.mrf.mxu0  ;;  %v3257_v51 = vpop.f32.mrf.mxu1 }
 0x533   : > { %v3258_v23 = vadd.f32 %v3257_v51, %v3187_v44 }
 0x534   : > { %v3607_v13 = vpop.f32.mrf.mxu0  ;;  %v3642_v19 = vpop.f32.mrf.mxu1 }
 0x535   : > { %v3268_v27 = vadd.f32 %v3431_v25, %v3258_v23 }
 0x537   : > { %3737 = vtanh.f32 %v3268_v27 }
 0x544   : > { %v3738_v30 = vpop.eup %3737 }
 0x545   : > { %3270 = vst [vmem:[%s6256_s14] sm:$0xff] %v3738_v30 }
 0x546 PF: > { %s6705_s30 = sld [smem:[#allocation5_spill]] }
 0x54c   : > { %s25_s29 = sadd.s32 1, %s6705_s30  }
 0x54d   : > { %p22_p7 = scmp.ge.s32.totalorder %s25_s29, 4  }
 0x54f   :  { %24 = sbr.rel (!%p22_p7) target bundleno = 1 (0x1), region = 150 }

</bundles_post_ra>
